<compile_context>
chip_gen: v7x
topology: tpu7x:2x2x1
jax: 0.10.0
libtpu: 0.0.40
codegen_flags: <defaults>
</compile_context>

<pallas_src>
import math
import functools

import jax
import jax.numpy as jnp
from jax.experimental import pallas as pl
from jax.experimental.pallas import tpu as pltpu


# ----------------------------- math helpers (traced inside the kernel) -------------

_SQRT1_2 = 1.0 / math.sqrt(2.0)


def _erf(x):
    # Abramowitz & Stegun 7.1.26 rational approximation (max abs err ~1.5e-7).
    a1, a2, a3, a4, a5 = 0.254829592, -0.284496736, 1.421413741, -1.453152027, 1.061405429
    p = 0.3275911
    ax = jnp.abs(x)
    t = 1.0 / (1.0 + p * ax)
    poly = ((((a5 * t + a4) * t + a3) * t + a2) * t + a1) * t
    y = 1.0 - poly * jnp.exp(-ax * ax)
    return jnp.where(x >= 0, y, -y)


def _gelu_exact(x):
    # PyTorch F.gelu (approximate='none'): 0.5*x*(1+erf(x/sqrt(2)))
    return 0.5 * x * (1.0 + _erf(x * _SQRT1_2))


def _layernorm(x, g, b, eps=1e-5):
    mu = jnp.mean(x, axis=-1, keepdims=True)
    xc = x - mu
    var = jnp.mean(xc * xc, axis=-1, keepdims=True)
    return xc * jax.lax.rsqrt(var + eps) * g + b


# ----------------------------- fused forward kernel --------------------------------

def _fused_forward_kernel(
    x_ref,                                  # [B, C, N, P] raw input (free host reshape)
    wp_ref, clspos_ref, pospb_ref, bias_ref,
    wqkv_ref, bqkv_ref, wo_ref, bo_ref, ln1g_ref, ln1b_ref,
    w1_ref, b1_ref, w2_ref, b2_ref, ln2g_ref, ln2b_ref,
    wf_ref, bf_ref,
    o_ref,
    x_scr, q_scr, k_scr, v_scr, ctx_scr,
    *, n_head, e_layers, batch, n_patch,
):
    """Whole classification forward for the entire (folded) batch."""
    H = n_head
    Bt = batch
    N = n_patch
    S = N + 1
    BtS = Bt * S
    C = x_ref.shape[1]
    D = wqkv_ref.shape[1]
    hd = D // H
    scale = 1.0 / math.sqrt(hd)
    bf16 = jnp.bfloat16
    f32 = jnp.float32

    nt = (((2,), (2,)), ((0,), (0,)))   # [H,m,k] x [H,n,k]   -> [H,m,n]
    nn = (((2,), (1,)), ((0,), (0,)))   # [H,m,k] x [H,k,n]   -> [H,m,n]

    # ---- patch embedding (conv-as-matmul, per channel) + cls + pos, built in VMEM --
    for b in range(Bt):
        acc = jnp.dot(x_ref[b, 0, :, :].astype(bf16), wp_ref[0],
                      preferred_element_type=f32)                       # [N, D]
        for c in range(1, C):
            acc = acc + jnp.dot(x_ref[b, c, :, :].astype(bf16), wp_ref[c],
                                preferred_element_type=f32)
        x_scr[pl.ds(b * S, 1), :] = clspos_ref[...]                     # cls + pos[0]
        x_scr[pl.ds(b * S + 1, N), :] = acc + pospb_ref[...]            # + bias + pos[1:]
    x2 = x_scr[...]                                                     # [BtS, D] f32

    attn_bias = bias_ref[...]                                           # [H, BtS, BtS]

    # ---- transformer encoder: post-norm layers, statically unrolled ----
    for l in range(e_layers):
        # fused QKV projection: one [BtS, D] @ [D, 3D] matmul
        qkv = jnp.dot(x2.astype(bf16), wqkv_ref[l],
                      preferred_element_type=f32) + bqkv_ref[l]         # [BtS, 3D]

        # split heads into scratch (heads -> leading dim; batch separated by mask)
        for h in range(H):
            q_scr[h] = qkv[:, h * hd:(h + 1) * hd].astype(bf16)
            k_scr[h] = qkv[:, D + h * hd:D + (h + 1) * hd].astype(bf16)
            v_scr[h] = qkv[:, 2 * D + h * hd:2 * D + (h + 1) * hd].astype(bf16)
        q = q_scr[...]                                                  # [H, BtS, hd]
        k = k_scr[...]
        v = v_scr[...]

        s = jax.lax.dot_general(q, k, nt, preferred_element_type=f32)   # [H, BtS, BtS]
        s = s * scale + attn_bias                                       # block cross-batch
        s = s - jnp.max(s, axis=-1, keepdims=True)
        p = jnp.exp(s)
        p = p * pl.reciprocal(jnp.sum(p, axis=-1, keepdims=True), approx=True)

        ctx = jax.lax.dot_general(p.astype(bf16), v, nn,
                                  preferred_element_type=f32)           # [H, BtS, hd]
        # merge heads back into a lane-dense [BtS, D] slab, then one out-proj matmul
        for h in range(H):
            ctx_scr[:, pl.ds(h * hd, hd)] = ctx[h].astype(bf16)
        attn = jnp.dot(ctx_scr[...], wo_ref[l],
                       preferred_element_type=f32) + bo_ref[l]          # [BtS, D]

        x1 = _layernorm(x2 + attn, ln1g_ref[l], ln1b_ref[l])

        # feed-forward (GELU exact), lane-dense [BtS, F] intermediate
        h1 = jnp.dot(x1.astype(bf16), w1_ref[l],
                     preferred_element_type=f32) + b1_ref[l]            # [BtS, F]
        h1 = _gelu_exact(h1)
        h2 = jnp.dot(h1.astype(bf16), w2_ref[l],
                     preferred_element_type=f32) + b2_ref[l]            # [BtS, D]
        x2 = _layernorm(x1 + h2, ln2g_ref[l], ln2b_ref[l])

    # ---- classification head: cls rows (global_pool=False) -> padded Linear ----
    logits = jnp.dot(x2.astype(bf16), wf_ref[...],
                     preferred_element_type=f32) + bf_ref[...]          # [BtS, 128]
    for b in range(Bt):
        o_ref[pl.ds(b, 1), :] = logits[b * S:b * S + 1, :]


# ----------------------------- parameter construction / packing --------------------

def sinusoidal_pos_embed(max_len, d_model):
    position = jnp.arange(max_len, dtype=jnp.float32)[:, None]
    div_term = jnp.exp(
        jnp.arange(0, d_model, 2, dtype=jnp.float32) * (-math.log(10000.0) / d_model)
    )
    pe = jnp.zeros((max_len, d_model), dtype=jnp.float32)
    pe = pe.at[:, 0::2].set(jnp.sin(position * div_term))
    pe = pe.at[:, 1::2].set(jnp.cos(position * div_term))
    return pe


def init_params(key, *, C, P, D, n_head, e_layers, n_classes=4, ffn_mult=4):
    """Torch-equivalent parameterization (wqkv stored [D, 3D] = in_proj_weight.T)."""
    ks = iter(jax.random.split(key, 8 + 16 * e_layers))

    def nrm(shape, scale=0.02):
        return (scale * jax.random.normal(next(ks), shape)).astype(jnp.float32)

    F = ffn_mult * D
    layers = []
    for _ in range(e_layers):
        layers.append(dict(
            wqkv=nrm((D, 3 * D)), bqkv=jnp.zeros((1, 3 * D), jnp.float32),
            wo=nrm((D, D)), bo=jnp.zeros((1, D), jnp.float32),
            ln1g=jnp.ones((1, D), jnp.float32), ln1b=jnp.zeros((1, D), jnp.float32),
            w1=nrm((D, F)), b1=jnp.zeros((1, F), jnp.float32),
            w2=nrm((F, D)), b2=jnp.zeros((1, D), jnp.float32),
            ln2g=jnp.ones((1, D), jnp.float32), ln2b=jnp.zeros((1, D), jnp.float32),
        ))

    return dict(
        patch_size=P,
        n_head=n_head,
        # Conv1d(C, D, kernel=P, stride=P) weight [D, C, P] flattened to [C*P, D]
        w_patch=nrm((C * P, D)),
        b_patch=jnp.zeros((D,), jnp.float32),
        cls_token=nrm((1, 1, D), scale=0.1),            # torch.normal(0, 0.1, (1,1,D))
        pos_embed=sinusoidal_pos_embed(60 * 250 // P + 1, D),
        layers=layers,
        w_final=nrm((D, n_classes)),                    # final_projector Linear(D, 4)
        b_final=jnp.zeros((n_classes,), jnp.float32),
    )


def pack_params(params):
    """Stack per-layer weights, keep QKV fused [E, D, 3D], pad the classifier to 128
    output lanes, cast matmul operands to bf16 (biases / LayerNorm params stay f32).
    NOTE: when importing real torch checkpoints, Linear / in_proj weights must be
    transposed ([out,in] -> [in,out]) before packing."""
    D = params["w_patch"].shape[1]
    P = params["patch_size"]
    C = params["w_patch"].shape[0] // P
    H = params["n_head"]
    bf16 = jnp.bfloat16
    layers = params["layers"]

    def stack(name):
        return jnp.stack([lp[name] for lp in layers], axis=0)

    n_classes = params["w_final"].shape[1]
    wf_pad = jnp.zeros((D, 128), jnp.float32).at[:, :n_classes].set(params["w_final"])
    bf_pad = jnp.zeros((1, 128), jnp.float32).at[0, :n_classes].set(params["b_final"])

    return dict(
        patch_size=P,
        n_head=H,
        n_classes=n_classes,
        w_patch=params["w_patch"].reshape(C, P, D).astype(bf16),   # [C, P, D]
        b_patch=params["b_patch"].reshape(1, D).astype(jnp.float32),
        cls_tok=params["cls_token"].reshape(1, D).astype(jnp.float32),
        pos_embed=params["pos_embed"].astype(jnp.float32),
        wqkv=stack("wqkv").astype(bf16),        # [E, D, 3D]
        bqkv=stack("bqkv"),                     # [E, 1, 3D]
        wo=stack("wo").astype(bf16),            # [E, D, D]
        bo=stack("bo"),
        ln1g=stack("ln1g"), ln1b=stack("ln1b"),
        w1=stack("w1").astype(bf16), b1=stack("b1"),
        w2=stack("w2").astype(bf16), b2=stack("b2"),
        ln2g=stack("ln2g"), ln2b=stack("ln2b"),
        w_final=wf_pad.astype(bf16),            # [D, 128] (zero-padded)
        b_final=bf_pad.astype(jnp.float32),     # [1, 128]
    )


# ----------------------------- forward wrapper --------------------------------------

def ti_mae_classification_forward(x, pk):
    """forward_feature: patch_embed -> +cls -> +pos -> encoder -> cls token -> Linear(D,4)."""
    B, C, L = x.shape
    P = pk["patch_size"]
    N = L // P
    S = N + 1
    BtS = B * S
    H = pk["n_head"]
    E = pk["wqkv"].shape[0]
    D = pk["wqkv"].shape[1]
    n_classes = pk["n_classes"]

    # Free layout view (no transpose / no extra HBM array): patches live as [B,C,N,P]
    # and the conv-as-matmul + cls/pos assembly happen inside the kernel.
    x4 = x.reshape(B, C, N, P)

    pos = pk["pos_embed"][:S]
    cls_pos = pk["cls_tok"] + pos[0:1]                       # cls + pos[0]     [1, D]
    pos_pb = pos[1:S] + pk["b_patch"]                        # pos[1:] + conv b [N, D]

    # Additive bias that blocks cross-batch attention (batch is folded into sublanes).
    row = jnp.arange(BtS)[:, None] // S
    col = jnp.arange(BtS)[None, :] // S
    attn_bias = jnp.where(row == col, 0.0, -1e30).astype(jnp.float32)
    attn_bias = jnp.broadcast_to(attn_bias[None], (H, BtS, BtS))

    weight_args = (
        pk["w_patch"], cls_pos, pos_pb, attn_bias,
        pk["wqkv"], pk["bqkv"], pk["wo"], pk["bo"], pk["ln1g"], pk["ln1b"],
        pk["w1"], pk["b1"], pk["w2"], pk["b2"], pk["ln2g"], pk["ln2b"],
        pk["w_final"], pk["b_final"],
    )

    def full_spec(a):
        zeros = (0,) * a.ndim
        return pl.BlockSpec(a.shape, lambda i, _z=zeros: _z)

    kernel = functools.partial(
        _fused_forward_kernel, n_head=H, e_layers=E, batch=B, n_patch=N)

    # Single invocation: the whole (tiny) batch is folded into the sublane axis.
    # On v7x one would instead use grid=(2,) with B/2 elements per step so both
    # TensorCores stay busy; at B=2 the single-step form minimizes issue count.
    out = pl.pallas_call(
        kernel,
        grid=(1,),
        in_specs=[full_spec(x4)] + [full_spec(a) for a in weight_args],
        out_specs=pl.BlockSpec((B, 128), lambda i: (0, 0)),
        out_shape=jax.ShapeDtypeStruct((B, 128), jnp.float32),
        scratch_shapes=[
            pltpu.VMEM((BtS, D), jnp.float32),            # assembled input sequence
            pltpu.VMEM((H, BtS, D // H), jnp.bfloat16),   # q (head-split)
            pltpu.VMEM((H, BtS, D // H), jnp.bfloat16),   # k (head-split)
            pltpu.VMEM((H, BtS, D // H), jnp.bfloat16),   # v (head-split)
            pltpu.VMEM((BtS, D), jnp.bfloat16),           # merged attention context
        ],
        compiler_params=pltpu.CompilerParams(dimension_semantics=("arbitrary",)),
    )(x4, *weight_args)

    return out[:, :n_classes]                              # [B, n_classes]


if __name__ == "__main__":
    # config implied by Model.__init__:
    #   num_nodes (in_chans) C=4, freq (patch_size) P=4, input_len=8 -> L=32,
    #   d_model D=32, n_head=8, e_layers=2, task_name='classification'
    B, C, L = 2, 4, 32
    P, D, n_head, e_layers = 4, 32, 8, 2

    key = jax.random.PRNGKey(0)
    kparams, kx = jax.random.split(key)
    params = init_params(kparams, C=C, P=P, D=D, n_head=n_head, e_layers=e_layers)
    packed = pack_params(params)
    x = jax.random.normal(kx, (B, C, L), dtype=jnp.float32)

    fwd = jax.jit(lambda inp: ti_mae_classification_forward(inp, packed))
    out = fwd(x)
    jax.block_until_ready(out)
    assert out.shape == (B, 4), out.shape
    assert jnp.all(jnp.isfinite(out))
    print("KERNEL_OK")
</pallas_src>

<mosaic_0001>
module attributes {stable_mosaic.version = 11 : i64} {
  func.func @_fused_forward_kernel(%arg0: i32, %arg1: memref<2x4x8x4xf32, #tpu.memory_space<vmem>>, %arg2: memref<4x4x32xbf16, #tpu.memory_space<vmem>>, %arg3: memref<1x32xf32, #tpu.memory_space<vmem>>, %arg4: memref<8x32xf32, #tpu.memory_space<vmem>>, %arg5: memref<8x18x18xf32, #tpu.memory_space<vmem>>, %arg6: memref<2x32x96xbf16, #tpu.memory_space<vmem>>, %arg7: memref<2x1x96xf32, #tpu.memory_space<vmem>>, %arg8: memref<2x32x32xbf16, #tpu.memory_space<vmem>>, %arg9: memref<2x1x32xf32, #tpu.memory_space<vmem>>, %arg10: memref<2x1x32xf32, #tpu.memory_space<vmem>>, %arg11: memref<2x1x32xf32, #tpu.memory_space<vmem>>, %arg12: memref<2x32x128xbf16, #tpu.memory_space<vmem>>, %arg13: memref<2x1x128xf32, #tpu.memory_space<vmem>>, %arg14: memref<2x128x32xbf16, #tpu.memory_space<vmem>>, %arg15: memref<2x1x32xf32, #tpu.memory_space<vmem>>, %arg16: memref<2x1x32xf32, #tpu.memory_space<vmem>>, %arg17: memref<2x1x32xf32, #tpu.memory_space<vmem>>, %arg18: memref<32x128xbf16, #tpu.memory_space<vmem>>, %arg19: memref<1x128xf32, #tpu.memory_space<vmem>>, %arg20: memref<2x128xf32, #tpu.memory_space<vmem>>, %arg21: memref<18x32xf32, #tpu.memory_space<vmem>>, %arg22: memref<8x18x4xbf16, #tpu.memory_space<vmem>>, %arg23: memref<8x18x4xbf16, #tpu.memory_space<vmem>>, %arg24: memref<8x18x4xbf16, #tpu.memory_space<vmem>>, %arg25: memref<18x32xbf16, #tpu.memory_space<vmem>>) attributes {dimension_semantics = [#tpu.dimension_semantics<arbitrary>], iteration_bounds = array<i64: 1>, scalar_prefetch = 0 : i64, scratch_operands = 5 : i64, tpu.core_type = #tpu.core_type<tc>, window_params = [{pipeline_mode = #tpu.pipeline_mode<synchronous>, transform_indices = @transform_0, window_bounds = array<i64: 2, 4, 8, 4>}, {pipeline_mode = #tpu.pipeline_mode<synchronous>, transform_indices = @transform_1, window_bounds = array<i64: 4, 4, 32>}, {pipeline_mode = #tpu.pipeline_mode<synchronous>, transform_indices = @transform_2, window_bounds = array<i64: 1, 32>}, {pipeline_mode = #tpu.pipeline_mode<synchronous>, transform_indices = @transform_3, window_bounds = array<i64: 8, 32>}, {pipeline_mode = #tpu.pipeline_mode<synchronous>, transform_indices = @transform_4, window_bounds = array<i64: 8, 18, 18>}, {pipeline_mode = #tpu.pipeline_mode<synchronous>, transform_indices = @transform_5, window_bounds = array<i64: 2, 32, 96>}, {pipeline_mode = #tpu.pipeline_mode<synchronous>, transform_indices = @transform_6, window_bounds = array<i64: 2, 1, 96>}, {pipeline_mode = #tpu.pipeline_mode<synchronous>, transform_indices = @transform_7, window_bounds = array<i64: 2, 32, 32>}, {pipeline_mode = #tpu.pipeline_mode<synchronous>, transform_indices = @transform_8, window_bounds = array<i64: 2, 1, 32>}, {pipeline_mode = #tpu.pipeline_mode<synchronous>, transform_indices = @transform_9, window_bounds = array<i64: 2, 1, 32>}, {pipeline_mode = #tpu.pipeline_mode<synchronous>, transform_indices = @transform_10, window_bounds = array<i64: 2, 1, 32>}, {pipeline_mode = #tpu.pipeline_mode<synchronous>, transform_indices = @transform_11, window_bounds = array<i64: 2, 32, 128>}, {pipeline_mode = #tpu.pipeline_mode<synchronous>, transform_indices = @transform_12, window_bounds = array<i64: 2, 1, 128>}, {pipeline_mode = #tpu.pipeline_mode<synchronous>, transform_indices = @transform_13, window_bounds = array<i64: 2, 128, 32>}, {pipeline_mode = #tpu.pipeline_mode<synchronous>, transform_indices = @transform_14, window_bounds = array<i64: 2, 1, 32>}, {pipeline_mode = #tpu.pipeline_mode<synchronous>, transform_indices = @transform_15, window_bounds = array<i64: 2, 1, 32>}, {pipeline_mode = #tpu.pipeline_mode<synchronous>, transform_indices = @transform_16, window_bounds = array<i64: 2, 1, 32>}, {pipeline_mode = #tpu.pipeline_mode<synchronous>, transform_indices = @transform_17, window_bounds = array<i64: 32, 128>}, {pipeline_mode = #tpu.pipeline_mode<synchronous>, transform_indices = @transform_18, window_bounds = array<i64: 1, 128>}, {pipeline_mode = #tpu.pipeline_mode<synchronous>, transform_indices = @transform_19, window_bounds = array<i64: 2, 128>}]} {
    %c0 = arith.constant 0 : index
    %c0_0 = arith.constant 0 : index
    %c0_1 = arith.constant 0 : index
    %c0_2 = arith.constant 0 : index
    %0 = vector.load %arg1[%c0, %c0_0, %c0_1, %c0_2] : memref<2x4x8x4xf32, #tpu.memory_space<vmem>>, vector<1x1x8x4xf32>
    %1 = vector.shape_cast %0 : vector<1x1x8x4xf32> to vector<8x4xf32>
    %2 = arith.truncf %1 : vector<8x4xf32> to vector<8x4xbf16>
    %c0_3 = arith.constant 0 : index
    %c0_4 = arith.constant 0 : index
    %c0_5 = arith.constant 0 : index
    %3 = vector.load %arg2[%c0_3, %c0_4, %c0_5] : memref<4x4x32xbf16, #tpu.memory_space<vmem>>, vector<1x4x32xbf16>
    %4 = vector.shape_cast %3 : vector<1x4x32xbf16> to vector<4x32xbf16>
    %cst = arith.constant dense<0.000000e+00> : vector<8x32xf32>
    %5 = tpu.matmul %2, %4, %cst {dimension_numbers = #tpu.dot_dimension_numbers<[1], [0], [0], [1], [0, 0, 1, 1], [], []>} : vector<8x4xbf16>, vector<4x32xbf16>, vector<8x32xf32> -> vector<8x32xf32>
    %c0_6 = arith.constant 0 : index
    %c1 = arith.constant 1 : index
    %c0_7 = arith.constant 0 : index
    %c0_8 = arith.constant 0 : index
    %6 = vector.load %arg1[%c0_6, %c1, %c0_7, %c0_8] : memref<2x4x8x4xf32, #tpu.memory_space<vmem>>, vector<1x1x8x4xf32>
    %7 = vector.shape_cast %6 : vector<1x1x8x4xf32> to vector<8x4xf32>
    %8 = arith.truncf %7 : vector<8x4xf32> to vector<8x4xbf16>
    %c1_9 = arith.constant 1 : index
    %c0_10 = arith.constant 0 : index
    %c0_11 = arith.constant 0 : index
    %9 = vector.load %arg2[%c1_9, %c0_10, %c0_11] : memref<4x4x32xbf16, #tpu.memory_space<vmem>>, vector<1x4x32xbf16>
    %10 = vector.shape_cast %9 : vector<1x4x32xbf16> to vector<4x32xbf16>
    %cst_12 = arith.constant dense<0.000000e+00> : vector<8x32xf32>
    %11 = tpu.matmul %8, %10, %cst_12 {dimension_numbers = #tpu.dot_dimension_numbers<[1], [0], [0], [1], [0, 0, 1, 1], [], []>} : vector<8x4xbf16>, vector<4x32xbf16>, vector<8x32xf32> -> vector<8x32xf32>
    %12 = arith.addf %5, %11 : vector<8x32xf32>
    %c0_13 = arith.constant 0 : index
    %c2 = arith.constant 2 : index
    %c0_14 = arith.constant 0 : index
    %c0_15 = arith.constant 0 : index
    %13 = vector.load %arg1[%c0_13, %c2, %c0_14, %c0_15] : memref<2x4x8x4xf32, #tpu.memory_space<vmem>>, vector<1x1x8x4xf32>
    %14 = vector.shape_cast %13 : vector<1x1x8x4xf32> to vector<8x4xf32>
    %15 = arith.truncf %14 : vector<8x4xf32> to vector<8x4xbf16>
    %c2_16 = arith.constant 2 : index
    %c0_17 = arith.constant 0 : index
    %c0_18 = arith.constant 0 : index
    %16 = vector.load %arg2[%c2_16, %c0_17, %c0_18] : memref<4x4x32xbf16, #tpu.memory_space<vmem>>, vector<1x4x32xbf16>
    %17 = vector.shape_cast %16 : vector<1x4x32xbf16> to vector<4x32xbf16>
    %cst_19 = arith.constant dense<0.000000e+00> : vector<8x32xf32>
    %18 = tpu.matmul %15, %17, %cst_19 {dimension_numbers = #tpu.dot_dimension_numbers<[1], [0], [0], [1], [0, 0, 1, 1], [], []>} : vector<8x4xbf16>, vector<4x32xbf16>, vector<8x32xf32> -> vector<8x32xf32>
    %19 = arith.addf %12, %18 : vector<8x32xf32>
    %c0_20 = arith.constant 0 : index
    %c3 = arith.constant 3 : index
    %c0_21 = arith.constant 0 : index
    %c0_22 = arith.constant 0 : index
    %20 = vector.load %arg1[%c0_20, %c3, %c0_21, %c0_22] : memref<2x4x8x4xf32, #tpu.memory_space<vmem>>, vector<1x1x8x4xf32>
    %21 = vector.shape_cast %20 : vector<1x1x8x4xf32> to vector<8x4xf32>
    %22 = arith.truncf %21 : vector<8x4xf32> to vector<8x4xbf16>
    %c3_23 = arith.constant 3 : index
    %c0_24 = arith.constant 0 : index
    %c0_25 = arith.constant 0 : index
    %23 = vector.load %arg2[%c3_23, %c0_24, %c0_25] : memref<4x4x32xbf16, #tpu.memory_space<vmem>>, vector<1x4x32xbf16>
    %24 = vector.shape_cast %23 : vector<1x4x32xbf16> to vector<4x32xbf16>
    %cst_26 = arith.constant dense<0.000000e+00> : vector<8x32xf32>
    %25 = tpu.matmul %22, %24, %cst_26 {dimension_numbers = #tpu.dot_dimension_numbers<[1], [0], [0], [1], [0, 0, 1, 1], [], []>} : vector<8x4xbf16>, vector<4x32xbf16>, vector<8x32xf32> -> vector<8x32xf32>
    %26 = arith.addf %19, %25 : vector<8x32xf32>
    %c0_27 = arith.constant 0 : index
    %c0_28 = arith.constant 0 : index
    %27 = vector.load %arg3[%c0_27, %c0_28] : memref<1x32xf32, #tpu.memory_space<vmem>>, vector<1x32xf32>
    %c0_29 = arith.constant 0 : index
    %c0_30 = arith.constant 0 : index
    %28 = vector.load %arg21[%c0_29, %c0_30] : memref<18x32xf32, #tpu.memory_space<vmem>>, vector<1x32xf32>
    tpu.vector_store %arg21[%c0_29, %c0_30], %27 {strides = array<i32>} : memref<18x32xf32, #tpu.memory_space<vmem>>, vector<1x32xf32>,
    %c0_31 = arith.constant 0 : index
    %c0_32 = arith.constant 0 : index
    %29 = vector.load %arg4[%c0_31, %c0_32] : memref<8x32xf32, #tpu.memory_space<vmem>>, vector<8x32xf32>
    %30 = arith.addf %26, %29 : vector<8x32xf32>
    %c1_33 = arith.constant 1 : index
    %c0_34 = arith.constant 0 : index
    %31 = vector.load %arg21[%c1_33, %c0_34] : memref<18x32xf32, #tpu.memory_space<vmem>>, vector<8x32xf32>
    tpu.vector_store %arg21[%c1_33, %c0_34], %30 {strides = array<i32>} : memref<18x32xf32, #tpu.memory_space<vmem>>, vector<8x32xf32>,
    %c1_35 = arith.constant 1 : index
    %c0_36 = arith.constant 0 : index
    %c0_37 = arith.constant 0 : index
    %c0_38 = arith.constant 0 : index
    %32 = vector.load %arg1[%c1_35, %c0_36, %c0_37, %c0_38] : memref<2x4x8x4xf32, #tpu.memory_space<vmem>>, vector<1x1x8x4xf32>
    %33 = vector.shape_cast %32 : vector<1x1x8x4xf32> to vector<8x4xf32>
    %34 = arith.truncf %33 : vector<8x4xf32> to vector<8x4xbf16>
    %c0_39 = arith.constant 0 : index
    %c0_40 = arith.constant 0 : index
    %c0_41 = arith.constant 0 : index
    %35 = vector.load %arg2[%c0_39, %c0_40, %c0_41] : memref<4x4x32xbf16, #tpu.memory_space<vmem>>, vector<1x4x32xbf16>
    %36 = vector.shape_cast %35 : vector<1x4x32xbf16> to vector<4x32xbf16>
    %cst_42 = arith.constant dense<0.000000e+00> : vector<8x32xf32>
    %37 = tpu.matmul %34, %36, %cst_42 {dimension_numbers = #tpu.dot_dimension_numbers<[1], [0], [0], [1], [0, 0, 1, 1], [], []>} : vector<8x4xbf16>, vector<4x32xbf16>, vector<8x32xf32> -> vector<8x32xf32>
    %c1_43 = arith.constant 1 : index
    %c1_44 = arith.constant 1 : index
    %c0_45 = arith.constant 0 : index
    %c0_46 = arith.constant 0 : index
    %38 = vector.load %arg1[%c1_43, %c1_44, %c0_45, %c0_46] : memref<2x4x8x4xf32, #tpu.memory_space<vmem>>, vector<1x1x8x4xf32>
    %39 = vector.shape_cast %38 : vector<1x1x8x4xf32> to vector<8x4xf32>
    %40 = arith.truncf %39 : vector<8x4xf32> to vector<8x4xbf16>
    %c1_47 = arith.constant 1 : index
    %c0_48 = arith.constant 0 : index
    %c0_49 = arith.constant 0 : index
    %41 = vector.load %arg2[%c1_47, %c0_48, %c0_49] : memref<4x4x32xbf16, #tpu.memory_space<vmem>>, vector<1x4x32xbf16>
    %42 = vector.shape_cast %41 : vector<1x4x32xbf16> to vector<4x32xbf16>
    %cst_50 = arith.constant dense<0.000000e+00> : vector<8x32xf32>
    %43 = tpu.matmul %40, %42, %cst_50 {dimension_numbers = #tpu.dot_dimension_numbers<[1], [0], [0], [1], [0, 0, 1, 1], [], []>} : vector<8x4xbf16>, vector<4x32xbf16>, vector<8x32xf32> -> vector<8x32xf32>
    %44 = arith.addf %37, %43 : vector<8x32xf32>
    %c1_51 = arith.constant 1 : index
    %c2_52 = arith.constant 2 : index
    %c0_53 = arith.constant 0 : index
    %c0_54 = arith.constant 0 : index
    %45 = vector.load %arg1[%c1_51, %c2_52, %c0_53, %c0_54] : memref<2x4x8x4xf32, #tpu.memory_space<vmem>>, vector<1x1x8x4xf32>
    %46 = vector.shape_cast %45 : vector<1x1x8x4xf32> to vector<8x4xf32>
    %47 = arith.truncf %46 : vector<8x4xf32> to vector<8x4xbf16>
    %c2_55 = arith.constant 2 : index
    %c0_56 = arith.constant 0 : index
    %c0_57 = arith.constant 0 : index
    %48 = vector.load %arg2[%c2_55, %c0_56, %c0_57] : memref<4x4x32xbf16, #tpu.memory_space<vmem>>, vector<1x4x32xbf16>
    %49 = vector.shape_cast %48 : vector<1x4x32xbf16> to vector<4x32xbf16>
    %cst_58 = arith.constant dense<0.000000e+00> : vector<8x32xf32>
    %50 = tpu.matmul %47, %49, %cst_58 {dimension_numbers = #tpu.dot_dimension_numbers<[1], [0], [0], [1], [0, 0, 1, 1], [], []>} : vector<8x4xbf16>, vector<4x32xbf16>, vector<8x32xf32> -> vector<8x32xf32>
    %51 = arith.addf %44, %50 : vector<8x32xf32>
    %c1_59 = arith.constant 1 : index
    %c3_60 = arith.constant 3 : index
    %c0_61 = arith.constant 0 : index
    %c0_62 = arith.constant 0 : index
    %52 = vector.load %arg1[%c1_59, %c3_60, %c0_61, %c0_62] : memref<2x4x8x4xf32, #tpu.memory_space<vmem>>, vector<1x1x8x4xf32>
    %53 = vector.shape_cast %52 : vector<1x1x8x4xf32> to vector<8x4xf32>
    %54 = arith.truncf %53 : vector<8x4xf32> to vector<8x4xbf16>
    %c3_63 = arith.constant 3 : index
    %c0_64 = arith.constant 0 : index
    %c0_65 = arith.constant 0 : index
    %55 = vector.load %arg2[%c3_63, %c0_64, %c0_65] : memref<4x4x32xbf16, #tpu.memory_space<vmem>>, vector<1x4x32xbf16>
    %56 = vector.shape_cast %55 : vector<1x4x32xbf16> to vector<4x32xbf16>
    %cst_66 = arith.constant dense<0.000000e+00> : vector<8x32xf32>
    %57 = tpu.matmul %54, %56, %cst_66 {dimension_numbers = #tpu.dot_dimension_numbers<[1], [0], [0], [1], [0, 0, 1, 1], [], []>} : vector<8x4xbf16>, vector<4x32xbf16>, vector<8x32xf32> -> vector<8x32xf32>
    %58 = arith.addf %51, %57 : vector<8x32xf32>
    %c0_67 = arith.constant 0 : index
    %c0_68 = arith.constant 0 : index
    %59 = vector.load %arg3[%c0_67, %c0_68] : memref<1x32xf32, #tpu.memory_space<vmem>>, vector<1x32xf32>
    %c9 = arith.constant 9 : index
    %c0_69 = arith.constant 0 : index
    %60 = vector.load %arg21[%c9, %c0_69] : memref<18x32xf32, #tpu.memory_space<vmem>>, vector<1x32xf32>
    tpu.vector_store %arg21[%c9, %c0_69], %59 {strides = array<i32>} : memref<18x32xf32, #tpu.memory_space<vmem>>, vector<1x32xf32>,
    %c0_70 = arith.constant 0 : index
    %c0_71 = arith.constant 0 : index
    %61 = vector.load %arg4[%c0_70, %c0_71] : memref<8x32xf32, #tpu.memory_space<vmem>>, vector<8x32xf32>
    %62 = arith.addf %58, %61 : vector<8x32xf32>
    %c10 = arith.constant 10 : index
    %c0_72 = arith.constant 0 : index
    %63 = vector.load %arg21[%c10, %c0_72] : memref<18x32xf32, #tpu.memory_space<vmem>>, vector<8x32xf32>
    tpu.vector_store %arg21[%c10, %c0_72], %62 {strides = array<i32>} : memref<18x32xf32, #tpu.memory_space<vmem>>, vector<8x32xf32>,
    %c0_73 = arith.constant 0 : index
    %c0_74 = arith.constant 0 : index
    %64 = vector.load %arg21[%c0_73, %c0_74] : memref<18x32xf32, #tpu.memory_space<vmem>>, vector<18x32xf32>
    %c0_75 = arith.constant 0 : index
    %c0_76 = arith.constant 0 : index
    %c0_77 = arith.constant 0 : index
    %65 = vector.load %arg5[%c0_75, %c0_76, %c0_77] : memref<8x18x18xf32, #tpu.memory_space<vmem>>, vector<8x18x18xf32>
    %66 = arith.truncf %64 : vector<18x32xf32> to vector<18x32xbf16>
    %c0_78 = arith.constant 0 : index
    %c0_79 = arith.constant 0 : index
    %c0_80 = arith.constant 0 : index
    %67 = vector.load %arg6[%c0_78, %c0_79, %c0_80] : memref<2x32x96xbf16, #tpu.memory_space<vmem>>, vector<1x32x96xbf16>
    %68 = vector.shape_cast %67 : vector<1x32x96xbf16> to vector<32x96xbf16>
    %cst_81 = arith.constant dense<0.000000e+00> : vector<18x96xf32>
    %69 = tpu.matmul %66, %68, %cst_81 {dimension_numbers = #tpu.dot_dimension_numbers<[1], [0], [0], [1], [0, 0, 1, 1], [], []>} : vector<18x32xbf16>, vector<32x96xbf16>, vector<18x96xf32> -> vector<18x96xf32>
    %c0_82 = arith.constant 0 : index
    %c0_83 = arith.constant 0 : index
    %c0_84 = arith.constant 0 : index
    %70 = vector.load %arg7[%c0_82, %c0_83, %c0_84] : memref<2x1x96xf32, #tpu.memory_space<vmem>>, vector<1x1x96xf32>
    %71 = vector.shape_cast %70 : vector<1x1x96xf32> to vector<1x96xf32>
    %72 = vector.broadcast %71 : vector<1x96xf32> to vector<18x96xf32>
    %73 = arith.addf %69, %72 : vector<18x96xf32>
    %74 = vector.extract_strided_slice %73 {offsets = [0, 0], sizes = [18, 4], strides = [1, 1]} : vector<18x96xf32> to vector<18x4xf32>
    %75 = arith.truncf %74 : vector<18x4xf32> to vector<18x4xbf16>
    %c0_85 = arith.constant 0 : index
    %c0_86 = arith.constant 0 : index
    %c0_87 = arith.constant 0 : index
    %76 = vector.load %arg22[%c0_85, %c0_86, %c0_87] : memref<8x18x4xbf16, #tpu.memory_space<vmem>>, vector<1x18x4xbf16>
    %77 = vector.shape_cast %76 : vector<1x18x4xbf16> to vector<18x4xbf16>
    %78 = vector.shape_cast %75 : vector<18x4xbf16> to vector<1x18x4xbf16>
    tpu.vector_store %arg22[%c0_85, %c0_86, %c0_87], %78 {strides = array<i32>} : memref<8x18x4xbf16, #tpu.memory_space<vmem>>, vector<1x18x4xbf16>,
    %79 = vector.extract_strided_slice %73 {offsets = [0, 32], sizes = [18, 4], strides = [1, 1]} : vector<18x96xf32> to vector<18x4xf32>
    %80 = arith.truncf %79 : vector<18x4xf32> to vector<18x4xbf16>
    %c0_88 = arith.constant 0 : index
    %c0_89 = arith.constant 0 : index
    %c0_90 = arith.constant 0 : index
    %81 = vector.load %arg23[%c0_88, %c0_89, %c0_90] : memref<8x18x4xbf16, #tpu.memory_space<vmem>>, vector<1x18x4xbf16>
    %82 = vector.shape_cast %81 : vector<1x18x4xbf16> to vector<18x4xbf16>
    %83 = vector.shape_cast %80 : vector<18x4xbf16> to vector<1x18x4xbf16>
    tpu.vector_store %arg23[%c0_88, %c0_89, %c0_90], %83 {strides = array<i32>} : memref<8x18x4xbf16, #tpu.memory_space<vmem>>, vector<1x18x4xbf16>,
    %84 = vector.extract_strided_slice %73 {offsets = [0, 64], sizes = [18, 4], strides = [1, 1]} : vector<18x96xf32> to vector<18x4xf32>
    %85 = arith.truncf %84 : vector<18x4xf32> to vector<18x4xbf16>
    %c0_91 = arith.constant 0 : index
    %c0_92 = arith.constant 0 : index
    %c0_93 = arith.constant 0 : index
    %86 = vector.load %arg24[%c0_91, %c0_92, %c0_93] : memref<8x18x4xbf16, #tpu.memory_space<vmem>>, vector<1x18x4xbf16>
    %87 = vector.shape_cast %86 : vector<1x18x4xbf16> to vector<18x4xbf16>
    %88 = vector.shape_cast %85 : vector<18x4xbf16> to vector<1x18x4xbf16>
    tpu.vector_store %arg24[%c0_91, %c0_92, %c0_93], %88 {strides = array<i32>} : memref<8x18x4xbf16, #tpu.memory_space<vmem>>, vector<1x18x4xbf16>,
    %89 = vector.extract_strided_slice %73 {offsets = [0, 4], sizes = [18, 4], strides = [1, 1]} : vector<18x96xf32> to vector<18x4xf32>
    %90 = arith.truncf %89 : vector<18x4xf32> to vector<18x4xbf16>
    %c1_94 = arith.constant 1 : index
    %c0_95 = arith.constant 0 : index
    %c0_96 = arith.constant 0 : index
    %91 = vector.load %arg22[%c1_94, %c0_95, %c0_96] : memref<8x18x4xbf16, #tpu.memory_space<vmem>>, vector<1x18x4xbf16>
    %92 = vector.shape_cast %91 : vector<1x18x4xbf16> to vector<18x4xbf16>
    %93 = vector.shape_cast %90 : vector<18x4xbf16> to vector<1x18x4xbf16>
    tpu.vector_store %arg22[%c1_94, %c0_95, %c0_96], %93 {strides = array<i32>} : memref<8x18x4xbf16, #tpu.memory_space<vmem>>, vector<1x18x4xbf16>,
    %94 = vector.extract_strided_slice %73 {offsets = [0, 36], sizes = [18, 4], strides = [1, 1]} : vector<18x96xf32> to vector<18x4xf32>
    %95 = arith.truncf %94 : vector<18x4xf32> to vector<18x4xbf16>
    %c1_97 = arith.constant 1 : index
    %c0_98 = arith.constant 0 : index
    %c0_99 = arith.constant 0 : index
    %96 = vector.load %arg23[%c1_97, %c0_98, %c0_99] : memref<8x18x4xbf16, #tpu.memory_space<vmem>>, vector<1x18x4xbf16>
    %97 = vector.shape_cast %96 : vector<1x18x4xbf16> to vector<18x4xbf16>
    %98 = vector.shape_cast %95 : vector<18x4xbf16> to vector<1x18x4xbf16>
    tpu.vector_store %arg23[%c1_97, %c0_98, %c0_99], %98 {strides = array<i32>} : memref<8x18x4xbf16, #tpu.memory_space<vmem>>, vector<1x18x4xbf16>,
    %99 = vector.extract_strided_slice %73 {offsets = [0, 68], sizes = [18, 4], strides = [1, 1]} : vector<18x96xf32> to vector<18x4xf32>
    %100 = arith.truncf %99 : vector<18x4xf32> to vector<18x4xbf16>
    %c1_100 = arith.constant 1 : index
    %c0_101 = arith.constant 0 : index
    %c0_102 = arith.constant 0 : index
    %101 = vector.load %arg24[%c1_100, %c0_101, %c0_102] : memref<8x18x4xbf16, #tpu.memory_space<vmem>>, vector<1x18x4xbf16>
    %102 = vector.shape_cast %101 : vector<1x18x4xbf16> to vector<18x4xbf16>
    %103 = vector.shape_cast %100 : vector<18x4xbf16> to vector<1x18x4xbf16>
    tpu.vector_store %arg24[%c1_100, %c0_101, %c0_102], %103 {strides = array<i32>} : memref<8x18x4xbf16, #tpu.memory_space<vmem>>, vector<1x18x4xbf16>,
    %104 = vector.extract_strided_slice %73 {offsets = [0, 8], sizes = [18, 4], strides = [1, 1]} : vector<18x96xf32> to vector<18x4xf32>
    %105 = arith.truncf %104 : vector<18x4xf32> to vector<18x4xbf16>
    %c2_103 = arith.constant 2 : index
    %c0_104 = arith.constant 0 : index
    %c0_105 = arith.constant 0 : index
    %106 = vector.load %arg22[%c2_103, %c0_104, %c0_105] : memref<8x18x4xbf16, #tpu.memory_space<vmem>>, vector<1x18x4xbf16>
    %107 = vector.shape_cast %106 : vector<1x18x4xbf16> to vector<18x4xbf16>
    %108 = vector.shape_cast %105 : vector<18x4xbf16> to vector<1x18x4xbf16>
    tpu.vector_store %arg22[%c2_103, %c0_104, %c0_105], %108 {strides = array<i32>} : memref<8x18x4xbf16, #tpu.memory_space<vmem>>, vector<1x18x4xbf16>,
    %109 = vector.extract_strided_slice %73 {offsets = [0, 40], sizes = [18, 4], strides = [1, 1]} : vector<18x96xf32> to vector<18x4xf32>
    %110 = arith.truncf %109 : vector<18x4xf32> to vector<18x4xbf16>
    %c2_106 = arith.constant 2 : index
    %c0_107 = arith.constant 0 : index
    %c0_108 = arith.constant 0 : index
    %111 = vector.load %arg23[%c2_106, %c0_107, %c0_108] : memref<8x18x4xbf16, #tpu.memory_space<vmem>>, vector<1x18x4xbf16>
    %112 = vector.shape_cast %111 : vector<1x18x4xbf16> to vector<18x4xbf16>
    %113 = vector.shape_cast %110 : vector<18x4xbf16> to vector<1x18x4xbf16>
    tpu.vector_store %arg23[%c2_106, %c0_107, %c0_108], %113 {strides = array<i32>} : memref<8x18x4xbf16, #tpu.memory_space<vmem>>, vector<1x18x4xbf16>,
    %114 = vector.extract_strided_slice %73 {offsets = [0, 72], sizes = [18, 4], strides = [1, 1]} : vector<18x96xf32> to vector<18x4xf32>
    %115 = arith.truncf %114 : vector<18x4xf32> to vector<18x4xbf16>
    %c2_109 = arith.constant 2 : index
    %c0_110 = arith.constant 0 : index
    %c0_111 = arith.constant 0 : index
    %116 = vector.load %arg24[%c2_109, %c0_110, %c0_111] : memref<8x18x4xbf16, #tpu.memory_space<vmem>>, vector<1x18x4xbf16>
    %117 = vector.shape_cast %116 : vector<1x18x4xbf16> to vector<18x4xbf16>
    %118 = vector.shape_cast %115 : vector<18x4xbf16> to vector<1x18x4xbf16>
    tpu.vector_store %arg24[%c2_109, %c0_110, %c0_111], %118 {strides = array<i32>} : memref<8x18x4xbf16, #tpu.memory_space<vmem>>, vector<1x18x4xbf16>,
    %119 = vector.extract_strided_slice %73 {offsets = [0, 12], sizes = [18, 4], strides = [1, 1]} : vector<18x96xf32> to vector<18x4xf32>
    %120 = arith.truncf %119 : vector<18x4xf32> to vector<18x4xbf16>
    %c3_112 = arith.constant 3 : index
    %c0_113 = arith.constant 0 : index
    %c0_114 = arith.constant 0 : index
    %121 = vector.load %arg22[%c3_112, %c0_113, %c0_114] : memref<8x18x4xbf16, #tpu.memory_space<vmem>>, vector<1x18x4xbf16>
    %122 = vector.shape_cast %121 : vector<1x18x4xbf16> to vector<18x4xbf16>
    %123 = vector.shape_cast %120 : vector<18x4xbf16> to vector<1x18x4xbf16>
    tpu.vector_store %arg22[%c3_112, %c0_113, %c0_114], %123 {strides = array<i32>} : memref<8x18x4xbf16, #tpu.memory_space<vmem>>, vector<1x18x4xbf16>,
    %124 = vector.extract_strided_slice %73 {offsets = [0, 44], sizes = [18, 4], strides = [1, 1]} : vector<18x96xf32> to vector<18x4xf32>
    %125 = arith.truncf %124 : vector<18x4xf32> to vector<18x4xbf16>
    %c3_115 = arith.constant 3 : index
    %c0_116 = arith.constant 0 : index
    %c0_117 = arith.constant 0 : index
    %126 = vector.load %arg23[%c3_115, %c0_116, %c0_117] : memref<8x18x4xbf16, #tpu.memory_space<vmem>>, vector<1x18x4xbf16>
    %127 = vector.shape_cast %126 : vector<1x18x4xbf16> to vector<18x4xbf16>
    %128 = vector.shape_cast %125 : vector<18x4xbf16> to vector<1x18x4xbf16>
    tpu.vector_store %arg23[%c3_115, %c0_116, %c0_117], %128 {strides = array<i32>} : memref<8x18x4xbf16, #tpu.memory_space<vmem>>, vector<1x18x4xbf16>,
    %129 = vector.extract_strided_slice %73 {offsets = [0, 76], sizes = [18, 4], strides = [1, 1]} : vector<18x96xf32> to vector<18x4xf32>
    %130 = arith.truncf %129 : vector<18x4xf32> to vector<18x4xbf16>
    %c3_118 = arith.constant 3 : index
    %c0_119 = arith.constant 0 : index
    %c0_120 = arith.constant 0 : index
    %131 = vector.load %arg24[%c3_118, %c0_119, %c0_120] : memref<8x18x4xbf16, #tpu.memory_space<vmem>>, vector<1x18x4xbf16>
    %132 = vector.shape_cast %131 : vector<1x18x4xbf16> to vector<18x4xbf16>
    %133 = vector.shape_cast %130 : vector<18x4xbf16> to vector<1x18x4xbf16>
    tpu.vector_store %arg24[%c3_118, %c0_119, %c0_120], %133 {strides = array<i32>} : memref<8x18x4xbf16, #tpu.memory_space<vmem>>, vector<1x18x4xbf16>,
    %134 = vector.extract_strided_slice %73 {offsets = [0, 16], sizes = [18, 4], strides = [1, 1]} : vector<18x96xf32> to vector<18x4xf32>
    %135 = arith.truncf %134 : vector<18x4xf32> to vector<18x4xbf16>
    %c4 = arith.constant 4 : index
    %c0_121 = arith.constant 0 : index
    %c0_122 = arith.constant 0 : index
    %136 = vector.load %arg22[%c4, %c0_121, %c0_122] : memref<8x18x4xbf16, #tpu.memory_space<vmem>>, vector<1x18x4xbf16>
    %137 = vector.shape_cast %136 : vector<1x18x4xbf16> to vector<18x4xbf16>
    %138 = vector.shape_cast %135 : vector<18x4xbf16> to vector<1x18x4xbf16>
    tpu.vector_store %arg22[%c4, %c0_121, %c0_122], %138 {strides = array<i32>} : memref<8x18x4xbf16, #tpu.memory_space<vmem>>, vector<1x18x4xbf16>,
    %139 = vector.extract_strided_slice %73 {offsets = [0, 48], sizes = [18, 4], strides = [1, 1]} : vector<18x96xf32> to vector<18x4xf32>
    %140 = arith.truncf %139 : vector<18x4xf32> to vector<18x4xbf16>
    %c4_123 = arith.constant 4 : index
    %c0_124 = arith.constant 0 : index
    %c0_125 = arith.constant 0 : index
    %141 = vector.load %arg23[%c4_123, %c0_124, %c0_125] : memref<8x18x4xbf16, #tpu.memory_space<vmem>>, vector<1x18x4xbf16>
    %142 = vector.shape_cast %141 : vector<1x18x4xbf16> to vector<18x4xbf16>
    %143 = vector.shape_cast %140 : vector<18x4xbf16> to vector<1x18x4xbf16>
    tpu.vector_store %arg23[%c4_123, %c0_124, %c0_125], %143 {strides = array<i32>} : memref<8x18x4xbf16, #tpu.memory_space<vmem>>, vector<1x18x4xbf16>,
    %144 = vector.extract_strided_slice %73 {offsets = [0, 80], sizes = [18, 4], strides = [1, 1]} : vector<18x96xf32> to vector<18x4xf32>
    %145 = arith.truncf %144 : vector<18x4xf32> to vector<18x4xbf16>
    %c4_126 = arith.constant 4 : index
    %c0_127 = arith.constant 0 : index
    %c0_128 = arith.constant 0 : index
    %146 = vector.load %arg24[%c4_126, %c0_127, %c0_128] : memref<8x18x4xbf16, #tpu.memory_space<vmem>>, vector<1x18x4xbf16>
    %147 = vector.shape_cast %146 : vector<1x18x4xbf16> to vector<18x4xbf16>
    %148 = vector.shape_cast %145 : vector<18x4xbf16> to vector<1x18x4xbf16>
    tpu.vector_store %arg24[%c4_126, %c0_127, %c0_128], %148 {strides = array<i32>} : memref<8x18x4xbf16, #tpu.memory_space<vmem>>, vector<1x18x4xbf16>,
    %149 = vector.extract_strided_slice %73 {offsets = [0, 20], sizes = [18, 4], strides = [1, 1]} : vector<18x96xf32> to vector<18x4xf32>
    %150 = arith.truncf %149 : vector<18x4xf32> to vector<18x4xbf16>
    %c5 = arith.constant 5 : index
    %c0_129 = arith.constant 0 : index
    %c0_130 = arith.constant 0 : index
    %151 = vector.load %arg22[%c5, %c0_129, %c0_130] : memref<8x18x4xbf16, #tpu.memory_space<vmem>>, vector<1x18x4xbf16>
    %152 = vector.shape_cast %151 : vector<1x18x4xbf16> to vector<18x4xbf16>
    %153 = vector.shape_cast %150 : vector<18x4xbf16> to vector<1x18x4xbf16>
    tpu.vector_store %arg22[%c5, %c0_129, %c0_130], %153 {strides = array<i32>} : memref<8x18x4xbf16, #tpu.memory_space<vmem>>, vector<1x18x4xbf16>,
    %154 = vector.extract_strided_slice %73 {offsets = [0, 52], sizes = [18, 4], strides = [1, 1]} : vector<18x96xf32> to vector<18x4xf32>
    %155 = arith.truncf %154 : vector<18x4xf32> to vector<18x4xbf16>
    %c5_131 = arith.constant 5 : index
    %c0_132 = arith.constant 0 : index
    %c0_133 = arith.constant 0 : index
    %156 = vector.load %arg23[%c5_131, %c0_132, %c0_133] : memref<8x18x4xbf16, #tpu.memory_space<vmem>>, vector<1x18x4xbf16>
    %157 = vector.shape_cast %156 : vector<1x18x4xbf16> to vector<18x4xbf16>
    %158 = vector.shape_cast %155 : vector<18x4xbf16> to vector<1x18x4xbf16>
    tpu.vector_store %arg23[%c5_131, %c0_132, %c0_133], %158 {strides = array<i32>} : memref<8x18x4xbf16, #tpu.memory_space<vmem>>, vector<1x18x4xbf16>,
    %159 = vector.extract_strided_slice %73 {offsets = [0, 84], sizes = [18, 4], strides = [1, 1]} : vector<18x96xf32> to vector<18x4xf32>
    %160 = arith.truncf %159 : vector<18x4xf32> to vector<18x4xbf16>
    %c5_134 = arith.constant 5 : index
    %c0_135 = arith.constant 0 : index
    %c0_136 = arith.constant 0 : index
    %161 = vector.load %arg24[%c5_134, %c0_135, %c0_136] : memref<8x18x4xbf16, #tpu.memory_space<vmem>>, vector<1x18x4xbf16>
    %162 = vector.shape_cast %161 : vector<1x18x4xbf16> to vector<18x4xbf16>
    %163 = vector.shape_cast %160 : vector<18x4xbf16> to vector<1x18x4xbf16>
    tpu.vector_store %arg24[%c5_134, %c0_135, %c0_136], %163 {strides = array<i32>} : memref<8x18x4xbf16, #tpu.memory_space<vmem>>, vector<1x18x4xbf16>,
    %164 = vector.extract_strided_slice %73 {offsets = [0, 24], sizes = [18, 4], strides = [1, 1]} : vector<18x96xf32> to vector<18x4xf32>
    %165 = arith.truncf %164 : vector<18x4xf32> to vector<18x4xbf16>
    %c6 = arith.constant 6 : index
    %c0_137 = arith.constant 0 : index
    %c0_138 = arith.constant 0 : index
    %166 = vector.load %arg22[%c6, %c0_137, %c0_138] : memref<8x18x4xbf16, #tpu.memory_space<vmem>>, vector<1x18x4xbf16>
    %167 = vector.shape_cast %166 : vector<1x18x4xbf16> to vector<18x4xbf16>
    %168 = vector.shape_cast %165 : vector<18x4xbf16> to vector<1x18x4xbf16>
    tpu.vector_store %arg22[%c6, %c0_137, %c0_138], %168 {strides = array<i32>} : memref<8x18x4xbf16, #tpu.memory_space<vmem>>, vector<1x18x4xbf16>,
    %169 = vector.extract_strided_slice %73 {offsets = [0, 56], sizes = [18, 4], strides = [1, 1]} : vector<18x96xf32> to vector<18x4xf32>
    %170 = arith.truncf %169 : vector<18x4xf32> to vector<18x4xbf16>
    %c6_139 = arith.constant 6 : index
    %c0_140 = arith.constant 0 : index
    %c0_141 = arith.constant 0 : index
    %171 = vector.load %arg23[%c6_139, %c0_140, %c0_141] : memref<8x18x4xbf16, #tpu.memory_space<vmem>>, vector<1x18x4xbf16>
    %172 = vector.shape_cast %171 : vector<1x18x4xbf16> to vector<18x4xbf16>
    %173 = vector.shape_cast %170 : vector<18x4xbf16> to vector<1x18x4xbf16>
    tpu.vector_store %arg23[%c6_139, %c0_140, %c0_141], %173 {strides = array<i32>} : memref<8x18x4xbf16, #tpu.memory_space<vmem>>, vector<1x18x4xbf16>,
    %174 = vector.extract_strided_slice %73 {offsets = [0, 88], sizes = [18, 4], strides = [1, 1]} : vector<18x96xf32> to vector<18x4xf32>
    %175 = arith.truncf %174 : vector<18x4xf32> to vector<18x4xbf16>
    %c6_142 = arith.constant 6 : index
    %c0_143 = arith.constant 0 : index
    %c0_144 = arith.constant 0 : index
    %176 = vector.load %arg24[%c6_142, %c0_143, %c0_144] : memref<8x18x4xbf16, #tpu.memory_space<vmem>>, vector<1x18x4xbf16>
    %177 = vector.shape_cast %176 : vector<1x18x4xbf16> to vector<18x4xbf16>
    %178 = vector.shape_cast %175 : vector<18x4xbf16> to vector<1x18x4xbf16>
    tpu.vector_store %arg24[%c6_142, %c0_143, %c0_144], %178 {strides = array<i32>} : memref<8x18x4xbf16, #tpu.memory_space<vmem>>, vector<1x18x4xbf16>,
    %179 = vector.extract_strided_slice %73 {offsets = [0, 28], sizes = [18, 4], strides = [1, 1]} : vector<18x96xf32> to vector<18x4xf32>
    %180 = arith.truncf %179 : vector<18x4xf32> to vector<18x4xbf16>
    %c7 = arith.constant 7 : index
    %c0_145 = arith.constant 0 : index
    %c0_146 = arith.constant 0 : index
    %181 = vector.load %arg22[%c7, %c0_145, %c0_146] : memref<8x18x4xbf16, #tpu.memory_space<vmem>>, vector<1x18x4xbf16>
    %182 = vector.shape_cast %181 : vector<1x18x4xbf16> to vector<18x4xbf16>
    %183 = vector.shape_cast %180 : vector<18x4xbf16> to vector<1x18x4xbf16>
    tpu.vector_store %arg22[%c7, %c0_145, %c0_146], %183 {strides = array<i32>} : memref<8x18x4xbf16, #tpu.memory_space<vmem>>, vector<1x18x4xbf16>,
    %184 = vector.extract_strided_slice %73 {offsets = [0, 60], sizes = [18, 4], strides = [1, 1]} : vector<18x96xf32> to vector<18x4xf32>
    %185 = arith.truncf %184 : vector<18x4xf32> to vector<18x4xbf16>
    %c7_147 = arith.constant 7 : index
    %c0_148 = arith.constant 0 : index
    %c0_149 = arith.constant 0 : index
    %186 = vector.load %arg23[%c7_147, %c0_148, %c0_149] : memref<8x18x4xbf16, #tpu.memory_space<vmem>>, vector<1x18x4xbf16>
    %187 = vector.shape_cast %186 : vector<1x18x4xbf16> to vector<18x4xbf16>
    %188 = vector.shape_cast %185 : vector<18x4xbf16> to vector<1x18x4xbf16>
    tpu.vector_store %arg23[%c7_147, %c0_148, %c0_149], %188 {strides = array<i32>} : memref<8x18x4xbf16, #tpu.memory_space<vmem>>, vector<1x18x4xbf16>,
    %189 = vector.extract_strided_slice %73 {offsets = [0, 92], sizes = [18, 4], strides = [1, 1]} : vector<18x96xf32> to vector<18x4xf32>
    %190 = arith.truncf %189 : vector<18x4xf32> to vector<18x4xbf16>
    %c7_150 = arith.constant 7 : index
    %c0_151 = arith.constant 0 : index
    %c0_152 = arith.constant 0 : index
    %191 = vector.load %arg24[%c7_150, %c0_151, %c0_152] : memref<8x18x4xbf16, #tpu.memory_space<vmem>>, vector<1x18x4xbf16>
    %192 = vector.shape_cast %191 : vector<1x18x4xbf16> to vector<18x4xbf16>
    %193 = vector.shape_cast %190 : vector<18x4xbf16> to vector<1x18x4xbf16>
    tpu.vector_store %arg24[%c7_150, %c0_151, %c0_152], %193 {strides = array<i32>} : memref<8x18x4xbf16, #tpu.memory_space<vmem>>, vector<1x18x4xbf16>,
    %c0_153 = arith.constant 0 : index
    %c0_154 = arith.constant 0 : index
    %c0_155 = arith.constant 0 : index
    %194 = vector.load %arg22[%c0_153, %c0_154, %c0_155] : memref<8x18x4xbf16, #tpu.memory_space<vmem>>, vector<8x18x4xbf16>
    %c0_156 = arith.constant 0 : index
    %c0_157 = arith.constant 0 : index
    %c0_158 = arith.constant 0 : index
    %195 = vector.load %arg23[%c0_156, %c0_157, %c0_158] : memref<8x18x4xbf16, #tpu.memory_space<vmem>>, vector<8x18x4xbf16>
    %c0_159 = arith.constant 0 : index
    %c0_160 = arith.constant 0 : index
    %c0_161 = arith.constant 0 : index
    %196 = vector.load %arg24[%c0_159, %c0_160, %c0_161] : memref<8x18x4xbf16, #tpu.memory_space<vmem>>, vector<8x18x4xbf16>
    %cst_162 = arith.constant dense<0.000000e+00> : vector<8x18x18xf32>
    %197 = tpu.matmul %194, %195, %cst_162 {dimension_numbers = #tpu.dot_dimension_numbers<[2], [2], [1], [1], [0, 0, 0, 1, 1, 1], [0], [0]>} : vector<8x18x4xbf16>, vector<8x18x4xbf16>, vector<8x18x18xf32> -> vector<8x18x18xf32>
    %cst_163 = arith.constant 5.000000e-01 : f32
    %198 = vector.broadcast %cst_163 : f32 to vector<8x18x18xf32>
    %199 = arith.mulf %197, %198 : vector<8x18x18xf32>
    %200 = arith.addf %199, %65 : vector<8x18x18xf32>
    %cst_164 = arith.constant dense<0xFF800000> : vector<8x18xf32>
    %201 = vector.multi_reduction <maximumf>, %200, %cst_164 [2] : vector<8x18x18xf32> to vector<8x18xf32>
    %202 = vector.shape_cast %201 : vector<8x18xf32> to vector<8x18x1xf32>
    %203 = vector.broadcast %202 : vector<8x18x1xf32> to vector<8x18x18xf32>
    %204 = arith.subf %200, %203 : vector<8x18x18xf32>
    %205 = math.exp %204 : vector<8x18x18xf32>
    %cst_165 = arith.constant dense<0.000000e+00> : vector<8x18xf32>
    %206 = vector.multi_reduction <add>, %205, %cst_165 [2] : vector<8x18x18xf32> to vector<8x18xf32>
    %207 = vector.shape_cast %206 : vector<8x18xf32> to vector<8x18x1xf32>
    %208 = tpu.reciprocal %207 {approx = true} : vector<8x18x1xf32> -> vector<8x18x1xf32>
    %209 = vector.broadcast %208 : vector<8x18x1xf32> to vector<8x18x18xf32>
    %210 = arith.mulf %205, %209 : vector<8x18x18xf32>
    %211 = arith.truncf %210 : vector<8x18x18xf32> to vector<8x18x18xbf16>
    %cst_166 = arith.constant dense<0.000000e+00> : vector<8x18x4xf32>
    %212 = tpu.matmul %211, %196, %cst_166 {dimension_numbers = #tpu.dot_dimension_numbers<[2], [1], [1], [2], [0, 0, 0, 1, 1, 2], [0], [0]>} : vector<8x18x18xbf16>, vector<8x18x4xbf16>, vector<8x18x4xf32> -> vector<8x18x4xf32>
    %213 = vector.extract_strided_slice %212 {offsets = [0, 0, 0], sizes = [1, 18, 4], strides = [1, 1, 1]} : vector<8x18x4xf32> to vector<1x18x4xf32>
    %214 = vector.shape_cast %213 : vector<1x18x4xf32> to vector<18x4xf32>
    %215 = arith.truncf %214 : vector<18x4xf32> to vector<18x4xbf16>
    %c0_167 = arith.constant 0 : index
    %c0_168 = arith.constant 0 : index
    %216 = vector.load %arg25[%c0_167, %c0_168] : memref<18x32xbf16, #tpu.memory_space<vmem>>, vector<18x4xbf16>
    tpu.vector_store %arg25[%c0_167, %c0_168], %215 {strides = array<i32>} : memref<18x32xbf16, #tpu.memory_space<vmem>>, vector<18x4xbf16>,
    %217 = vector.extract_strided_slice %212 {offsets = [1, 0, 0], sizes = [1, 18, 4], strides = [1, 1, 1]} : vector<8x18x4xf32> to vector<1x18x4xf32>
    %218 = vector.shape_cast %217 : vector<1x18x4xf32> to vector<18x4xf32>
    %219 = arith.truncf %218 : vector<18x4xf32> to vector<18x4xbf16>
    %c0_169 = arith.constant 0 : index
    %c4_170 = arith.constant 4 : index
    %220 = vector.load %arg25[%c0_169, %c4_170] : memref<18x32xbf16, #tpu.memory_space<vmem>>, vector<18x4xbf16>
    tpu.vector_store %arg25[%c0_169, %c4_170], %219 {strides = array<i32>} : memref<18x32xbf16, #tpu.memory_space<vmem>>, vector<18x4xbf16>,
    %221 = vector.extract_strided_slice %212 {offsets = [2, 0, 0], sizes = [1, 18, 4], strides = [1, 1, 1]} : vector<8x18x4xf32> to vector<1x18x4xf32>
    %222 = vector.shape_cast %221 : vector<1x18x4xf32> to vector<18x4xf32>
    %223 = arith.truncf %222 : vector<18x4xf32> to vector<18x4xbf16>
    %c0_171 = arith.constant 0 : index
    %c8 = arith.constant 8 : index
    %224 = vector.load %arg25[%c0_171, %c8] : memref<18x32xbf16, #tpu.memory_space<vmem>>, vector<18x4xbf16>
    tpu.vector_store %arg25[%c0_171, %c8], %223 {strides = array<i32>} : memref<18x32xbf16, #tpu.memory_space<vmem>>, vector<18x4xbf16>,
    %225 = vector.extract_strided_slice %212 {offsets = [3, 0, 0], sizes = [1, 18, 4], strides = [1, 1, 1]} : vector<8x18x4xf32> to vector<1x18x4xf32>
    %226 = vector.shape_cast %225 : vector<1x18x4xf32> to vector<18x4xf32>
    %227 = arith.truncf %226 : vector<18x4xf32> to vector<18x4xbf16>
    %c0_172 = arith.constant 0 : index
    %c12 = arith.constant 12 : index
    %228 = vector.load %arg25[%c0_172, %c12] : memref<18x32xbf16, #tpu.memory_space<vmem>>, vector<18x4xbf16>
    tpu.vector_store %arg25[%c0_172, %c12], %227 {strides = array<i32>} : memref<18x32xbf16, #tpu.memory_space<vmem>>, vector<18x4xbf16>,
    %229 = vector.extract_strided_slice %212 {offsets = [4, 0, 0], sizes = [1, 18, 4], strides = [1, 1, 1]} : vector<8x18x4xf32> to vector<1x18x4xf32>
    %230 = vector.shape_cast %229 : vector<1x18x4xf32> to vector<18x4xf32>
    %231 = arith.truncf %230 : vector<18x4xf32> to vector<18x4xbf16>
    %c0_173 = arith.constant 0 : index
    %c16 = arith.constant 16 : index
    %232 = vector.load %arg25[%c0_173, %c16] : memref<18x32xbf16, #tpu.memory_space<vmem>>, vector<18x4xbf16>
    tpu.vector_store %arg25[%c0_173, %c16], %231 {strides = array<i32>} : memref<18x32xbf16, #tpu.memory_space<vmem>>, vector<18x4xbf16>,
    %233 = vector.extract_strided_slice %212 {offsets = [5, 0, 0], sizes = [1, 18, 4], strides = [1, 1, 1]} : vector<8x18x4xf32> to vector<1x18x4xf32>
    %234 = vector.shape_cast %233 : vector<1x18x4xf32> to vector<18x4xf32>
    %235 = arith.truncf %234 : vector<18x4xf32> to vector<18x4xbf16>
    %c0_174 = arith.constant 0 : index
    %c20 = arith.constant 20 : index
    %236 = vector.load %arg25[%c0_174, %c20] : memref<18x32xbf16, #tpu.memory_space<vmem>>, vector<18x4xbf16>
    tpu.vector_store %arg25[%c0_174, %c20], %235 {strides = array<i32>} : memref<18x32xbf16, #tpu.memory_space<vmem>>, vector<18x4xbf16>,
    %237 = vector.extract_strided_slice %212 {offsets = [6, 0, 0], sizes = [1, 18, 4], strides = [1, 1, 1]} : vector<8x18x4xf32> to vector<1x18x4xf32>
    %238 = vector.shape_cast %237 : vector<1x18x4xf32> to vector<18x4xf32>
    %239 = arith.truncf %238 : vector<18x4xf32> to vector<18x4xbf16>
    %c0_175 = arith.constant 0 : index
    %c24 = arith.constant 24 : index
    %240 = vector.load %arg25[%c0_175, %c24] : memref<18x32xbf16, #tpu.memory_space<vmem>>, vector<18x4xbf16>
    tpu.vector_store %arg25[%c0_175, %c24], %239 {strides = array<i32>} : memref<18x32xbf16, #tpu.memory_space<vmem>>, vector<18x4xbf16>,
    %241 = vector.extract_strided_slice %212 {offsets = [7, 0, 0], sizes = [1, 18, 4], strides = [1, 1, 1]} : vector<8x18x4xf32> to vector<1x18x4xf32>
    %242 = vector.shape_cast %241 : vector<1x18x4xf32> to vector<18x4xf32>
    %243 = arith.truncf %242 : vector<18x4xf32> to vector<18x4xbf16>
    %c0_176 = arith.constant 0 : index
    %c28 = arith.constant 28 : index
    %244 = vector.load %arg25[%c0_176, %c28] : memref<18x32xbf16, #tpu.memory_space<vmem>>, vector<18x4xbf16>
    tpu.vector_store %arg25[%c0_176, %c28], %243 {strides = array<i32>} : memref<18x32xbf16, #tpu.memory_space<vmem>>, vector<18x4xbf16>,
    %c0_177 = arith.constant 0 : index
    %c0_178 = arith.constant 0 : index
    %245 = vector.load %arg25[%c0_177, %c0_178] : memref<18x32xbf16, #tpu.memory_space<vmem>>, vector<18x32xbf16>
    %c0_179 = arith.constant 0 : index
    %c0_180 = arith.constant 0 : index
    %c0_181 = arith.constant 0 : index
    %246 = vector.load %arg8[%c0_179, %c0_180, %c0_181] : memref<2x32x32xbf16, #tpu.memory_space<vmem>>, vector<1x32x32xbf16>
    %247 = vector.shape_cast %246 : vector<1x32x32xbf16> to vector<32x32xbf16>
    %cst_182 = arith.constant dense<0.000000e+00> : vector<18x32xf32>
    %248 = tpu.matmul %245, %247, %cst_182 {dimension_numbers = #tpu.dot_dimension_numbers<[1], [0], [0], [1], [0, 0, 1, 1], [], []>} : vector<18x32xbf16>, vector<32x32xbf16>, vector<18x32xf32> -> vector<18x32xf32>
    %c0_183 = arith.constant 0 : index
    %c0_184 = arith.constant 0 : index
    %c0_185 = arith.constant 0 : index
    %249 = vector.load %arg9[%c0_183, %c0_184, %c0_185] : memref<2x1x32xf32, #tpu.memory_space<vmem>>, vector<1x1x32xf32>
    %250 = vector.shape_cast %249 : vector<1x1x32xf32> to vector<1x32xf32>
    %251 = vector.broadcast %250 : vector<1x32xf32> to vector<18x32xf32>
    %252 = arith.addf %248, %251 : vector<18x32xf32>
    %253 = arith.addf %64, %252 : vector<18x32xf32>
    %c0_186 = arith.constant 0 : index
    %c0_187 = arith.constant 0 : index
    %c0_188 = arith.constant 0 : index
    %254 = vector.load %arg10[%c0_186, %c0_187, %c0_188] : memref<2x1x32xf32, #tpu.memory_space<vmem>>, vector<1x1x32xf32>
    %255 = vector.shape_cast %254 : vector<1x1x32xf32> to vector<1x32xf32>
    %c0_189 = arith.constant 0 : index
    %c0_190 = arith.constant 0 : index
    %c0_191 = arith.constant 0 : index
    %256 = vector.load %arg11[%c0_189, %c0_190, %c0_191] : memref<2x1x32xf32, #tpu.memory_space<vmem>>, vector<1x1x32xf32>
    %257 = vector.shape_cast %256 : vector<1x1x32xf32> to vector<1x32xf32>
    %cst_192 = arith.constant dense<0.000000e+00> : vector<18xf32>
    %258 = vector.multi_reduction <add>, %253, %cst_192 [1] : vector<18x32xf32> to vector<18xf32>
    %259 = vector.shape_cast %258 : vector<18xf32> to vector<18x1xf32>
    %cst_193 = arith.constant 3.200000e+01 : f32
    %260 = vector.broadcast %cst_193 : f32 to vector<18x1xf32>
    %261 = arith.divf %259, %260 : vector<18x1xf32>
    %262 = vector.broadcast %261 : vector<18x1xf32> to vector<18x32xf32>
    %263 = arith.subf %253, %262 : vector<18x32xf32>
    %264 = arith.mulf %263, %263 : vector<18x32xf32>
    %cst_194 = arith.constant dense<0.000000e+00> : vector<18xf32>
    %265 = vector.multi_reduction <add>, %264, %cst_194 [1] : vector<18x32xf32> to vector<18xf32>
    %266 = vector.shape_cast %265 : vector<18xf32> to vector<18x1xf32>
    %cst_195 = arith.constant 3.200000e+01 : f32
    %267 = vector.broadcast %cst_195 : f32 to vector<18x1xf32>
    %268 = arith.divf %266, %267 : vector<18x1xf32>
    %cst_196 = arith.constant 9.99999974E-6 : f32
    %269 = vector.broadcast %cst_196 : f32 to vector<18x1xf32>
    %270 = arith.addf %268, %269 : vector<18x1xf32>
    %271 = math.rsqrt %270 : vector<18x1xf32>
    %272 = vector.broadcast %271 : vector<18x1xf32> to vector<18x32xf32>
    %273 = arith.mulf %263, %272 : vector<18x32xf32>
    %274 = vector.broadcast %255 : vector<1x32xf32> to vector<18x32xf32>
    %275 = arith.mulf %273, %274 : vector<18x32xf32>
    %276 = vector.broadcast %257 : vector<1x32xf32> to vector<18x32xf32>
    %277 = arith.addf %275, %276 : vector<18x32xf32>
    %278 = arith.truncf %277 : vector<18x32xf32> to vector<18x32xbf16>
    %c0_197 = arith.constant 0 : index
    %c0_198 = arith.constant 0 : index
    %c0_199 = arith.constant 0 : index
    %279 = vector.load %arg12[%c0_197, %c0_198, %c0_199] : memref<2x32x128xbf16, #tpu.memory_space<vmem>>, vector<1x32x128xbf16>
    %280 = vector.shape_cast %279 : vector<1x32x128xbf16> to vector<32x128xbf16>
    %cst_200 = arith.constant dense<0.000000e+00> : vector<18x128xf32>
    %281 = tpu.matmul %278, %280, %cst_200 {dimension_numbers = #tpu.dot_dimension_numbers<[1], [0], [0], [1], [0, 0, 1, 1], [], []>} : vector<18x32xbf16>, vector<32x128xbf16>, vector<18x128xf32> -> vector<18x128xf32>
    %c0_201 = arith.constant 0 : index
    %c0_202 = arith.constant 0 : index
    %c0_203 = arith.constant 0 : index
    %282 = vector.load %arg13[%c0_201, %c0_202, %c0_203] : memref<2x1x128xf32, #tpu.memory_space<vmem>>, vector<1x1x128xf32>
    %283 = vector.shape_cast %282 : vector<1x1x128xf32> to vector<1x128xf32>
    %284 = vector.broadcast %283 : vector<1x128xf32> to vector<18x128xf32>
    %285 = arith.addf %281, %284 : vector<18x128xf32>
    %cst_204 = arith.constant 5.000000e-01 : f32
    %286 = vector.broadcast %cst_204 : f32 to vector<18x128xf32>
    %287 = arith.mulf %286, %285 : vector<18x128xf32>
    %cst_205 = arith.constant 0.707106769 : f32
    %288 = vector.broadcast %cst_205 : f32 to vector<18x128xf32>
    %289 = arith.mulf %285, %288 : vector<18x128xf32>
    %290 = math.absf %289 : vector<18x128xf32>
    %cst_206 = arith.constant 0.327591091 : f32
    %291 = vector.broadcast %cst_206 : f32 to vector<18x128xf32>
    %292 = arith.mulf %291, %290 : vector<18x128xf32>
    %cst_207 = arith.constant 1.000000e+00 : f32
    %293 = vector.broadcast %cst_207 : f32 to vector<18x128xf32>
    %294 = arith.addf %293, %292 : vector<18x128xf32>
    %cst_208 = arith.constant 1.000000e+00 : f32
    %295 = vector.broadcast %cst_208 : f32 to vector<18x128xf32>
    %296 = arith.divf %295, %294 : vector<18x128xf32>
    %cst_209 = arith.constant 1.06140542 : f32
    %297 = vector.broadcast %cst_209 : f32 to vector<18x128xf32>
    %298 = arith.mulf %297, %296 : vector<18x128xf32>
    %cst_210 = arith.constant -1.45315206 : f32
    %299 = vector.broadcast %cst_210 : f32 to vector<18x128xf32>
    %300 = arith.addf %298, %299 : vector<18x128xf32>
    %301 = arith.mulf %300, %296 : vector<18x128xf32>
    %cst_211 = arith.constant 1.42141378 : f32
    %302 = vector.broadcast %cst_211 : f32 to vector<18x128xf32>
    %303 = arith.addf %301, %302 : vector<18x128xf32>
    %304 = arith.mulf %303, %296 : vector<18x128xf32>
    %cst_212 = arith.constant -0.284496725 : f32
    %305 = vector.broadcast %cst_212 : f32 to vector<18x128xf32>
    %306 = arith.addf %304, %305 : vector<18x128xf32>
    %307 = arith.mulf %306, %296 : vector<18x128xf32>
    %cst_213 = arith.constant 0.254829586 : f32
    %308 = vector.broadcast %cst_213 : f32 to vector<18x128xf32>
    %309 = arith.addf %307, %308 : vector<18x128xf32>
    %310 = arith.mulf %309, %296 : vector<18x128xf32>
    %cst_214 = arith.constant 0.000000e+00 : f32
    %311 = vector.broadcast %cst_214 : f32 to vector<18x128xf32>
    %312 = arith.subf %311, %290 : vector<18x128xf32>
    %313 = arith.mulf %312, %290 : vector<18x128xf32>
    %314 = math.exp %313 : vector<18x128xf32>
    %315 = arith.mulf %310, %314 : vector<18x128xf32>
    %cst_215 = arith.constant 1.000000e+00 : f32
    %316 = vector.broadcast %cst_215 : f32 to vector<18x128xf32>
    %317 = arith.subf %316, %315 : vector<18x128xf32>
    %cst_216 = arith.constant 0.000000e+00 : f32
    %318 = vector.broadcast %cst_216 : f32 to vector<18x128xf32>
    %319 = arith.cmpf oge, %289, %318 : vector<18x128xf32>
    %cst_217 = arith.constant 0.000000e+00 : f32
    %320 = vector.broadcast %cst_217 : f32 to vector<18x128xf32>
    %321 = arith.subf %320, %317 : vector<18x128xf32>
    %322 = arith.select %319, %317, %321 : vector<18x128xi1>, vector<18x128xf32>
    %cst_218 = arith.constant 1.000000e+00 : f32
    %323 = vector.broadcast %cst_218 : f32 to vector<18x128xf32>
    %324 = arith.addf %323, %322 : vector<18x128xf32>
    %325 = arith.mulf %287, %324 : vector<18x128xf32>
    %326 = arith.truncf %325 : vector<18x128xf32> to vector<18x128xbf16>
    %c0_219 = arith.constant 0 : index
    %c0_220 = arith.constant 0 : index
    %c0_221 = arith.constant 0 : index
    %327 = vector.load %arg14[%c0_219, %c0_220, %c0_221] : memref<2x128x32xbf16, #tpu.memory_space<vmem>>, vector<1x128x32xbf16>
    %328 = vector.shape_cast %327 : vector<1x128x32xbf16> to vector<128x32xbf16>
    %cst_222 = arith.constant dense<0.000000e+00> : vector<18x32xf32>
    %329 = tpu.matmul %326, %328, %cst_222 {dimension_numbers = #tpu.dot_dimension_numbers<[1], [0], [0], [1], [0, 0, 1, 1], [], []>} : vector<18x128xbf16>, vector<128x32xbf16>, vector<18x32xf32> -> vector<18x32xf32>
    %c0_223 = arith.constant 0 : index
    %c0_224 = arith.constant 0 : index
    %c0_225 = arith.constant 0 : index
    %330 = vector.load %arg15[%c0_223, %c0_224, %c0_225] : memref<2x1x32xf32, #tpu.memory_space<vmem>>, vector<1x1x32xf32>
    %331 = vector.shape_cast %330 : vector<1x1x32xf32> to vector<1x32xf32>
    %332 = vector.broadcast %331 : vector<1x32xf32> to vector<18x32xf32>
    %333 = arith.addf %329, %332 : vector<18x32xf32>
    %334 = arith.addf %277, %333 : vector<18x32xf32>
    %c0_226 = arith.constant 0 : index
    %c0_227 = arith.constant 0 : index
    %c0_228 = arith.constant 0 : index
    %335 = vector.load %arg16[%c0_226, %c0_227, %c0_228] : memref<2x1x32xf32, #tpu.memory_space<vmem>>, vector<1x1x32xf32>
    %336 = vector.shape_cast %335 : vector<1x1x32xf32> to vector<1x32xf32>
    %c0_229 = arith.constant 0 : index
    %c0_230 = arith.constant 0 : index
    %c0_231 = arith.constant 0 : index
    %337 = vector.load %arg17[%c0_229, %c0_230, %c0_231] : memref<2x1x32xf32, #tpu.memory_space<vmem>>, vector<1x1x32xf32>
    %338 = vector.shape_cast %337 : vector<1x1x32xf32> to vector<1x32xf32>
    %cst_232 = arith.constant dense<0.000000e+00> : vector<18xf32>
    %339 = vector.multi_reduction <add>, %334, %cst_232 [1] : vector<18x32xf32> to vector<18xf32>
    %340 = vector.shape_cast %339 : vector<18xf32> to vector<18x1xf32>
    %cst_233 = arith.constant 3.200000e+01 : f32
    %341 = vector.broadcast %cst_233 : f32 to vector<18x1xf32>
    %342 = arith.divf %340, %341 : vector<18x1xf32>
    %343 = vector.broadcast %342 : vector<18x1xf32> to vector<18x32xf32>
    %344 = arith.subf %334, %343 : vector<18x32xf32>
    %345 = arith.mulf %344, %344 : vector<18x32xf32>
    %cst_234 = arith.constant dense<0.000000e+00> : vector<18xf32>
    %346 = vector.multi_reduction <add>, %345, %cst_234 [1] : vector<18x32xf32> to vector<18xf32>
    %347 = vector.shape_cast %346 : vector<18xf32> to vector<18x1xf32>
    %cst_235 = arith.constant 3.200000e+01 : f32
    %348 = vector.broadcast %cst_235 : f32 to vector<18x1xf32>
    %349 = arith.divf %347, %348 : vector<18x1xf32>
    %cst_236 = arith.constant 9.99999974E-6 : f32
    %350 = vector.broadcast %cst_236 : f32 to vector<18x1xf32>
    %351 = arith.addf %349, %350 : vector<18x1xf32>
    %352 = math.rsqrt %351 : vector<18x1xf32>
    %353 = vector.broadcast %352 : vector<18x1xf32> to vector<18x32xf32>
    %354 = arith.mulf %344, %353 : vector<18x32xf32>
    %355 = vector.broadcast %336 : vector<1x32xf32> to vector<18x32xf32>
    %356 = arith.mulf %354, %355 : vector<18x32xf32>
    %357 = vector.broadcast %338 : vector<1x32xf32> to vector<18x32xf32>
    %358 = arith.addf %356, %357 : vector<18x32xf32>
    %359 = arith.truncf %358 : vector<18x32xf32> to vector<18x32xbf16>
    %c1_237 = arith.constant 1 : index
    %c0_238 = arith.constant 0 : index
    %c0_239 = arith.constant 0 : index
    %360 = vector.load %arg6[%c1_237, %c0_238, %c0_239] : memref<2x32x96xbf16, #tpu.memory_space<vmem>>, vector<1x32x96xbf16>
    %361 = vector.shape_cast %360 : vector<1x32x96xbf16> to vector<32x96xbf16>
    %cst_240 = arith.constant dense<0.000000e+00> : vector<18x96xf32>
    %362 = tpu.matmul %359, %361, %cst_240 {dimension_numbers = #tpu.dot_dimension_numbers<[1], [0], [0], [1], [0, 0, 1, 1], [], []>} : vector<18x32xbf16>, vector<32x96xbf16>, vector<18x96xf32> -> vector<18x96xf32>
    %c1_241 = arith.constant 1 : index
    %c0_242 = arith.constant 0 : index
    %c0_243 = arith.constant 0 : index
    %363 = vector.load %arg7[%c1_241, %c0_242, %c0_243] : memref<2x1x96xf32, #tpu.memory_space<vmem>>, vector<1x1x96xf32>
    %364 = vector.shape_cast %363 : vector<1x1x96xf32> to vector<1x96xf32>
    %365 = vector.broadcast %364 : vector<1x96xf32> to vector<18x96xf32>
    %366 = arith.addf %362, %365 : vector<18x96xf32>
    %367 = vector.extract_strided_slice %366 {offsets = [0, 0], sizes = [18, 4], strides = [1, 1]} : vector<18x96xf32> to vector<18x4xf32>
    %368 = arith.truncf %367 : vector<18x4xf32> to vector<18x4xbf16>
    %c0_244 = arith.constant 0 : index
    %c0_245 = arith.constant 0 : index
    %c0_246 = arith.constant 0 : index
    %369 = vector.load %arg22[%c0_244, %c0_245, %c0_246] : memref<8x18x4xbf16, #tpu.memory_space<vmem>>, vector<1x18x4xbf16>
    %370 = vector.shape_cast %369 : vector<1x18x4xbf16> to vector<18x4xbf16>
    %371 = vector.shape_cast %368 : vector<18x4xbf16> to vector<1x18x4xbf16>
    tpu.vector_store %arg22[%c0_244, %c0_245, %c0_246], %371 {strides = array<i32>} : memref<8x18x4xbf16, #tpu.memory_space<vmem>>, vector<1x18x4xbf16>,
    %372 = vector.extract_strided_slice %366 {offsets = [0, 32], sizes = [18, 4], strides = [1, 1]} : vector<18x96xf32> to vector<18x4xf32>
    %373 = arith.truncf %372 : vector<18x4xf32> to vector<18x4xbf16>
    %c0_247 = arith.constant 0 : index
    %c0_248 = arith.constant 0 : index
    %c0_249 = arith.constant 0 : index
    %374 = vector.load %arg23[%c0_247, %c0_248, %c0_249] : memref<8x18x4xbf16, #tpu.memory_space<vmem>>, vector<1x18x4xbf16>
    %375 = vector.shape_cast %374 : vector<1x18x4xbf16> to vector<18x4xbf16>
    %376 = vector.shape_cast %373 : vector<18x4xbf16> to vector<1x18x4xbf16>
    tpu.vector_store %arg23[%c0_247, %c0_248, %c0_249], %376 {strides = array<i32>} : memref<8x18x4xbf16, #tpu.memory_space<vmem>>, vector<1x18x4xbf16>,
    %377 = vector.extract_strided_slice %366 {offsets = [0, 64], sizes = [18, 4], strides = [1, 1]} : vector<18x96xf32> to vector<18x4xf32>
    %378 = arith.truncf %377 : vector<18x4xf32> to vector<18x4xbf16>
    %c0_250 = arith.constant 0 : index
    %c0_251 = arith.constant 0 : index
    %c0_252 = arith.constant 0 : index
    %379 = vector.load %arg24[%c0_250, %c0_251, %c0_252] : memref<8x18x4xbf16, #tpu.memory_space<vmem>>, vector<1x18x4xbf16>
    %380 = vector.shape_cast %379 : vector<1x18x4xbf16> to vector<18x4xbf16>
    %381 = vector.shape_cast %378 : vector<18x4xbf16> to vector<1x18x4xbf16>
    tpu.vector_store %arg24[%c0_250, %c0_251, %c0_252], %381 {strides = array<i32>} : memref<8x18x4xbf16, #tpu.memory_space<vmem>>, vector<1x18x4xbf16>,
    %382 = vector.extract_strided_slice %366 {offsets = [0, 4], sizes = [18, 4], strides = [1, 1]} : vector<18x96xf32> to vector<18x4xf32>
    %383 = arith.truncf %382 : vector<18x4xf32> to vector<18x4xbf16>
    %c1_253 = arith.constant 1 : index
    %c0_254 = arith.constant 0 : index
    %c0_255 = arith.constant 0 : index
    %384 = vector.load %arg22[%c1_253, %c0_254, %c0_255] : memref<8x18x4xbf16, #tpu.memory_space<vmem>>, vector<1x18x4xbf16>
    %385 = vector.shape_cast %384 : vector<1x18x4xbf16> to vector<18x4xbf16>
    %386 = vector.shape_cast %383 : vector<18x4xbf16> to vector<1x18x4xbf16>
    tpu.vector_store %arg22[%c1_253, %c0_254, %c0_255], %386 {strides = array<i32>} : memref<8x18x4xbf16, #tpu.memory_space<vmem>>, vector<1x18x4xbf16>,
    %387 = vector.extract_strided_slice %366 {offsets = [0, 36], sizes = [18, 4], strides = [1, 1]} : vector<18x96xf32> to vector<18x4xf32>
    %388 = arith.truncf %387 : vector<18x4xf32> to vector<18x4xbf16>
    %c1_256 = arith.constant 1 : index
    %c0_257 = arith.constant 0 : index
    %c0_258 = arith.constant 0 : index
    %389 = vector.load %arg23[%c1_256, %c0_257, %c0_258] : memref<8x18x4xbf16, #tpu.memory_space<vmem>>, vector<1x18x4xbf16>
    %390 = vector.shape_cast %389 : vector<1x18x4xbf16> to vector<18x4xbf16>
    %391 = vector.shape_cast %388 : vector<18x4xbf16> to vector<1x18x4xbf16>
    tpu.vector_store %arg23[%c1_256, %c0_257, %c0_258], %391 {strides = array<i32>} : memref<8x18x4xbf16, #tpu.memory_space<vmem>>, vector<1x18x4xbf16>,
    %392 = vector.extract_strided_slice %366 {offsets = [0, 68], sizes = [18, 4], strides = [1, 1]} : vector<18x96xf32> to vector<18x4xf32>
    %393 = arith.truncf %392 : vector<18x4xf32> to vector<18x4xbf16>
    %c1_259 = arith.constant 1 : index
    %c0_260 = arith.constant 0 : index
    %c0_261 = arith.constant 0 : index
    %394 = vector.load %arg24[%c1_259, %c0_260, %c0_261] : memref<8x18x4xbf16, #tpu.memory_space<vmem>>, vector<1x18x4xbf16>
    %395 = vector.shape_cast %394 : vector<1x18x4xbf16> to vector<18x4xbf16>
    %396 = vector.shape_cast %393 : vector<18x4xbf16> to vector<1x18x4xbf16>
    tpu.vector_store %arg24[%c1_259, %c0_260, %c0_261], %396 {strides = array<i32>} : memref<8x18x4xbf16, #tpu.memory_space<vmem>>, vector<1x18x4xbf16>,
    %397 = vector.extract_strided_slice %366 {offsets = [0, 8], sizes = [18, 4], strides = [1, 1]} : vector<18x96xf32> to vector<18x4xf32>
    %398 = arith.truncf %397 : vector<18x4xf32> to vector<18x4xbf16>
    %c2_262 = arith.constant 2 : index
    %c0_263 = arith.constant 0 : index
    %c0_264 = arith.constant 0 : index
    %399 = vector.load %arg22[%c2_262, %c0_263, %c0_264] : memref<8x18x4xbf16, #tpu.memory_space<vmem>>, vector<1x18x4xbf16>
    %400 = vector.shape_cast %399 : vector<1x18x4xbf16> to vector<18x4xbf16>
    %401 = vector.shape_cast %398 : vector<18x4xbf16> to vector<1x18x4xbf16>
    tpu.vector_store %arg22[%c2_262, %c0_263, %c0_264], %401 {strides = array<i32>} : memref<8x18x4xbf16, #tpu.memory_space<vmem>>, vector<1x18x4xbf16>,
    %402 = vector.extract_strided_slice %366 {offsets = [0, 40], sizes = [18, 4], strides = [1, 1]} : vector<18x96xf32> to vector<18x4xf32>
    %403 = arith.truncf %402 : vector<18x4xf32> to vector<18x4xbf16>
    %c2_265 = arith.constant 2 : index
    %c0_266 = arith.constant 0 : index
    %c0_267 = arith.constant 0 : index
    %404 = vector.load %arg23[%c2_265, %c0_266, %c0_267] : memref<8x18x4xbf16, #tpu.memory_space<vmem>>, vector<1x18x4xbf16>
    %405 = vector.shape_cast %404 : vector<1x18x4xbf16> to vector<18x4xbf16>
    %406 = vector.shape_cast %403 : vector<18x4xbf16> to vector<1x18x4xbf16>
    tpu.vector_store %arg23[%c2_265, %c0_266, %c0_267], %406 {strides = array<i32>} : memref<8x18x4xbf16, #tpu.memory_space<vmem>>, vector<1x18x4xbf16>,
    %407 = vector.extract_strided_slice %366 {offsets = [0, 72], sizes = [18, 4], strides = [1, 1]} : vector<18x96xf32> to vector<18x4xf32>
    %408 = arith.truncf %407 : vector<18x4xf32> to vector<18x4xbf16>
    %c2_268 = arith.constant 2 : index
    %c0_269 = arith.constant 0 : index
    %c0_270 = arith.constant 0 : index
    %409 = vector.load %arg24[%c2_268, %c0_269, %c0_270] : memref<8x18x4xbf16, #tpu.memory_space<vmem>>, vector<1x18x4xbf16>
    %410 = vector.shape_cast %409 : vector<1x18x4xbf16> to vector<18x4xbf16>
    %411 = vector.shape_cast %408 : vector<18x4xbf16> to vector<1x18x4xbf16>
    tpu.vector_store %arg24[%c2_268, %c0_269, %c0_270], %411 {strides = array<i32>} : memref<8x18x4xbf16, #tpu.memory_space<vmem>>, vector<1x18x4xbf16>,
    %412 = vector.extract_strided_slice %366 {offsets = [0, 12], sizes = [18, 4], strides = [1, 1]} : vector<18x96xf32> to vector<18x4xf32>
    %413 = arith.truncf %412 : vector<18x4xf32> to vector<18x4xbf16>
    %c3_271 = arith.constant 3 : index
    %c0_272 = arith.constant 0 : index
    %c0_273 = arith.constant 0 : index
    %414 = vector.load %arg22[%c3_271, %c0_272, %c0_273] : memref<8x18x4xbf16, #tpu.memory_space<vmem>>, vector<1x18x4xbf16>
    %415 = vector.shape_cast %414 : vector<1x18x4xbf16> to vector<18x4xbf16>
    %416 = vector.shape_cast %413 : vector<18x4xbf16> to vector<1x18x4xbf16>
    tpu.vector_store %arg22[%c3_271, %c0_272, %c0_273], %416 {strides = array<i32>} : memref<8x18x4xbf16, #tpu.memory_space<vmem>>, vector<1x18x4xbf16>,
    %417 = vector.extract_strided_slice %366 {offsets = [0, 44], sizes = [18, 4], strides = [1, 1]} : vector<18x96xf32> to vector<18x4xf32>
    %418 = arith.truncf %417 : vector<18x4xf32> to vector<18x4xbf16>
    %c3_274 = arith.constant 3 : index
    %c0_275 = arith.constant 0 : index
    %c0_276 = arith.constant 0 : index
    %419 = vector.load %arg23[%c3_274, %c0_275, %c0_276] : memref<8x18x4xbf16, #tpu.memory_space<vmem>>, vector<1x18x4xbf16>
    %420 = vector.shape_cast %419 : vector<1x18x4xbf16> to vector<18x4xbf16>
    %421 = vector.shape_cast %418 : vector<18x4xbf16> to vector<1x18x4xbf16>
    tpu.vector_store %arg23[%c3_274, %c0_275, %c0_276], %421 {strides = array<i32>} : memref<8x18x4xbf16, #tpu.memory_space<vmem>>, vector<1x18x4xbf16>,
    %422 = vector.extract_strided_slice %366 {offsets = [0, 76], sizes = [18, 4], strides = [1, 1]} : vector<18x96xf32> to vector<18x4xf32>
    %423 = arith.truncf %422 : vector<18x4xf32> to vector<18x4xbf16>
    %c3_277 = arith.constant 3 : index
    %c0_278 = arith.constant 0 : index
    %c0_279 = arith.constant 0 : index
    %424 = vector.load %arg24[%c3_277, %c0_278, %c0_279] : memref<8x18x4xbf16, #tpu.memory_space<vmem>>, vector<1x18x4xbf16>
    %425 = vector.shape_cast %424 : vector<1x18x4xbf16> to vector<18x4xbf16>
    %426 = vector.shape_cast %423 : vector<18x4xbf16> to vector<1x18x4xbf16>
    tpu.vector_store %arg24[%c3_277, %c0_278, %c0_279], %426 {strides = array<i32>} : memref<8x18x4xbf16, #tpu.memory_space<vmem>>, vector<1x18x4xbf16>,
    %427 = vector.extract_strided_slice %366 {offsets = [0, 16], sizes = [18, 4], strides = [1, 1]} : vector<18x96xf32> to vector<18x4xf32>
    %428 = arith.truncf %427 : vector<18x4xf32> to vector<18x4xbf16>
    %c4_280 = arith.constant 4 : index
    %c0_281 = arith.constant 0 : index
    %c0_282 = arith.constant 0 : index
    %429 = vector.load %arg22[%c4_280, %c0_281, %c0_282] : memref<8x18x4xbf16, #tpu.memory_space<vmem>>, vector<1x18x4xbf16>
    %430 = vector.shape_cast %429 : vector<1x18x4xbf16> to vector<18x4xbf16>
    %431 = vector.shape_cast %428 : vector<18x4xbf16> to vector<1x18x4xbf16>
    tpu.vector_store %arg22[%c4_280, %c0_281, %c0_282], %431 {strides = array<i32>} : memref<8x18x4xbf16, #tpu.memory_space<vmem>>, vector<1x18x4xbf16>,
    %432 = vector.extract_strided_slice %366 {offsets = [0, 48], sizes = [18, 4], strides = [1, 1]} : vector<18x96xf32> to vector<18x4xf32>
    %433 = arith.truncf %432 : vector<18x4xf32> to vector<18x4xbf16>
    %c4_283 = arith.constant 4 : index
    %c0_284 = arith.constant 0 : index
    %c0_285 = arith.constant 0 : index
    %434 = vector.load %arg23[%c4_283, %c0_284, %c0_285] : memref<8x18x4xbf16, #tpu.memory_space<vmem>>, vector<1x18x4xbf16>
    %435 = vector.shape_cast %434 : vector<1x18x4xbf16> to vector<18x4xbf16>
    %436 = vector.shape_cast %433 : vector<18x4xbf16> to vector<1x18x4xbf16>
    tpu.vector_store %arg23[%c4_283, %c0_284, %c0_285], %436 {strides = array<i32>} : memref<8x18x4xbf16, #tpu.memory_space<vmem>>, vector<1x18x4xbf16>,
    %437 = vector.extract_strided_slice %366 {offsets = [0, 80], sizes = [18, 4], strides = [1, 1]} : vector<18x96xf32> to vector<18x4xf32>
    %438 = arith.truncf %437 : vector<18x4xf32> to vector<18x4xbf16>
    %c4_286 = arith.constant 4 : index
    %c0_287 = arith.constant 0 : index
    %c0_288 = arith.constant 0 : index
    %439 = vector.load %arg24[%c4_286, %c0_287, %c0_288] : memref<8x18x4xbf16, #tpu.memory_space<vmem>>, vector<1x18x4xbf16>
    %440 = vector.shape_cast %439 : vector<1x18x4xbf16> to vector<18x4xbf16>
    %441 = vector.shape_cast %438 : vector<18x4xbf16> to vector<1x18x4xbf16>
    tpu.vector_store %arg24[%c4_286, %c0_287, %c0_288], %441 {strides = array<i32>} : memref<8x18x4xbf16, #tpu.memory_space<vmem>>, vector<1x18x4xbf16>,
    %442 = vector.extract_strided_slice %366 {offsets = [0, 20], sizes = [18, 4], strides = [1, 1]} : vector<18x96xf32> to vector<18x4xf32>
    %443 = arith.truncf %442 : vector<18x4xf32> to vector<18x4xbf16>
    %c5_289 = arith.constant 5 : index
    %c0_290 = arith.constant 0 : index
    %c0_291 = arith.constant 0 : index
    %444 = vector.load %arg22[%c5_289, %c0_290, %c0_291] : memref<8x18x4xbf16, #tpu.memory_space<vmem>>, vector<1x18x4xbf16>
    %445 = vector.shape_cast %444 : vector<1x18x4xbf16> to vector<18x4xbf16>
    %446 = vector.shape_cast %443 : vector<18x4xbf16> to vector<1x18x4xbf16>
    tpu.vector_store %arg22[%c5_289, %c0_290, %c0_291], %446 {strides = array<i32>} : memref<8x18x4xbf16, #tpu.memory_space<vmem>>, vector<1x18x4xbf16>,
    %447 = vector.extract_strided_slice %366 {offsets = [0, 52], sizes = [18, 4], strides = [1, 1]} : vector<18x96xf32> to vector<18x4xf32>
    %448 = arith.truncf %447 : vector<18x4xf32> to vector<18x4xbf16>
    %c5_292 = arith.constant 5 : index
    %c0_293 = arith.constant 0 : index
    %c0_294 = arith.constant 0 : index
    %449 = vector.load %arg23[%c5_292, %c0_293, %c0_294] : memref<8x18x4xbf16, #tpu.memory_space<vmem>>, vector<1x18x4xbf16>
    %450 = vector.shape_cast %449 : vector<1x18x4xbf16> to vector<18x4xbf16>
    %451 = vector.shape_cast %448 : vector<18x4xbf16> to vector<1x18x4xbf16>
    tpu.vector_store %arg23[%c5_292, %c0_293, %c0_294], %451 {strides = array<i32>} : memref<8x18x4xbf16, #tpu.memory_space<vmem>>, vector<1x18x4xbf16>,
    %452 = vector.extract_strided_slice %366 {offsets = [0, 84], sizes = [18, 4], strides = [1, 1]} : vector<18x96xf32> to vector<18x4xf32>
    %453 = arith.truncf %452 : vector<18x4xf32> to vector<18x4xbf16>
    %c5_295 = arith.constant 5 : index
    %c0_296 = arith.constant 0 : index
    %c0_297 = arith.constant 0 : index
    %454 = vector.load %arg24[%c5_295, %c0_296, %c0_297] : memref<8x18x4xbf16, #tpu.memory_space<vmem>>, vector<1x18x4xbf16>
    %455 = vector.shape_cast %454 : vector<1x18x4xbf16> to vector<18x4xbf16>
    %456 = vector.shape_cast %453 : vector<18x4xbf16> to vector<1x18x4xbf16>
    tpu.vector_store %arg24[%c5_295, %c0_296, %c0_297], %456 {strides = array<i32>} : memref<8x18x4xbf16, #tpu.memory_space<vmem>>, vector<1x18x4xbf16>,
    %457 = vector.extract_strided_slice %366 {offsets = [0, 24], sizes = [18, 4], strides = [1, 1]} : vector<18x96xf32> to vector<18x4xf32>
    %458 = arith.truncf %457 : vector<18x4xf32> to vector<18x4xbf16>
    %c6_298 = arith.constant 6 : index
    %c0_299 = arith.constant 0 : index
    %c0_300 = arith.constant 0 : index
    %459 = vector.load %arg22[%c6_298, %c0_299, %c0_300] : memref<8x18x4xbf16, #tpu.memory_space<vmem>>, vector<1x18x4xbf16>
    %460 = vector.shape_cast %459 : vector<1x18x4xbf16> to vector<18x4xbf16>
    %461 = vector.shape_cast %458 : vector<18x4xbf16> to vector<1x18x4xbf16>
    tpu.vector_store %arg22[%c6_298, %c0_299, %c0_300], %461 {strides = array<i32>} : memref<8x18x4xbf16, #tpu.memory_space<vmem>>, vector<1x18x4xbf16>,
    %462 = vector.extract_strided_slice %366 {offsets = [0, 56], sizes = [18, 4], strides = [1, 1]} : vector<18x96xf32> to vector<18x4xf32>
    %463 = arith.truncf %462 : vector<18x4xf32> to vector<18x4xbf16>
    %c6_301 = arith.constant 6 : index
    %c0_302 = arith.constant 0 : index
    %c0_303 = arith.constant 0 : index
    %464 = vector.load %arg23[%c6_301, %c0_302, %c0_303] : memref<8x18x4xbf16, #tpu.memory_space<vmem>>, vector<1x18x4xbf16>
    %465 = vector.shape_cast %464 : vector<1x18x4xbf16> to vector<18x4xbf16>
    %466 = vector.shape_cast %463 : vector<18x4xbf16> to vector<1x18x4xbf16>
    tpu.vector_store %arg23[%c6_301, %c0_302, %c0_303], %466 {strides = array<i32>} : memref<8x18x4xbf16, #tpu.memory_space<vmem>>, vector<1x18x4xbf16>,
    %467 = vector.extract_strided_slice %366 {offsets = [0, 88], sizes = [18, 4], strides = [1, 1]} : vector<18x96xf32> to vector<18x4xf32>
    %468 = arith.truncf %467 : vector<18x4xf32> to vector<18x4xbf16>
    %c6_304 = arith.constant 6 : index
    %c0_305 = arith.constant 0 : index
    %c0_306 = arith.constant 0 : index
    %469 = vector.load %arg24[%c6_304, %c0_305, %c0_306] : memref<8x18x4xbf16, #tpu.memory_space<vmem>>, vector<1x18x4xbf16>
    %470 = vector.shape_cast %469 : vector<1x18x4xbf16> to vector<18x4xbf16>
    %471 = vector.shape_cast %468 : vector<18x4xbf16> to vector<1x18x4xbf16>
    tpu.vector_store %arg24[%c6_304, %c0_305, %c0_306], %471 {strides = array<i32>} : memref<8x18x4xbf16, #tpu.memory_space<vmem>>, vector<1x18x4xbf16>,
    %472 = vector.extract_strided_slice %366 {offsets = [0, 28], sizes = [18, 4], strides = [1, 1]} : vector<18x96xf32> to vector<18x4xf32>
    %473 = arith.truncf %472 : vector<18x4xf32> to vector<18x4xbf16>
    %c7_307 = arith.constant 7 : index
    %c0_308 = arith.constant 0 : index
    %c0_309 = arith.constant 0 : index
    %474 = vector.load %arg22[%c7_307, %c0_308, %c0_309] : memref<8x18x4xbf16, #tpu.memory_space<vmem>>, vector<1x18x4xbf16>
    %475 = vector.shape_cast %474 : vector<1x18x4xbf16> to vector<18x4xbf16>
    %476 = vector.shape_cast %473 : vector<18x4xbf16> to vector<1x18x4xbf16>
    tpu.vector_store %arg22[%c7_307, %c0_308, %c0_309], %476 {strides = array<i32>} : memref<8x18x4xbf16, #tpu.memory_space<vmem>>, vector<1x18x4xbf16>,
    %477 = vector.extract_strided_slice %366 {offsets = [0, 60], sizes = [18, 4], strides = [1, 1]} : vector<18x96xf32> to vector<18x4xf32>
    %478 = arith.truncf %477 : vector<18x4xf32> to vector<18x4xbf16>
    %c7_310 = arith.constant 7 : index
    %c0_311 = arith.constant 0 : index
    %c0_312 = arith.constant 0 : index
    %479 = vector.load %arg23[%c7_310, %c0_311, %c0_312] : memref<8x18x4xbf16, #tpu.memory_space<vmem>>, vector<1x18x4xbf16>
    %480 = vector.shape_cast %479 : vector<1x18x4xbf16> to vector<18x4xbf16>
    %481 = vector.shape_cast %478 : vector<18x4xbf16> to vector<1x18x4xbf16>
    tpu.vector_store %arg23[%c7_310, %c0_311, %c0_312], %481 {strides = array<i32>} : memref<8x18x4xbf16, #tpu.memory_space<vmem>>, vector<1x18x4xbf16>,
    %482 = vector.extract_strided_slice %366 {offsets = [0, 92], sizes = [18, 4], strides = [1, 1]} : vector<18x96xf32> to vector<18x4xf32>
    %483 = arith.truncf %482 : vector<18x4xf32> to vector<18x4xbf16>
    %c7_313 = arith.constant 7 : index
    %c0_314 = arith.constant 0 : index
    %c0_315 = arith.constant 0 : index
    %484 = vector.load %arg24[%c7_313, %c0_314, %c0_315] : memref<8x18x4xbf16, #tpu.memory_space<vmem>>, vector<1x18x4xbf16>
    %485 = vector.shape_cast %484 : vector<1x18x4xbf16> to vector<18x4xbf16>
    %486 = vector.shape_cast %483 : vector<18x4xbf16> to vector<1x18x4xbf16>
    tpu.vector_store %arg24[%c7_313, %c0_314, %c0_315], %486 {strides = array<i32>} : memref<8x18x4xbf16, #tpu.memory_space<vmem>>, vector<1x18x4xbf16>,
    %c0_316 = arith.constant 0 : index
    %c0_317 = arith.constant 0 : index
    %c0_318 = arith.constant 0 : index
    %487 = vector.load %arg22[%c0_316, %c0_317, %c0_318] : memref<8x18x4xbf16, #tpu.memory_space<vmem>>, vector<8x18x4xbf16>
    %c0_319 = arith.constant 0 : index
    %c0_320 = arith.constant 0 : index
    %c0_321 = arith.constant 0 : index
    %488 = vector.load %arg23[%c0_319, %c0_320, %c0_321] : memref<8x18x4xbf16, #tpu.memory_space<vmem>>, vector<8x18x4xbf16>
    %c0_322 = arith.constant 0 : index
    %c0_323 = arith.constant 0 : index
    %c0_324 = arith.constant 0 : index
    %489 = vector.load %arg24[%c0_322, %c0_323, %c0_324] : memref<8x18x4xbf16, #tpu.memory_space<vmem>>, vector<8x18x4xbf16>
    %cst_325 = arith.constant dense<0.000000e+00> : vector<8x18x18xf32>
    %490 = tpu.matmul %487, %488, %cst_325 {dimension_numbers = #tpu.dot_dimension_numbers<[2], [2], [1], [1], [0, 0, 0, 1, 1, 1], [0], [0]>} : vector<8x18x4xbf16>, vector<8x18x4xbf16>, vector<8x18x18xf32> -> vector<8x18x18xf32>
    %cst_326 = arith.constant 5.000000e-01 : f32
    %491 = vector.broadcast %cst_326 : f32 to vector<8x18x18xf32>
    %492 = arith.mulf %490, %491 : vector<8x18x18xf32>
    %493 = arith.addf %492, %65 : vector<8x18x18xf32>
    %cst_327 = arith.constant dense<0xFF800000> : vector<8x18xf32>
    %494 = vector.multi_reduction <maximumf>, %493, %cst_327 [2] : vector<8x18x18xf32> to vector<8x18xf32>
    %495 = vector.shape_cast %494 : vector<8x18xf32> to vector<8x18x1xf32>
    %496 = vector.broadcast %495 : vector<8x18x1xf32> to vector<8x18x18xf32>
    %497 = arith.subf %493, %496 : vector<8x18x18xf32>
    %498 = math.exp %497 : vector<8x18x18xf32>
    %cst_328 = arith.constant dense<0.000000e+00> : vector<8x18xf32>
    %499 = vector.multi_reduction <add>, %498, %cst_328 [2] : vector<8x18x18xf32> to vector<8x18xf32>
    %500 = vector.shape_cast %499 : vector<8x18xf32> to vector<8x18x1xf32>
    %501 = tpu.reciprocal %500 {approx = true} : vector<8x18x1xf32> -> vector<8x18x1xf32>
    %502 = vector.broadcast %501 : vector<8x18x1xf32> to vector<8x18x18xf32>
    %503 = arith.mulf %498, %502 : vector<8x18x18xf32>
    %504 = arith.truncf %503 : vector<8x18x18xf32> to vector<8x18x18xbf16>
    %cst_329 = arith.constant dense<0.000000e+00> : vector<8x18x4xf32>
    %505 = tpu.matmul %504, %489, %cst_329 {dimension_numbers = #tpu.dot_dimension_numbers<[2], [1], [1], [2], [0, 0, 0, 1, 1, 2], [0], [0]>} : vector<8x18x18xbf16>, vector<8x18x4xbf16>, vector<8x18x4xf32> -> vector<8x18x4xf32>
    %506 = vector.extract_strided_slice %505 {offsets = [0, 0, 0], sizes = [1, 18, 4], strides = [1, 1, 1]} : vector<8x18x4xf32> to vector<1x18x4xf32>
    %507 = vector.shape_cast %506 : vector<1x18x4xf32> to vector<18x4xf32>
    %508 = arith.truncf %507 : vector<18x4xf32> to vector<18x4xbf16>
    %c0_330 = arith.constant 0 : index
    %c0_331 = arith.constant 0 : index
    %509 = vector.load %arg25[%c0_330, %c0_331] : memref<18x32xbf16, #tpu.memory_space<vmem>>, vector<18x4xbf16>
    tpu.vector_store %arg25[%c0_330, %c0_331], %508 {strides = array<i32>} : memref<18x32xbf16, #tpu.memory_space<vmem>>, vector<18x4xbf16>,
    %510 = vector.extract_strided_slice %505 {offsets = [1, 0, 0], sizes = [1, 18, 4], strides = [1, 1, 1]} : vector<8x18x4xf32> to vector<1x18x4xf32>
    %511 = vector.shape_cast %510 : vector<1x18x4xf32> to vector<18x4xf32>
    %512 = arith.truncf %511 : vector<18x4xf32> to vector<18x4xbf16>
    %c0_332 = arith.constant 0 : index
    %c4_333 = arith.constant 4 : index
    %513 = vector.load %arg25[%c0_332, %c4_333] : memref<18x32xbf16, #tpu.memory_space<vmem>>, vector<18x4xbf16>
    tpu.vector_store %arg25[%c0_332, %c4_333], %512 {strides = array<i32>} : memref<18x32xbf16, #tpu.memory_space<vmem>>, vector<18x4xbf16>,
    %514 = vector.extract_strided_slice %505 {offsets = [2, 0, 0], sizes = [1, 18, 4], strides = [1, 1, 1]} : vector<8x18x4xf32> to vector<1x18x4xf32>
    %515 = vector.shape_cast %514 : vector<1x18x4xf32> to vector<18x4xf32>
    %516 = arith.truncf %515 : vector<18x4xf32> to vector<18x4xbf16>
    %c0_334 = arith.constant 0 : index
    %c8_335 = arith.constant 8 : index
    %517 = vector.load %arg25[%c0_334, %c8_335] : memref<18x32xbf16, #tpu.memory_space<vmem>>, vector<18x4xbf16>
    tpu.vector_store %arg25[%c0_334, %c8_335], %516 {strides = array<i32>} : memref<18x32xbf16, #tpu.memory_space<vmem>>, vector<18x4xbf16>,
    %518 = vector.extract_strided_slice %505 {offsets = [3, 0, 0], sizes = [1, 18, 4], strides = [1, 1, 1]} : vector<8x18x4xf32> to vector<1x18x4xf32>
    %519 = vector.shape_cast %518 : vector<1x18x4xf32> to vector<18x4xf32>
    %520 = arith.truncf %519 : vector<18x4xf32> to vector<18x4xbf16>
    %c0_336 = arith.constant 0 : index
    %c12_337 = arith.constant 12 : index
    %521 = vector.load %arg25[%c0_336, %c12_337] : memref<18x32xbf16, #tpu.memory_space<vmem>>, vector<18x4xbf16>
    tpu.vector_store %arg25[%c0_336, %c12_337], %520 {strides = array<i32>} : memref<18x32xbf16, #tpu.memory_space<vmem>>, vector<18x4xbf16>,
    %522 = vector.extract_strided_slice %505 {offsets = [4, 0, 0], sizes = [1, 18, 4], strides = [1, 1, 1]} : vector<8x18x4xf32> to vector<1x18x4xf32>
    %523 = vector.shape_cast %522 : vector<1x18x4xf32> to vector<18x4xf32>
    %524 = arith.truncf %523 : vector<18x4xf32> to vector<18x4xbf16>
    %c0_338 = arith.constant 0 : index
    %c16_339 = arith.constant 16 : index
    %525 = vector.load %arg25[%c0_338, %c16_339] : memref<18x32xbf16, #tpu.memory_space<vmem>>, vector<18x4xbf16>
    tpu.vector_store %arg25[%c0_338, %c16_339], %524 {strides = array<i32>} : memref<18x32xbf16, #tpu.memory_space<vmem>>, vector<18x4xbf16>,
    %526 = vector.extract_strided_slice %505 {offsets = [5, 0, 0], sizes = [1, 18, 4], strides = [1, 1, 1]} : vector<8x18x4xf32> to vector<1x18x4xf32>
    %527 = vector.shape_cast %526 : vector<1x18x4xf32> to vector<18x4xf32>
    %528 = arith.truncf %527 : vector<18x4xf32> to vector<18x4xbf16>
    %c0_340 = arith.constant 0 : index
    %c20_341 = arith.constant 20 : index
    %529 = vector.load %arg25[%c0_340, %c20_341] : memref<18x32xbf16, #tpu.memory_space<vmem>>, vector<18x4xbf16>
    tpu.vector_store %arg25[%c0_340, %c20_341], %528 {strides = array<i32>} : memref<18x32xbf16, #tpu.memory_space<vmem>>, vector<18x4xbf16>,
    %530 = vector.extract_strided_slice %505 {offsets = [6, 0, 0], sizes = [1, 18, 4], strides = [1, 1, 1]} : vector<8x18x4xf32> to vector<1x18x4xf32>
    %531 = vector.shape_cast %530 : vector<1x18x4xf32> to vector<18x4xf32>
    %532 = arith.truncf %531 : vector<18x4xf32> to vector<18x4xbf16>
    %c0_342 = arith.constant 0 : index
    %c24_343 = arith.constant 24 : index
    %533 = vector.load %arg25[%c0_342, %c24_343] : memref<18x32xbf16, #tpu.memory_space<vmem>>, vector<18x4xbf16>
    tpu.vector_store %arg25[%c0_342, %c24_343], %532 {strides = array<i32>} : memref<18x32xbf16, #tpu.memory_space<vmem>>, vector<18x4xbf16>,
    %534 = vector.extract_strided_slice %505 {offsets = [7, 0, 0], sizes = [1, 18, 4], strides = [1, 1, 1]} : vector<8x18x4xf32> to vector<1x18x4xf32>
    %535 = vector.shape_cast %534 : vector<1x18x4xf32> to vector<18x4xf32>
    %536 = arith.truncf %535 : vector<18x4xf32> to vector<18x4xbf16>
    %c0_344 = arith.constant 0 : index
    %c28_345 = arith.constant 28 : index
    %537 = vector.load %arg25[%c0_344, %c28_345] : memref<18x32xbf16, #tpu.memory_space<vmem>>, vector<18x4xbf16>
    tpu.vector_store %arg25[%c0_344, %c28_345], %536 {strides = array<i32>} : memref<18x32xbf16, #tpu.memory_space<vmem>>, vector<18x4xbf16>,
    %c0_346 = arith.constant 0 : index
    %c0_347 = arith.constant 0 : index
    %538 = vector.load %arg25[%c0_346, %c0_347] : memref<18x32xbf16, #tpu.memory_space<vmem>>, vector<18x32xbf16>
    %c1_348 = arith.constant 1 : index
    %c0_349 = arith.constant 0 : index
    %c0_350 = arith.constant 0 : index
    %539 = vector.load %arg8[%c1_348, %c0_349, %c0_350] : memref<2x32x32xbf16, #tpu.memory_space<vmem>>, vector<1x32x32xbf16>
    %540 = vector.shape_cast %539 : vector<1x32x32xbf16> to vector<32x32xbf16>
    %cst_351 = arith.constant dense<0.000000e+00> : vector<18x32xf32>
    %541 = tpu.matmul %538, %540, %cst_351 {dimension_numbers = #tpu.dot_dimension_numbers<[1], [0], [0], [1], [0, 0, 1, 1], [], []>} : vector<18x32xbf16>, vector<32x32xbf16>, vector<18x32xf32> -> vector<18x32xf32>
    %c1_352 = arith.constant 1 : index
    %c0_353 = arith.constant 0 : index
    %c0_354 = arith.constant 0 : index
    %542 = vector.load %arg9[%c1_352, %c0_353, %c0_354] : memref<2x1x32xf32, #tpu.memory_space<vmem>>, vector<1x1x32xf32>
    %543 = vector.shape_cast %542 : vector<1x1x32xf32> to vector<1x32xf32>
    %544 = vector.broadcast %543 : vector<1x32xf32> to vector<18x32xf32>
    %545 = arith.addf %541, %544 : vector<18x32xf32>
    %546 = arith.addf %358, %545 : vector<18x32xf32>
    %c1_355 = arith.constant 1 : index
    %c0_356 = arith.constant 0 : index
    %c0_357 = arith.constant 0 : index
    %547 = vector.load %arg10[%c1_355, %c0_356, %c0_357] : memref<2x1x32xf32, #tpu.memory_space<vmem>>, vector<1x1x32xf32>
    %548 = vector.shape_cast %547 : vector<1x1x32xf32> to vector<1x32xf32>
    %c1_358 = arith.constant 1 : index
    %c0_359 = arith.constant 0 : index
    %c0_360 = arith.constant 0 : index
    %549 = vector.load %arg11[%c1_358, %c0_359, %c0_360] : memref<2x1x32xf32, #tpu.memory_space<vmem>>, vector<1x1x32xf32>
    %550 = vector.shape_cast %549 : vector<1x1x32xf32> to vector<1x32xf32>
    %cst_361 = arith.constant dense<0.000000e+00> : vector<18xf32>
    %551 = vector.multi_reduction <add>, %546, %cst_361 [1] : vector<18x32xf32> to vector<18xf32>
    %552 = vector.shape_cast %551 : vector<18xf32> to vector<18x1xf32>
    %cst_362 = arith.constant 3.200000e+01 : f32
    %553 = vector.broadcast %cst_362 : f32 to vector<18x1xf32>
    %554 = arith.divf %552, %553 : vector<18x1xf32>
    %555 = vector.broadcast %554 : vector<18x1xf32> to vector<18x32xf32>
    %556 = arith.subf %546, %555 : vector<18x32xf32>
    %557 = arith.mulf %556, %556 : vector<18x32xf32>
    %cst_363 = arith.constant dense<0.000000e+00> : vector<18xf32>
    %558 = vector.multi_reduction <add>, %557, %cst_363 [1] : vector<18x32xf32> to vector<18xf32>
    %559 = vector.shape_cast %558 : vector<18xf32> to vector<18x1xf32>
    %cst_364 = arith.constant 3.200000e+01 : f32
    %560 = vector.broadcast %cst_364 : f32 to vector<18x1xf32>
    %561 = arith.divf %559, %560 : vector<18x1xf32>
    %cst_365 = arith.constant 9.99999974E-6 : f32
    %562 = vector.broadcast %cst_365 : f32 to vector<18x1xf32>
    %563 = arith.addf %561, %562 : vector<18x1xf32>
    %564 = math.rsqrt %563 : vector<18x1xf32>
    %565 = vector.broadcast %564 : vector<18x1xf32> to vector<18x32xf32>
    %566 = arith.mulf %556, %565 : vector<18x32xf32>
    %567 = vector.broadcast %548 : vector<1x32xf32> to vector<18x32xf32>
    %568 = arith.mulf %566, %567 : vector<18x32xf32>
    %569 = vector.broadcast %550 : vector<1x32xf32> to vector<18x32xf32>
    %570 = arith.addf %568, %569 : vector<18x32xf32>
    %571 = arith.truncf %570 : vector<18x32xf32> to vector<18x32xbf16>
    %c1_366 = arith.constant 1 : index
    %c0_367 = arith.constant 0 : index
    %c0_368 = arith.constant 0 : index
    %572 = vector.load %arg12[%c1_366, %c0_367, %c0_368] : memref<2x32x128xbf16, #tpu.memory_space<vmem>>, vector<1x32x128xbf16>
    %573 = vector.shape_cast %572 : vector<1x32x128xbf16> to vector<32x128xbf16>
    %cst_369 = arith.constant dense<0.000000e+00> : vector<18x128xf32>
    %574 = tpu.matmul %571, %573, %cst_369 {dimension_numbers = #tpu.dot_dimension_numbers<[1], [0], [0], [1], [0, 0, 1, 1], [], []>} : vector<18x32xbf16>, vector<32x128xbf16>, vector<18x128xf32> -> vector<18x128xf32>
    %c1_370 = arith.constant 1 : index
    %c0_371 = arith.constant 0 : index
    %c0_372 = arith.constant 0 : index
    %575 = vector.load %arg13[%c1_370, %c0_371, %c0_372] : memref<2x1x128xf32, #tpu.memory_space<vmem>>, vector<1x1x128xf32>
    %576 = vector.shape_cast %575 : vector<1x1x128xf32> to vector<1x128xf32>
    %577 = vector.broadcast %576 : vector<1x128xf32> to vector<18x128xf32>
    %578 = arith.addf %574, %577 : vector<18x128xf32>
    %cst_373 = arith.constant 5.000000e-01 : f32
    %579 = vector.broadcast %cst_373 : f32 to vector<18x128xf32>
    %580 = arith.mulf %579, %578 : vector<18x128xf32>
    %cst_374 = arith.constant 0.707106769 : f32
    %581 = vector.broadcast %cst_374 : f32 to vector<18x128xf32>
    %582 = arith.mulf %578, %581 : vector<18x128xf32>
    %583 = math.absf %582 : vector<18x128xf32>
    %cst_375 = arith.constant 0.327591091 : f32
    %584 = vector.broadcast %cst_375 : f32 to vector<18x128xf32>
    %585 = arith.mulf %584, %583 : vector<18x128xf32>
    %cst_376 = arith.constant 1.000000e+00 : f32
    %586 = vector.broadcast %cst_376 : f32 to vector<18x128xf32>
    %587 = arith.addf %586, %585 : vector<18x128xf32>
    %cst_377 = arith.constant 1.000000e+00 : f32
    %588 = vector.broadcast %cst_377 : f32 to vector<18x128xf32>
    %589 = arith.divf %588, %587 : vector<18x128xf32>
    %cst_378 = arith.constant 1.06140542 : f32
    %590 = vector.broadcast %cst_378 : f32 to vector<18x128xf32>
    %591 = arith.mulf %590, %589 : vector<18x128xf32>
    %cst_379 = arith.constant -1.45315206 : f32
    %592 = vector.broadcast %cst_379 : f32 to vector<18x128xf32>
    %593 = arith.addf %591, %592 : vector<18x128xf32>
    %594 = arith.mulf %593, %589 : vector<18x128xf32>
    %cst_380 = arith.constant 1.42141378 : f32
    %595 = vector.broadcast %cst_380 : f32 to vector<18x128xf32>
    %596 = arith.addf %594, %595 : vector<18x128xf32>
    %597 = arith.mulf %596, %589 : vector<18x128xf32>
    %cst_381 = arith.constant -0.284496725 : f32
    %598 = vector.broadcast %cst_381 : f32 to vector<18x128xf32>
    %599 = arith.addf %597, %598 : vector<18x128xf32>
    %600 = arith.mulf %599, %589 : vector<18x128xf32>
    %cst_382 = arith.constant 0.254829586 : f32
    %601 = vector.broadcast %cst_382 : f32 to vector<18x128xf32>
    %602 = arith.addf %600, %601 : vector<18x128xf32>
    %603 = arith.mulf %602, %589 : vector<18x128xf32>
    %cst_383 = arith.constant 0.000000e+00 : f32
    %604 = vector.broadcast %cst_383 : f32 to vector<18x128xf32>
    %605 = arith.subf %604, %583 : vector<18x128xf32>
    %606 = arith.mulf %605, %583 : vector<18x128xf32>
    %607 = math.exp %606 : vector<18x128xf32>
    %608 = arith.mulf %603, %607 : vector<18x128xf32>
    %cst_384 = arith.constant 1.000000e+00 : f32
    %609 = vector.broadcast %cst_384 : f32 to vector<18x128xf32>
    %610 = arith.subf %609, %608 : vector<18x128xf32>
    %cst_385 = arith.constant 0.000000e+00 : f32
    %611 = vector.broadcast %cst_385 : f32 to vector<18x128xf32>
    %612 = arith.cmpf oge, %582, %611 : vector<18x128xf32>
    %cst_386 = arith.constant 0.000000e+00 : f32
    %613 = vector.broadcast %cst_386 : f32 to vector<18x128xf32>
    %614 = arith.subf %613, %610 : vector<18x128xf32>
    %615 = arith.select %612, %610, %614 : vector<18x128xi1>, vector<18x128xf32>
    %cst_387 = arith.constant 1.000000e+00 : f32
    %616 = vector.broadcast %cst_387 : f32 to vector<18x128xf32>
    %617 = arith.addf %616, %615 : vector<18x128xf32>
    %618 = arith.mulf %580, %617 : vector<18x128xf32>
    %619 = arith.truncf %618 : vector<18x128xf32> to vector<18x128xbf16>
    %c1_388 = arith.constant 1 : index
    %c0_389 = arith.constant 0 : index
    %c0_390 = arith.constant 0 : index
    %620 = vector.load %arg14[%c1_388, %c0_389, %c0_390] : memref<2x128x32xbf16, #tpu.memory_space<vmem>>, vector<1x128x32xbf16>
    %621 = vector.shape_cast %620 : vector<1x128x32xbf16> to vector<128x32xbf16>
    %cst_391 = arith.constant dense<0.000000e+00> : vector<18x32xf32>
    %622 = tpu.matmul %619, %621, %cst_391 {dimension_numbers = #tpu.dot_dimension_numbers<[1], [0], [0], [1], [0, 0, 1, 1], [], []>} : vector<18x128xbf16>, vector<128x32xbf16>, vector<18x32xf32> -> vector<18x32xf32>
    %c1_392 = arith.constant 1 : index
    %c0_393 = arith.constant 0 : index
    %c0_394 = arith.constant 0 : index
    %623 = vector.load %arg15[%c1_392, %c0_393, %c0_394] : memref<2x1x32xf32, #tpu.memory_space<vmem>>, vector<1x1x32xf32>
    %624 = vector.shape_cast %623 : vector<1x1x32xf32> to vector<1x32xf32>
    %625 = vector.broadcast %624 : vector<1x32xf32> to vector<18x32xf32>
    %626 = arith.addf %622, %625 : vector<18x32xf32>
    %627 = arith.addf %570, %626 : vector<18x32xf32>
    %c1_395 = arith.constant 1 : index
    %c0_396 = arith.constant 0 : index
    %c0_397 = arith.constant 0 : index
    %628 = vector.load %arg16[%c1_395, %c0_396, %c0_397] : memref<2x1x32xf32, #tpu.memory_space<vmem>>, vector<1x1x32xf32>
    %629 = vector.shape_cast %628 : vector<1x1x32xf32> to vector<1x32xf32>
    %c1_398 = arith.constant 1 : index
    %c0_399 = arith.constant 0 : index
    %c0_400 = arith.constant 0 : index
    %630 = vector.load %arg17[%c1_398, %c0_399, %c0_400] : memref<2x1x32xf32, #tpu.memory_space<vmem>>, vector<1x1x32xf32>
    %631 = vector.shape_cast %630 : vector<1x1x32xf32> to vector<1x32xf32>
    %cst_401 = arith.constant dense<0.000000e+00> : vector<18xf32>
    %632 = vector.multi_reduction <add>, %627, %cst_401 [1] : vector<18x32xf32> to vector<18xf32>
    %633 = vector.shape_cast %632 : vector<18xf32> to vector<18x1xf32>
    %cst_402 = arith.constant 3.200000e+01 : f32
    %634 = vector.broadcast %cst_402 : f32 to vector<18x1xf32>
    %635 = arith.divf %633, %634 : vector<18x1xf32>
    %636 = vector.broadcast %635 : vector<18x1xf32> to vector<18x32xf32>
    %637 = arith.subf %627, %636 : vector<18x32xf32>
    %638 = arith.mulf %637, %637 : vector<18x32xf32>
    %cst_403 = arith.constant dense<0.000000e+00> : vector<18xf32>
    %639 = vector.multi_reduction <add>, %638, %cst_403 [1] : vector<18x32xf32> to vector<18xf32>
    %640 = vector.shape_cast %639 : vector<18xf32> to vector<18x1xf32>
    %cst_404 = arith.constant 3.200000e+01 : f32
    %641 = vector.broadcast %cst_404 : f32 to vector<18x1xf32>
    %642 = arith.divf %640, %641 : vector<18x1xf32>
    %cst_405 = arith.constant 9.99999974E-6 : f32
    %643 = vector.broadcast %cst_405 : f32 to vector<18x1xf32>
    %644 = arith.addf %642, %643 : vector<18x1xf32>
    %645 = math.rsqrt %644 : vector<18x1xf32>
    %646 = vector.broadcast %645 : vector<18x1xf32> to vector<18x32xf32>
    %647 = arith.mulf %637, %646 : vector<18x32xf32>
    %648 = vector.broadcast %629 : vector<1x32xf32> to vector<18x32xf32>
    %649 = arith.mulf %647, %648 : vector<18x32xf32>
    %650 = vector.broadcast %631 : vector<1x32xf32> to vector<18x32xf32>
    %651 = arith.addf %649, %650 : vector<18x32xf32>
    %652 = arith.truncf %651 : vector<18x32xf32> to vector<18x32xbf16>
    %c0_406 = arith.constant 0 : index
    %c0_407 = arith.constant 0 : index
    %653 = vector.load %arg18[%c0_406, %c0_407] : memref<32x128xbf16, #tpu.memory_space<vmem>>, vector<32x128xbf16>
    %cst_408 = arith.constant dense<0.000000e+00> : vector<18x128xf32>
    %654 = tpu.matmul %652, %653, %cst_408 {dimension_numbers = #tpu.dot_dimension_numbers<[1], [0], [0], [1], [0, 0, 1, 1], [], []>} : vector<18x32xbf16>, vector<32x128xbf16>, vector<18x128xf32> -> vector<18x128xf32>
    %c0_409 = arith.constant 0 : index
    %c0_410 = arith.constant 0 : index
    %655 = vector.load %arg19[%c0_409, %c0_410] : memref<1x128xf32, #tpu.memory_space<vmem>>, vector<1x128xf32>
    %656 = vector.broadcast %655 : vector<1x128xf32> to vector<18x128xf32>
    %657 = arith.addf %654, %656 : vector<18x128xf32>
    %658 = vector.extract_strided_slice %657 {offsets = [0, 0], sizes = [1, 128], strides = [1, 1]} : vector<18x128xf32> to vector<1x128xf32>
    %c0_411 = arith.constant 0 : index
    %c0_412 = arith.constant 0 : index
    %659 = vector.load %arg20[%c0_411, %c0_412] : memref<2x128xf32, #tpu.memory_space<vmem>>, vector<1x128xf32>
    tpu.vector_store %arg20[%c0_411, %c0_412], %658 {strides = array<i32>} : memref<2x128xf32, #tpu.memory_space<vmem>>, vector<1x128xf32>,
    %660 = vector.extract_strided_slice %657 {offsets = [9, 0], sizes = [1, 128], strides = [1, 1]} : vector<18x128xf32> to vector<1x128xf32>
    %c1_413 = arith.constant 1 : index
    %c0_414 = arith.constant 0 : index
    %661 = vector.load %arg20[%c1_413, %c0_414] : memref<2x128xf32, #tpu.memory_space<vmem>>, vector<1x128xf32>
    tpu.vector_store %arg20[%c1_413, %c0_414], %660 {strides = array<i32>} : memref<2x128xf32, #tpu.memory_space<vmem>>, vector<1x128xf32>,
    return
  }
  func.func @transform_0(%arg0: i32) -> (i32, i32, i32, i32) {
    %c0_i32 = arith.constant 0 : i32
    %c0_i32_0 = arith.constant 0 : i32
    %c0_i32_1 = arith.constant 0 : i32
    %c0_i32_2 = arith.constant 0 : i32
    %c0_i32_3 = arith.constant 0 : i32
    return %c0_i32, %c0_i32_0, %c0_i32_1, %c0_i32_2 : i32, i32, i32, i32
  }
  func.func @transform_1(%arg0: i32) -> (i32, i32, i32) {
    %c0_i32 = arith.constant 0 : i32
    %c0_i32_0 = arith.constant 0 : i32
    %c0_i32_1 = arith.constant 0 : i32
    %c0_i32_2 = arith.constant 0 : i32
    return %c0_i32, %c0_i32_0, %c0_i32_1 : i32, i32, i32
  }
  func.func @transform_2(%arg0: i32) -> (i32, i32) {
    %c0_i32 = arith.constant 0 : i32
    %c0_i32_0 = arith.constant 0 : i32
    %c0_i32_1 = arith.constant 0 : i32
    return %c0_i32, %c0_i32_0 : i32, i32
  }
  func.func @transform_3(%arg0: i32) -> (i32, i32) {
    %c0_i32 = arith.constant 0 : i32
    %c0_i32_0 = arith.constant 0 : i32
    %c0_i32_1 = arith.constant 0 : i32
    return %c0_i32, %c0_i32_0 : i32, i32
  }
  func.func @transform_4(%arg0: i32) -> (i32, i32, i32) {
    %c0_i32 = arith.constant 0 : i32
    %c0_i32_0 = arith.constant 0 : i32
    %c0_i32_1 = arith.constant 0 : i32
    %c0_i32_2 = arith.constant 0 : i32
    return %c0_i32, %c0_i32_0, %c0_i32_1 : i32, i32, i32
  }
  func.func @transform_5(%arg0: i32) -> (i32, i32, i32) {
    %c0_i32 = arith.constant 0 : i32
    %c0_i32_0 = arith.constant 0 : i32
    %c0_i32_1 = arith.constant 0 : i32
    %c0_i32_2 = arith.constant 0 : i32
    return %c0_i32, %c0_i32_0, %c0_i32_1 : i32, i32, i32
  }
  func.func @transform_6(%arg0: i32) -> (i32, i32, i32) {
    %c0_i32 = arith.constant 0 : i32
    %c0_i32_0 = arith.constant 0 : i32
    %c0_i32_1 = arith.constant 0 : i32
    %c0_i32_2 = arith.constant 0 : i32
    return %c0_i32, %c0_i32_0, %c0_i32_1 : i32, i32, i32
  }
  func.func @transform_7(%arg0: i32) -> (i32, i32, i32) {
    %c0_i32 = arith.constant 0 : i32
    %c0_i32_0 = arith.constant 0 : i32
    %c0_i32_1 = arith.constant 0 : i32
    %c0_i32_2 = arith.constant 0 : i32
    return %c0_i32, %c0_i32_0, %c0_i32_1 : i32, i32, i32
  }
  func.func @transform_8(%arg0: i32) -> (i32, i32, i32) {
    %c0_i32 = arith.constant 0 : i32
    %c0_i32_0 = arith.constant 0 : i32
    %c0_i32_1 = arith.constant 0 : i32
    %c0_i32_2 = arith.constant 0 : i32
    return %c0_i32, %c0_i32_0, %c0_i32_1 : i32, i32, i32
  }
  func.func @transform_9(%arg0: i32) -> (i32, i32, i32) {
    %c0_i32 = arith.constant 0 : i32
    %c0_i32_0 = arith.constant 0 : i32
    %c0_i32_1 = arith.constant 0 : i32
    %c0_i32_2 = arith.constant 0 : i32
    return %c0_i32, %c0_i32_0, %c0_i32_1 : i32, i32, i32
  }
  func.func @transform_10(%arg0: i32) -> (i32, i32, i32) {
    %c0_i32 = arith.constant 0 : i32
    %c0_i32_0 = arith.constant 0 : i32
    %c0_i32_1 = arith.constant 0 : i32
    %c0_i32_2 = arith.constant 0 : i32
    return %c0_i32, %c0_i32_0, %c0_i32_1 : i32, i32, i32
  }
  func.func @transform_11(%arg0: i32) -> (i32, i32, i32) {
    %c0_i32 = arith.constant 0 : i32
    %c0_i32_0 = arith.constant 0 : i32
    %c0_i32_1 = arith.constant 0 : i32
    %c0_i32_2 = arith.constant 0 : i32
    return %c0_i32, %c0_i32_0, %c0_i32_1 : i32, i32, i32
  }
  func.func @transform_12(%arg0: i32) -> (i32, i32, i32) {
    %c0_i32 = arith.constant 0 : i32
    %c0_i32_0 = arith.constant 0 : i32
    %c0_i32_1 = arith.constant 0 : i32
    %c0_i32_2 = arith.constant 0 : i32
    return %c0_i32, %c0_i32_0, %c0_i32_1 : i32, i32, i32
  }
  func.func @transform_13(%arg0: i32) -> (i32, i32, i32) {
    %c0_i32 = arith.constant 0 : i32
    %c0_i32_0 = arith.constant 0 : i32
    %c0_i32_1 = arith.constant 0 : i32
    %c0_i32_2 = arith.constant 0 : i32
    return %c0_i32, %c0_i32_0, %c0_i32_1 : i32, i32, i32
  }
  func.func @transform_14(%arg0: i32) -> (i32, i32, i32) {
    %c0_i32 = arith.constant 0 : i32
    %c0_i32_0 = arith.constant 0 : i32
    %c0_i32_1 = arith.constant 0 : i32
    %c0_i32_2 = arith.constant 0 : i32
    return %c0_i32, %c0_i32_0, %c0_i32_1 : i32, i32, i32
  }
  func.func @transform_15(%arg0: i32) -> (i32, i32, i32) {
    %c0_i32 = arith.constant 0 : i32
    %c0_i32_0 = arith.constant 0 : i32
    %c0_i32_1 = arith.constant 0 : i32
    %c0_i32_2 = arith.constant 0 : i32
    return %c0_i32, %c0_i32_0, %c0_i32_1 : i32, i32, i32
  }
  func.func @transform_16(%arg0: i32) -> (i32, i32, i32) {
    %c0_i32 = arith.constant 0 : i32
    %c0_i32_0 = arith.constant 0 : i32
    %c0_i32_1 = arith.constant 0 : i32
    %c0_i32_2 = arith.constant 0 : i32
    return %c0_i32, %c0_i32_0, %c0_i32_1 : i32, i32, i32
  }
  func.func @transform_17(%arg0: i32) -> (i32, i32) {
    %c0_i32 = arith.constant 0 : i32
    %c0_i32_0 = arith.constant 0 : i32
    %c0_i32_1 = arith.constant 0 : i32
    return %c0_i32, %c0_i32_0 : i32, i32
  }
  func.func @transform_18(%arg0: i32) -> (i32, i32) {
    %c0_i32 = arith.constant 0 : i32
    %c0_i32_0 = arith.constant 0 : i32
    %c0_i32_1 = arith.constant 0 : i32
    return %c0_i32, %c0_i32_0 : i32, i32
  }
  func.func @transform_19(%arg0: i32) -> (i32, i32) {
    %c0_i32 = arith.constant 0 : i32
    %c0_i32_0 = arith.constant 0 : i32
    %c0_i32_1 = arith.constant 0 : i32
    return %c0_i32, %c0_i32_0 : i32, i32
  }
}

</mosaic_0001>

<bundles_post_ra>
// kernel: _lambda_.1
= control target key start
LH: loop header
LB: loop body
LE: loop exit
PB: predicated region body
PF: predicated region fallthrough
CT: control target
= control target key end

     0   :  { %s9105_s0 = inlined_call_operand.vmem [shape: f32[2,4,8,4], index: 0, kind: input, shape index: {}]   ;;  %s9106_s1 = inlined_call_operand.vmem [shape: bf16[4,4,32], index: 1, kind: input, shape index: {}]   ;;  %s9107_s2 = inlined_call_operand.vmem [shape: f32[1,32], index: 2, kind: input, shape index: {}]   ;;  %s9108_s3 = inlined_call_operand.vmem [shape: f32[8,32], index: 3, kind: input, shape index: {}]   ;;  %s9109_s4 = inlined_call_operand.vmem [shape: f32[8,18,18], index: 4, kind: input, shape index: {}]   ;;  %s9110_s5 = inlined_call_operand.vmem [shape: bf16[2,32,96], index: 5, kind: input, shape index: {}]   ;;  %s9111_s6 = inlined_call_operand.vmem [shape: f32[2,1,96], index: 6, kind: input, shape index: {}]   ;;  %s9112_s7 = inlined_call_operand.vmem [shape: bf16[2,32,32], index: 7, kind: input, shape index: {}]   ;;  %s9113_s8 = inlined_call_operand.vmem [shape: f32[2,1,32], index: 8, kind: input, shape index: {}, may-alias: {8,10,14,16}]   ;;  %s9114_s9 = inlined_call_operand.vmem [shape: f32[2,1,32], index: 9, kind: input, shape index: {}, may-alias: {9,15}]   ;;  %s9115_s10 = inlined_call_operand.vmem [shape: f32[2,1,32], index: 10, kind: input, shape index: {}, may-alias: {8,10,14,16}]   ;;  %s9116_s11 = inlined_call_operand.vmem [shape: bf16[2,32,128], index: 11, kind: input, shape index: {}]   ;;  %s9117_s12 = inlined_call_operand.vmem [shape: f32[2,1,128], index: 12, kind: input, shape index: {}]   ;;  %s9118_s13 = inlined_call_operand.vmem [shape: bf16[2,128,32], index: 13, kind: input, shape index: {}]   ;;  %s9119_s14 = inlined_call_operand.vmem [shape: f32[2,1,32], index: 14, kind: input, shape index: {}, may-alias: {8,10,14,16}]   ;;  %s9120_s15 = inlined_call_operand.vmem [shape: f32[2,1,32], index: 15, kind: input, shape index: {}, may-alias: {9,15}]   ;;  %s9121_s16 = inlined_call_operand.vmem [shape: f32[2,1,32], index: 16, kind: input, shape index: {}, may-alias: {8,10,14,16}]   ;;  %s9122_s17 = inlined_call_operand.vmem [shape: bf16[32,128], index: 17, kind: input, shape index: {}]   ;;  %s9123_s18 = inlined_call_operand.vmem [shape: f32[1,128], index: 18, kind: input, shape index: {}]   ;;  %s9124_s19 = inlined_call_operand.hbm [shape: f32[2,128], index: 19, kind: output, shape index: {}]  }
   0x1   :  { %9183 = sst [smem:[#allocation10_spill]] %s9105_s0 }
   0x2   :  { %9184 = sst [smem:[#allocation11_spill]] %s9106_s1 }
   0x3   :  { %9185 = sst [smem:[#allocation12_spill]] %s9107_s2 }
   0x4   :  { %9186 = sst [smem:[#allocation13_spill]] %s9108_s3 }
   0x5   :  { %s9187_s20 = sld [smem:[#allocation11_spill]]  ;;  %vm76_vm0 = vcmask 1041408   ;;  %s9188_s22 = sld [smem:[#allocation10_spill]]  ;;  %v7283_v2 = vmov 0.0   ;;  %vm7284_vm1 = vmmov 0   ;;  %vm72_vm2 = vcmask 31744  }
   0x6   :  { %6381 = vmatprep.subr.bf16.mxu1 %v7283_v2  ;;  %6383 = vmatprep.mubr.msk.bf16.mxu1 %vm7284_vm1, %v7283_v2 }
   0x7   :  { %6393 = vmatprep.subr.bf16.mxu0 %v7283_v2  ;;  %6395 = vmatprep.mubr.msk.bf16.mxu0 %vm7284_vm1, %v7283_v2 }
   0xb   :  { %v5800_v0 = vld [vmem:[%s9187_s20 + $0x2] sm:$0x3]  ;;  %v5799_v1 = vld [vmem:[%s9188_s22 + $0x8] sm:$0xff]  ;;  %v66_v5 = vld [vmem:[%s9187_s20] sm:$0x3] }
   0xc   :  { %v78_v3 = vsel %vm76_vm0, %v5800_v0, 0  ;;  %v69_v4 = vpack.c.bf16 %v5799_v1, %v5799_v1  ;;  %v5804_v6 = vld [vmem:[%s9187_s20 + $0x4] sm:$0x3]  ;;  %v5807_v8 = vld [vmem:[%s9187_s20 + $0x6] sm:$0x3]  ;;  %v5803_v9 = vld [vmem:[%s9188_s22 + $0x10] sm:$0xff] }
   0xd   :  { %6382 = vmatpush3.bf16.msra.mxu1 %v78_v3  ;;  %v175_v7 = vsel %vm76_vm0, %v5804_v6, 0  ;;  %v124_v10 = vsel %vm76_vm0, %v66_v5, 0  ;;  %v168_v11 = vpack.c.bf16 %v5803_v9, %v5803_v9  ;;  %v5811_v12 = vld [vmem:[%s9187_s20 + $0x2] sm:$0x3]  ;;  %v280_v13 = vld [vmem:[%s9187_s20] sm:$0x3] }
   0xe   :  { %6387 = vmatprep.subr.bf16.mxu1 %v7283_v2  ;;  %6394 = vmatpush3.bf16.msra.mxu0 %v175_v7  ;;  %v5815_v14 = vld [vmem:[%s9187_s20 + $0x4] sm:$0x3]  ;;  %v227_v16 = vsel %vm76_vm0, %v5807_v8, 0  ;;  %v289_v17 = vsel %vm76_vm0, %v5811_v12, 0  ;;  %v335_v18 = vsel %vm76_vm0, %v280_v13, 0  ;;  %v5810_v19 = vld [vmem:[%s9188_s22 + $0x28] sm:$0xff] }
   0xf   :  { %6405 = vmatprep.subr.bf16.mxu0 %v7283_v2  ;;  %v64_v15 = vld [vmem:[%s9188_s22] sm:$0xff]  ;;  %v385_v20 = vsel %vm76_vm0, %v5815_v14, 0  ;;  %v283_v22 = vpack.c.bf16 %v5810_v19, %v5810_v19  ;;  %v5806_v23 = vld [vmem:[%s9188_s22 + $0x18] sm:$0xff]  ;;  %v5814_v24 = vld [vmem:[%s9188_s22 + $0x30] sm:$0xff] }
  0x10   :  { %6384 = vmatmul.mubr.msk.bf16.vlgmr.msra.gmra.mrb[0].mxu1 %vm72_vm2, %v69_v4  ;;  %v65_v21 = vpack.c.bf16 %v64_v15, %v64_v15  ;;  %v220_v25 = vpack.c.bf16 %v5806_v23, %v5806_v23  ;;  %v379_v26 = vpack.c.bf16 %v5814_v24, %v5814_v24  ;;  %v5809_v27 = vld [vmem:[%s9188_s22 + $0x20] sm:$0xff] }
  0x11   :  { %6388 = vmatpush3.bf16.msra.mxu1 %v124_v10  ;;  %6389 = vmatprep.mubr.msk.bf16.mxu1 %vm7284_vm1, %v7283_v2  ;;  %v5818_v28 = vld [vmem:[%s9187_s20 + $0x6] sm:$0x3]  ;;  %v279_v29 = vpack.c.bf16 %v5809_v27, %v5809_v27 }
  0x12   :  { %6399 = vmatprep.subr.bf16.mxu1 %v7283_v2  ;;  %6396 = vmatmul.mubr.msk.bf16.vlgmr.msra.gmra.mrb[0].mxu0 %vm72_vm2, %v168_v11 }
  0x13   :  { %6406 = vmatpush3.bf16.msra.mxu0 %v289_v17  ;;  %6407 = vmatprep.mubr.msk.bf16.mxu0 %vm7284_vm1, %v7283_v2 }
  0x14   :  { %6417 = vmatprep.subr.bf16.mxu0 %v7283_v2 }
  0x18   :  { %6390 = vmatmul.mubr.msk.bf16.vlgmr.msra.gmra.mrb[4].mxu1 %vm72_vm2, %v65_v21 }
  0x19   :  { %6400 = vmatpush3.bf16.msra.mxu1 %v227_v16  ;;  %6401 = vmatprep.mubr.msk.bf16.mxu1 %vm7284_vm1, %v7283_v2 }
  0x1a   :  { %6411 = vmatprep.subr.bf16.mxu1 %v7283_v2  ;;  %6408 = vmatmul.mubr.msk.bf16.vlgmr.msra.gmra.mrb[4].mxu0 %vm72_vm2, %v283_v22 }
  0x1b   :  { %6418 = vmatpush3.bf16.msra.mxu0 %v385_v20  ;;  %6419 = vmatprep.mubr.msk.bf16.mxu0 %vm7284_vm1, %v7283_v2 }
  0x20   :  { %6402 = vmatmul.mubr.msk.bf16.vlgmr.msra.gmra.mrb[8].mxu1 %vm72_vm2, %v220_v25 }
  0x21   :  { %6412 = vmatpush3.bf16.msra.mxu1 %v335_v18  ;;  %6413 = vmatprep.mubr.msk.bf16.mxu1 %vm7284_vm1, %v7283_v2 }
  0x22   :  { %6423 = vmatprep.subr.bf16.mxu1 %v7283_v2  ;;  %6420 = vmatmul.mubr.msk.bf16.vlgmr.msra.gmra.mrb[8].mxu0 %vm72_vm2, %v379_v26 }
  0x23   :  { %24 = vsyncpa [#allocation8], 0  ;;  %v436_v30 = vsel %vm76_vm0, %v5818_v28, 0  ;;  %v5817_v31 = vld [vmem:[%s9188_s22 + $0x38] sm:$0xff]  ;;  %s9189_s25 = sld [smem:[#allocation12_spill]]  ;;  %vm271_vm3 = vcmask 253952  }
  0x24   :  { %v430_v32 = vpack.c.bf16 %v5817_v31, %v5817_v31  ;;  %v6862_v35 = vld [vmem:[%s9110_s5] sm:$0xff]   ;;  %v6863_v36 = vld [vmem:[%s9110_s5 + $0x8] sm:$0xff]   ;;  %s9190_s21 = sld [smem:[#allocation13_spill]]  ;;  %vm275_vm4 = vcmask 261120   ;;  %vm606_vm5 = vcmask 24576   ;;  %vm603_vm6 = vcmask 27648  }
  0x25   :  { %6429 = vmatprep.subr.bf16.mxu0 %v6862_v35  ;;  %v5820_v19 = vld [vmem:[%s9111_s6] ss:$0 sm:$0xff]  ;;  %s7285_s23 = smov 92   ;;  %s7286_s20 = smov 96   ;;  %vm1930_vm7 = vcmask 1040384   ;;  %vm1640_vm8 = vcmask 140288  }
  0x26   :  { %6430 = vmatpush3.bf16.msra.mxu0 %v6862_v35  ;;  %s7287_s24 = smov 88   ;;  %s7289_s3 = smov 124   ;;  %vm1633_vm9 = vcmask 146432   ;;  %vm2482_vm10 = vcmask 57376   ;;  %vm2479_vm11 = vcmask 60448   ;;  %vm2506_vm12 = vcmask 90176  }
  0x27   :  { %6431 = vmatprep.subr.bf16.mxu0 %v6863_v36  ;;  %s7290_s26 = smov 80   ;;  %s7291_s27 = smov 84   ;;  %vm9164_vm13 = vcmask 122976   ;;  %vm9167_vm14 = vcmask 93248   ;;  %vm9165_vm15 = vcmask 126048   ;;  %vm9166_vm0 = vcmask 155776  }
  0x28   :  { %6414 = vmatmul.mubr.msk.bf16.vlgmr.msra.gmra.mrb[12].mxu1 %vm72_vm2, %v279_v29  ;;  %s9178_s28 = smov 116   ;;  %s9140_s29 = smov 76  }
  0x29   :  { %6424 = vmatpush3.bf16.msra.mxu1 %v436_v30  ;;  %6425 = vmatprep.mubr.msk.bf16.mxu1 %vm7284_vm1, %v7283_v2  ;;  %v270_v33 = vld [vmem:[%s9189_s25] sm:$0x1]  ;;  %s9136_s0 = smov 112   ;;  %s9128_s22 = smov 72   ;;  %vm2551_vm1 = vcmask 158848  }
  0x2a   :  { %272 = vst.msk [vmem:[#allocation2] sm:$0x1] %vm271_vm3, %v270_v33  ;;  %v479_v34 = vld [vmem:[%s9189_s25] sm:$0x1]  ;;  %6432 = vmatpush3.bf16.msra.mxu0 %v6863_v36  ;;  %s7288_s25 = smov 120   ;;  %s9132_s30 = smov 108  }
  0x2b   :  { %480 = vst.msk [vmem:[#allocation2 + $0x9] sm:$0x1] %vm271_vm3, %v479_v34  ;;  %v273_v56 = vld [vmem:[%s9190_s21] sm:$0xff]  ;;  %s9130_s21 = smov 68   ;;  %s9134_s1 = smov 104   ;;  %vm9168_vm3 = vcmask 188576  }
  0x2c   :  { %s9138_s2 = smov 100  }
  0x30   :  { %6426 = vmatmul.mubr.msk.bf16.vlgmr.msra.gmra.mrb[16].mxu1 %vm72_vm2, %v430_v32 }
  0xe3   :  { %v114_v37 = vpop.f32.mrb[0].mxu1 }
  0xe4   :  { %v6385_v38 = vpop.f32.mrb[1].mxu1 }
  0xe5   :  { %v117_v39 = vpop.f32.mrb[2].mxu1  ;;  %v211_v40 = vpop.f32.mrb[0].mxu0 }
  0xe6   :  { %v6386_v41 = vpop.f32.mrb[3].mxu1  ;;  %v6397_v42 = vpop.f32.mrb[1].mxu0 }
  0xe7   :  { %v214_v43 = vpop.f32.mrb[2].mxu0 }
  0xe8   :  { %v6398_v44 = vpop.f32.mrb[3].mxu0 }
  0xeb   :  { %v160_v45 = vpop.f32.mrb[4].mxu1 }
  0xec   :  { %v161_v46 = vadd.f32 %v160_v45, %v114_v37  ;;  %v6391_v47 = vpop.f32.mrb[5].mxu1 }
  0xed   :  { %v163_v48 = vpop.f32.mrb[6].mxu1  ;;  %v325_v49 = vpop.f32.mrb[4].mxu0 }
  0xee   :  { %v217_v50 = vadd.f32 %v211_v40, %v161_v46  ;;  %v6392_v51 = vpop.f32.mrb[7].mxu1  ;;  %v6409_v52 = vpop.f32.mrb[5].mxu0 }
  0xef   :  { %v328_v53 = vpop.f32.mrb[6].mxu0 }
  0xf0   :  { %v6410_v54 = vpop.f32.mrb[7].mxu0 }
  0xf3   :  { %v263_v55 = vpop.f32.mrb[8].mxu1 }
  0xf4   :  { %v269_v57 = vadd.f32 %v263_v55, %v217_v50  ;;  %v6403_v58 = vpop.f32.mrb[9].mxu1 }
  0xf5   :  { %v266_v59 = vpop.f32.mrb[10].mxu1  ;;  %v421_v60 = vpop.f32.mrb[8].mxu0 }
  0xf6   :  { %v274_v61 = vadd.f32 %v273_v56, %v269_v57  ;;  %v6404_v62 = vpop.f32.mrb[11].mxu1  ;;  %v6421_v63 = vpop.f32.mrb[9].mxu0 }
  0xf7   :  { %v424_v0 = vpop.f32.mrb[10].mxu0 }
  0xf8   :  { %276 = vst.msk [vmem:[#allocation2 + $0x1] sm:$0xff] %vm275_vm4, %v274_v61  ;;  %v6422_v1 = vpop.f32.mrb[11].mxu0 }
  0xfb   :  { %v371_v2 = vpop.f32.mrb[12].mxu1 }
  0xfc   :  { %v372_v3 = vadd.f32 %v371_v2, %v325_v49  ;;  %v6415_v4 = vpop.f32.mrb[13].mxu1 }
  0xfd   :  { %v374_v5 = vpop.f32.mrb[14].mxu1 }
  0xfe   :  { %v427_v6 = vadd.f32 %v421_v60, %v372_v3  ;;  %v6416_v7 = vpop.f32.mrb[15].mxu1 }
  0xff   :  { %v484_v14 = vld [vmem:[#allocation2] sm:$0xff] }
 0x103   :  { %v472_v8 = vpop.f32.mrb[16].mxu1 }
 0x104   :  { %v478_v9 = vadd.f32 %v472_v8, %v427_v6  ;;  %v6427_v10 = vpop.f32.mrb[17].mxu1 }
 0x105   :  { %v475_v11 = vpop.f32.mrb[18].mxu1 }
 0x106   :  { %v482_v12 = vadd.f32 %v478_v9, %v273_v56  ;;  %v6428_v13 = vpop.f32.mrb[19].mxu1 }
 0x108   :  { %483 = vst.msk [vmem:[#allocation2 + $0xa] sm:$0xff] %vm275_vm4, %v482_v12 }
 0x10f   :  { %v485_v15 = vld [vmem:[#allocation2 + $0x8] sm:$0xff]  ;;  %v486_v16 = vld [vmem:[#allocation2 + $0x10] sm:$0x3] }
 0x110   :  { %v511_v17 = vpack.c.bf16 %v485_v15, %v484_v14  ;;  %v512_v18 = vpack.c.bf16 %v486_v16, %v486_v16 }
 0x112   :  { %6433 = vmatprep.mubr.msk.bf16.mxu0 %vm275_vm4, %v511_v17 }
 0x113   :  { %6434 = vmatmul.mubr.msk.bf16.vlgmr.msra.gmra.mrb[12].mxu0 %vm275_vm4, %v512_v18 }
 0x1e6   :  { %v6435_v20 = vpop.f32.mrb[12].mxu0 }
 0x1e7   :  { %v585_v21 = vadd.f32 %v6435_v20, %v5820_v19  ;;  %v576_v22 = vpop.f32.mrb[13].mxu0 }
 0x1e8   :  { %v577_v23 = vadd.f32 %v5820_v19, %v576_v22  ;;  %v6436_v24 = vpop.f32.mrb[14].mxu0 }
 0x1e9   :  { %v7510_v25 = vpack.c.bf16 %v585_v21, %v585_v21  ;;  %v579_v26 = vpop.f32.mrb[15].mxu0 }
 0x1ea   :  { %v7512_v27 = vpack.c.bf16 %v577_v23, %v577_v23  ;;  %v580_v28 = vadd.f32 %v5820_v19, %v579_v26 }
 0x1eb   :  { %649 = vrot.lane.b32.xlu1 %v7510_v25, %s7285_s23  ;;  %612 = vrot.lane.b32.xlu0 %v7510_v25, %s7286_s20  ;;  %607 = vst.msk [vmem:[#allocation3 + $0x8] sm:$0x1] %vm606_vm5, %v7510_v25 }
 0x1ec   :  { %v7520_v29 = vpack.c.bf16 %v580_v28, %v580_v28  ;;  %604 = vst.msk [vmem:[#allocation3] sm:$0xf] %vm603_vm6, %v7512_v27 }
 0x1ee   :  { %605 = vst.msk [vmem:[#allocation3 + $0x4] sm:$0xf] %vm603_vm6, %v7520_v29 }
 0x1ef   :  { %645 = vrot.lane.b32.xlu1 %v7512_v27, %s7285_s23  ;;  %608 = vrot.lane.b32.xlu0 %v7512_v27, %s7286_s20 }
 0x1f2   :  { %v6871_v63 = vld [vmem:[#allocation3 + $0x8] ss:$0 sps:$4 sm:$0x11]  }
 0x1f3   :  { %688 = vrot.lane.b32.xlu1 %v7510_v25, %s7287_s24  ;;  %684 = vrot.lane.b32.xlu0 %v7512_v27, %s7287_s24 }
 0x1f5   :  { %v6864_v30 = vld [vmem:[#allocation3] sm:$0xff]  }
 0x1f6   :  { %6441 = vmatprep.mubr.msk.bf16.mxu1 %vm72_vm2, %v6864_v30 }
 0x1f7   :  { %671 = vrot.lane.b32.xlu1 %v7512_v27, %s7288_s25  ;;  %632 = vrot.lane.b32.xlu0 %v7512_v27, %s7289_s3 }
 0x1fb   :  { %762 = vrot.lane.b32.xlu1 %v7512_v27, %s7290_s26  ;;  %723 = vrot.lane.b32.xlu0 %v7512_v27, %s7291_s27 }
 0x1ff   :  { %647 = vrot.lane.b32.xlu1 %v7520_v29, %s7285_s23  ;;  %610 = vrot.lane.b32.xlu0 %v7520_v29, %s7286_s20 }
 0x203   :  { %675 = vrot.lane.b32.xlu1 %v7510_v25, %s7288_s25  ;;  %636 = vrot.lane.b32.xlu0 %v7510_v25, %s7289_s3 }
 0x207   :  { %686 = vrot.lane.b32.xlu1 %v7520_v29, %s7287_s24  ;;  %727 = vrot.lane.b32.xlu0 %v7510_v25, %s7291_s27 }
 0x20b   :  { %634 = vrot.lane.b32.xlu1 %v7520_v29, %s7289_s3  ;;  %710 = vrot.lane.b32.xlu0 %v7512_v27, %s9178_s28 }
 0x20f   :  { %725 = vrot.lane.b32.xlu1 %v7520_v29, %s7291_s27  ;;  %801 = vrot.lane.b32.xlu0 %v7512_v27, %s9140_s29 }
 0x213   :  { %766 = vrot.lane.b32.xlu1 %v7510_v25, %s7290_s26  ;;  %714 = vrot.lane.b32.xlu0 %v7510_v25, %s9178_s28 }
 0x217   :  { %749 = vrot.lane.b32.xlu1 %v7512_v27, %s9136_s0  ;;  %805 = vrot.lane.b32.xlu0 %v7510_v25, %s9140_s29 }
 0x21b   :  { %712 = vrot.lane.b32.xlu1 %v7520_v29, %s9178_s28  ;;  %673 = vrot.lane.b32.xlu0 %v7520_v29, %s7288_s25  ;;  %s9200_s28 = smov 60  }
 0x21f   :  { %803 = vrot.lane.b32.xlu1 %v7520_v29, %s9140_s29  ;;  %764 = vrot.lane.b32.xlu0 %v7520_v29, %s7290_s26  ;;  %s9142_s29 = smov 44  }
 0x223   :  { %840 = vrot.lane.b32.xlu1 %v7512_v27, %s9128_s22  ;;  %788 = vrot.lane.b32.xlu0 %v7512_v27, %s9132_s30 }
 0x227   :  { %753 = vrot.lane.b32.xlu1 %v7510_v25, %s9136_s0  ;;  %879 = vrot.lane.b32.xlu0 %v7512_v27, %s9130_s21 }
 0x22b   :  { %790 = vrot.lane.b32.xlu1 %v7520_v29, %s9132_s30  ;;  %751 = vrot.lane.b32.xlu0 %v7520_v29, %s9136_s0  ;;  %s9146_s0 = smov 52  }
 0x22f   :  { %881 = vrot.lane.b32.xlu1 %v7520_v29, %s9130_s21  ;;  %842 = vrot.lane.b32.xlu0 %v7520_v29, %s9128_s22 }
 0x233   :  { %844 = vrot.lane.b32.xlu1 %v7510_v25, %s9128_s22  ;;  %792 = vrot.lane.b32.xlu0 %v7510_v25, %s9132_s30  ;;  %s9150_s22 = smov 60   ;;  %s9148_s30 = smov 56  }
 0x237   :  { %827 = vrot.lane.b32.xlu1 %v7512_v27, %s9134_s1  ;;  %883 = vrot.lane.b32.xlu0 %v7510_v25, %s9130_s21  ;;  %s9152_s21 = smov 64  }
 0x23b   :  { %831 = vrot.lane.b32.xlu1 %v7510_v25, %s9134_s1  ;;  %866 = vrot.lane.b32.xlu0 %v7512_v27, %s9138_s2 }
 0x23f   :  { %868 = vrot.lane.b32.xlu1 %v7520_v29, %s9138_s2  ;;  %829 = vrot.lane.b32.xlu0 %v7520_v29, %s9134_s1  ;;  %s9144_s1 = smov 48  }
 0x243   :  { %658 = vrot.lane.b32.xlu1 %v7512_v27, %s9150_s22  ;;  %870 = vrot.lane.b32.xlu0 %v7510_v25, %s9138_s2  ;;  %s9176_s2 = smov 40  }
 0x247   :  { %624 = vrot.lane.b32.xlu1 %v7510_v25, %s9152_s21  ;;  %620 = vrot.lane.b32.xlu0 %v7512_v27, %s9152_s21 }
 0x24b   :  { %697 = vrot.lane.b32.xlu1 %v7512_v27, %s9148_s30  ;;  %662 = vrot.lane.b32.xlu0 %v7510_v25, %s9150_s22 }
 0x24f   :  { %775 = vrot.lane.b32.xlu1 %v7512_v27, %s9144_s1  ;;  %736 = vrot.lane.b32.xlu0 %v7512_v27, %s9146_s0 }
 0x253   :  { %853 = vrot.lane.b32.xlu1 %v7512_v27, %s9176_s2  ;;  %701 = vrot.lane.b32.xlu0 %v7510_v25, %s9148_s30 }
 0x257   :  { %622 = vrot.lane.b32.xlu1 %v7520_v29, %s9152_s21  ;;  %740 = vrot.lane.b32.xlu0 %v7510_v25, %s9146_s0  ;;  %s9162_s21 = smov 20  }
 0x25b   :  { %814 = vrot.lane.b32.xlu0 %v7512_v27, %s9142_s29 }
 0x25d   :  { %v650_v31 = vpop.permute.xlu1 %649  ;;  %v613_v32 = vpop.permute.xlu0 %612 }
 0x25e   :  { %657 = vst.msk [vmem:[#allocation4 + $0x14] sm:$0x1] %vm606_vm5, %v650_v31  ;;  %619 = vst.msk [vmem:[#allocation4 + $0x8] sm:$0x1] %vm606_vm5, %v613_v32 }
 0x25f   :  { %779 = vrot.lane.b32.xlu0 %v7510_v25, %s9144_s1 }
 0x261   :  { %v646_v33 = vpop.permute.xlu1 %645  ;;  %v609_v34 = vpop.permute.xlu0 %608 }
 0x262   :  { %655 = vst.msk [vmem:[#allocation4 + $0xc] sm:$0xf] %vm603_vm6, %v646_v33  ;;  %617 = vst.msk [vmem:[#allocation4] sm:$0xf] %vm603_vm6, %v609_v34 }
 0x263   :  { %818 = vrot.lane.b32.xlu0 %v7510_v25, %s9142_s29 }
 0x265   :  { %v689_v35 = vpop.permute.xlu1 %688  ;;  %v685_v36 = vpop.permute.xlu0 %684  ;;  %v6867_v50 = vld [vmem:[#allocation4 + $0x8] ss:$0 sps:$4 sm:$0x11]   ;;  %v6868_v52 = vld [vmem:[#allocation4 + $0x14] ss:$0 sps:$4 sm:$0x11]  }
 0x266   :  { %696 = vst.msk [vmem:[#allocation4 + $0x20] sm:$0x1] %vm606_vm5, %v689_v35  ;;  %v1003_v57 = vsel %vm72_vm2, %v6867_v50, 0  ;;  %v1079_v59 = vsel %vm72_vm2, %v6868_v52, 0 }
 0x267   :  { %694 = vst.msk [vmem:[#allocation4 + $0x18] sm:$0xf] %vm603_vm6, %v685_v36  ;;  %660 = vrot.lane.b32.xlu0 %v7520_v29, %s9150_s22  ;;  %s9158_s22 = smov 8  }
 0x269   :  { %v672_v37 = vpop.permute.xlu1 %671  ;;  %v633_v38 = vpop.permute.xlu0 %632 }
 0x26a   :  { %681 = vst.msk [vmem:[#allocation3 + $0x18] sm:$0xf] %vm603_vm6, %v672_v37  ;;  %642 = vst.msk [vmem:[#allocation3 + $0xc] sm:$0xf] %vm603_vm6, %v633_v38 }
 0x26b   :  { %699 = vrot.lane.b32.xlu0 %v7520_v29, %s9148_s30  ;;  %s9174_s30 = smov 16  }
 0x26d   :  { %v763_v39 = vpop.permute.xlu1 %762  ;;  %v724_v40 = vpop.permute.xlu0 %723  ;;  %v6874_v6 = vld [vmem:[#allocation4 + $0x20] ss:$0 sps:$4 sm:$0x11]  }
 0x26e   :  { %772 = vst.msk [vmem:[#allocation4 + $0x30] sm:$0xf] %vm603_vm6, %v763_v39  ;;  %733 = vst.msk [vmem:[#allocation4 + $0x24] sm:$0xf] %vm603_vm6, %v724_v40  ;;  %v1155_v12 = vsel %vm72_vm2, %v6874_v6, 0 }
 0x26f   :  { %738 = vrot.lane.b32.xlu0 %v7520_v29, %s9146_s0  ;;  %s9154_s0 = smov 12  }
 0x271   :  { %v648_v41 = vpop.permute.xlu1 %647  ;;  %v611_v42 = vpop.permute.xlu0 %610 }
 0x272   :  { %656 = vst.msk [vmem:[#allocation4 + $0x10] sm:$0xf] %vm603_vm6, %v648_v41  ;;  %618 = vst.msk [vmem:[#allocation4 + $0x4] sm:$0xf] %vm603_vm6, %v611_v42 }
 0x273   :  { %777 = vrot.lane.b32.xlu0 %v7520_v29, %s9144_s1  ;;  %s9156_s1 = smov 4  }
 0x275   :  { %v676_v43 = vpop.permute.xlu1 %675  ;;  %v637_v44 = vpop.permute.xlu0 %636 }
 0x276   :  { %683 = vst.msk [vmem:[#allocation3 + $0x20] sm:$0x1] %vm606_vm5, %v676_v43  ;;  %644 = vst.msk [vmem:[#allocation3 + $0x14] sm:$0x1] %vm606_vm5, %v637_v44 }
 0x277   :  { %816 = vrot.lane.b32.xlu0 %v7520_v29, %s9142_s29  ;;  %s9160_s29 = smov 36  }
 0x279   :  { %v687_v45 = vpop.permute.xlu1 %686  ;;  %v728_v46 = vpop.permute.xlu0 %727  ;;  %v6865_v47 = vld [vmem:[#allocation4] sm:$0xff]   ;;  %v6866_v48 = vld [vmem:[#allocation4 + $0xc] sm:$0xff]  }
 0x27a   :  { %695 = vst.msk [vmem:[#allocation4 + $0x1c] sm:$0xf] %vm603_vm6, %v687_v45  ;;  %6781 = vmatprep.subr.msk.bf16.mxu1 %vm72_vm2, %v6865_v47  ;;  %v1000_v49 = vsel %vm72_vm2, %v6865_v47, 0  ;;  %6783 = vmatprep.subr.msk.bf16.mxu0 %vm72_vm2, %v6866_v48  ;;  %v1076_v51 = vsel %vm72_vm2, %v6866_v48, 0 }
 0x27b   :  { %735 = vst.msk [vmem:[#allocation4 + $0x2c] sm:$0x1] %vm606_vm5, %v728_v46  ;;  %855 = vrot.lane.b32.xlu0 %v7520_v29, %s9176_s2  ;;  %6438 = vmatpush3.bf16.xpose.msra.mxu1 %v1000_v49 }
 0x27c   :  { %6446 = vmatpush3.bf16.xpose.msra.mxu0 %v1076_v51  ;;  %6782 = vmatprep.subr.msk.bf16.mxu1 %vm72_vm2, %v6867_v50 }
 0x27d   :  { %v635_v53 = vpop.permute.xlu1 %634  ;;  %v711_v54 = vpop.permute.xlu0 %710  ;;  %6784 = vmatprep.subr.msk.bf16.mxu0 %vm72_vm2, %v6868_v52  ;;  %v6872_v3 = vld [vmem:[#allocation3 + $0x14] ss:$0 sps:$4 sm:$0x11]   ;;  %v6878_v18 = vld [vmem:[#allocation3 + $0x20] ss:$0 sps:$4 sm:$0x11]  }
 0x27e   :  { %643 = vst.msk [vmem:[#allocation3 + $0x10] sm:$0xf] %vm603_vm6, %v635_v53  ;;  %720 = vst.msk [vmem:[#allocation3 + $0x24] sm:$0xf] %vm603_vm6, %v711_v54 }
 0x281   :  { %v726_v55 = vpop.permute.xlu1 %725  ;;  %v802_v56 = vpop.permute.xlu0 %801  ;;  %v6869_v58 = vld [vmem:[#allocation4 + $0x18] sm:$0xff]  }
 0x282   :  { %734 = vst.msk [vmem:[#allocation4 + $0x28] sm:$0xf] %vm603_vm6, %v726_v55  ;;  %811 = vst.msk [vmem:[#allocation4 + $0x3c] sm:$0xf] %vm603_vm6, %v802_v56  ;;  %v1152_v5 = vsel %vm72_vm2, %v6869_v58, 0 }
 0x283   :  { %6440 = vmatpush3.bf16.xpose.msra.mxu1 %v1003_v57  ;;  %v6875_v7 = vld [vmem:[#allocation4 + $0x2c] ss:$0 sps:$4 sm:$0x11]  }
 0x284   :  { %6448 = vmatpush3.bf16.xpose.msra.mxu0 %v1079_v59  ;;  %6785 = vmatprep.subr.msk.bf16.mxu1 %vm72_vm2, %v6869_v58  ;;  %v1231_v13 = vsel %vm72_vm2, %v6875_v7, 0 }
 0x285   :  { %v767_v60 = vpop.permute.xlu1 %766  ;;  %v715_v61 = vpop.permute.xlu0 %714  ;;  %v6870_v62 = vld [vmem:[#allocation3 + $0xc] sm:$0xff]  }
 0x286   :  { %774 = vst.msk [vmem:[#allocation4 + $0x38] sm:$0x1] %vm606_vm5, %v767_v60  ;;  %722 = vst.msk [vmem:[#allocation3 + $0x2c] sm:$0x1] %vm606_vm5, %v715_v61  ;;  %6449 = vmatprep.mubr.msk.bf16.mxu0 %vm72_vm2, %v6870_v62 }
 0x289   :  { %v750_v0 = vpop.permute.xlu1 %749  ;;  %v806_v1 = vpop.permute.xlu0 %805  ;;  %v6873_v2 = vld [vmem:[#allocation4 + $0x24] sm:$0xff]  }
 0x28a   :  { %759 = vst.msk [vmem:[#allocation3 + $0x30] sm:$0xf] %vm603_vm6, %v750_v0  ;;  %6442 = vmatmul.mubr.msk.bf16.vlgmr.msra.gmra.mrb[20].mxu1 %vm72_vm2, %v6871_v63  ;;  %6787 = vmatprep.subr.msk.bf16.mxu0 %vm72_vm2, %v6873_v2  ;;  %v1228_v4 = vsel %vm72_vm2, %v6873_v2, 0 }
 0x28b   :  { %813 = vst.msk [vmem:[#allocation4 + $0x44] sm:$0x1] %vm606_vm5, %v806_v1  ;;  %6450 = vmatmul.mubr.msk.bf16.vlgmr.msra.gmra.mrb[16].mxu0 %vm72_vm2, %v6872_v3  ;;  %6454 = vmatpush3.bf16.xpose.msra.mxu1 %v1152_v5 }
 0x28c   :  { %6462 = vmatpush3.bf16.xpose.msra.mxu0 %v1228_v4  ;;  %6786 = vmatprep.subr.msk.bf16.mxu1 %vm72_vm2, %v6874_v6 }
 0x28d   :  { %v713_v8 = vpop.permute.xlu1 %712  ;;  %v674_v9 = vpop.permute.xlu0 %673  ;;  %6788 = vmatprep.subr.msk.bf16.mxu0 %vm72_vm2, %v6875_v7  ;;  %v6879_v22 = vld [vmem:[#allocation3 + $0x2c] ss:$0 sps:$4 sm:$0x11]   ;;  %v6882_v26 = vld [vmem:[#allocation4 + $0x38] ss:$0 sps:$4 sm:$0x11]  }
 0x28e   :  { %721 = vst.msk [vmem:[#allocation3 + $0x28] sm:$0xf] %vm603_vm6, %v713_v8  ;;  %682 = vst.msk [vmem:[#allocation3 + $0x1c] sm:$0xf] %vm603_vm6, %v674_v9  ;;  %v1307_v36 = vsel %vm72_vm2, %v6882_v26, 0 }
 0x291   :  { %v804_v10 = vpop.permute.xlu1 %803  ;;  %v765_v11 = vpop.permute.xlu0 %764 }
 0x292   :  { %812 = vst.msk [vmem:[#allocation4 + $0x40] sm:$0xf] %vm603_vm6, %v804_v10  ;;  %773 = vst.msk [vmem:[#allocation4 + $0x34] sm:$0xf] %vm603_vm6, %v765_v11 }
 0x293   :  { %6456 = vmatpush3.bf16.xpose.msra.mxu1 %v1155_v12  ;;  %v6883_v30 = vld [vmem:[#allocation4 + $0x44] ss:$0 sps:$4 sm:$0x11]  }
 0x294   :  { %6464 = vmatpush3.bf16.xpose.msra.mxu0 %v1231_v13  ;;  %v1383_v35 = vsel %vm72_vm2, %v6883_v30, 0 }
 0x295   :  { %v841_v14 = vpop.permute.xlu1 %840  ;;  %v789_v15 = vpop.permute.xlu0 %788  ;;  %v6876_v16 = vld [vmem:[#allocation3 + $0x18] sm:$0xff]   ;;  %v6877_v17 = vld [vmem:[#allocation3 + $0x24] sm:$0xff]  }
 0x296   :  { %850 = vst.msk [vmem:[#allocation4 + $0x48] sm:$0xf] %vm603_vm6, %v841_v14  ;;  %798 = vst.msk [vmem:[#allocation3 + $0x3c] sm:$0xf] %vm603_vm6, %v789_v15  ;;  %6457 = vmatprep.mubr.msk.bf16.mxu1 %vm72_vm2, %v6876_v16  ;;  %6465 = vmatprep.mubr.msk.bf16.mxu0 %vm72_vm2, %v6877_v17 }
 0x299   :  { %v754_v19 = vpop.permute.xlu1 %753  ;;  %v880_v20 = vpop.permute.xlu0 %879  ;;  %v6880_v21 = vld [vmem:[#allocation4 + $0x30] sm:$0xff]   ;;  %v6881_v23 = vld [vmem:[#allocation4 + $0x3c] sm:$0xff]  }
 0x29a   :  { %761 = vst.msk [vmem:[#allocation3 + $0x38] sm:$0x1] %vm606_vm5, %v754_v19  ;;  %6458 = vmatmul.mubr.msk.bf16.vlgmr.msra.gmra.mrb[24].mxu1 %vm72_vm2, %v6878_v18  ;;  %6789 = vmatprep.subr.msk.bf16.mxu1 %vm72_vm2, %v6880_v21  ;;  %v1304_v24 = vsel %vm72_vm2, %v6880_v21, 0  ;;  %v1380_v28 = vsel %vm72_vm2, %v6881_v23, 0 }
 0x29b   :  { %889 = vst.msk [vmem:[#allocation4 + $0x54] sm:$0xf] %vm603_vm6, %v880_v20  ;;  %6466 = vmatmul.mubr.msk.bf16.vlgmr.msra.gmra.mrb[20].mxu0 %vm72_vm2, %v6879_v22  ;;  %6791 = vmatprep.subr.msk.bf16.mxu0 %vm72_vm2, %v6881_v23 }
 0x29c   :  { %6478 = vmatpush3.bf16.xpose.msra.mxu0 %v1380_v28  ;;  %6470 = vmatpush3.bf16.xpose.msra.mxu1 %v1304_v24 }
 0x29d   :  { %v791_v31 = vpop.permute.xlu1 %790  ;;  %v752_v32 = vpop.permute.xlu0 %751  ;;  %6790 = vmatprep.subr.msk.bf16.mxu1 %vm72_vm2, %v6882_v26  ;;  %6792 = vmatprep.subr.msk.bf16.mxu0 %vm72_vm2, %v6883_v30  ;;  %v489_v30 = vld [vmem:[%s9109_s4 + $0x10] sm:$0x3] }
 0x29e   :  { %799 = vst.msk [vmem:[#allocation3 + $0x40] sm:$0xf] %vm603_vm6, %v791_v31  ;;  %760 = vst.msk [vmem:[#allocation3 + $0x34] sm:$0xf] %vm603_vm6, %v752_v32 }
 0x2a1   :  { %v882_v33 = vpop.permute.xlu1 %881  ;;  %v843_v34 = vpop.permute.xlu0 %842  ;;  %v6886_v44 = vld [vmem:[#allocation3 + $0x38] ss:$0 sps:$4 sm:$0x11]  }
 0x2a2   :  { %890 = vst.msk [vmem:[#allocation4 + $0x58] sm:$0xf] %vm603_vm6, %v882_v33  ;;  %851 = vst.msk [vmem:[#allocation4 + $0x4c] sm:$0xf] %vm603_vm6, %v843_v34  ;;  %v492_v34 = vld [vmem:[%s9109_s4 + $0x28] sm:$0x3] }
 0x2a4   :  { %6480 = vmatpush3.bf16.xpose.msra.mxu0 %v1383_v35  ;;  %6472 = vmatpush3.bf16.xpose.msra.mxu1 %v1307_v36 }
 0x2a5   :  { %v845_v37 = vpop.permute.xlu1 %844  ;;  %v793_v38 = vpop.permute.xlu0 %792  ;;  %v6884_v39 = vld [vmem:[#allocation3 + $0x30] sm:$0xff]   ;;  %v6885_v40 = vld [vmem:[#allocation3 + $0x3c] sm:$0xff]  }
 0x2a6   :  { %852 = vst.msk [vmem:[#allocation4 + $0x50] sm:$0x1] %vm606_vm5, %v845_v37  ;;  %800 = vst.msk [vmem:[#allocation3 + $0x44] sm:$0x1] %vm606_vm5, %v793_v38  ;;  %6473 = vmatprep.mubr.msk.bf16.mxu1 %vm72_vm2, %v6884_v39  ;;  %6481 = vmatprep.mubr.msk.bf16.mxu0 %vm72_vm2, %v6885_v40 }
 0x2a9   :  { %v828_v41 = vpop.permute.xlu1 %827  ;;  %v884_v42 = vpop.permute.xlu0 %883  ;;  %v6887_v43 = vld [vmem:[#allocation4 + $0x48] sm:$0xff]   ;;  %v6888_v45 = vld [vmem:[#allocation4 + $0x54] sm:$0xff]  }
 0x2aa   :  { %837 = vst.msk [vmem:[#allocation3 + $0x48] sm:$0xf] %vm603_vm6, %v828_v41  ;;  %6793 = vmatprep.subr.msk.bf16.mxu1 %vm72_vm2, %v6887_v43  ;;  %v1456_v46 = vsel %vm72_vm2, %v6887_v43, 0  ;;  %6795 = vmatprep.subr.msk.bf16.mxu0 %vm72_vm2, %v6888_v45  ;;  %v1532_v51 = vsel %vm72_vm2, %v6888_v45, 0  ;;  %v488_v43 = vld [vmem:[%s9109_s4 + $0x8] sm:$0xff] }
 0x2ab   :  { %891 = vst.msk [vmem:[#allocation4 + $0x5c] sm:$0x1] %vm606_vm5, %v884_v42  ;;  %6474 = vmatmul.mubr.msk.bf16.vlgmr.msra.gmra.mrb[28].mxu1 %vm72_vm2, %v6886_v44  ;;  %v487_v42 = vld [vmem:[%s9109_s4] sm:$0xff] }
 0x2ac   :  { %6486 = vmatpush3.bf16.xpose.msra.mxu1 %v1456_v46 }
 0x2ad   :  { %v832_v47 = vpop.permute.xlu1 %831  ;;  %v867_v48 = vpop.permute.xlu0 %866  ;;  %v6889_v49 = vld [vmem:[#allocation3 + $0x44] ss:$0 sps:$4 sm:$0x11]   ;;  %v6890_v50 = vld [vmem:[#allocation4 + $0x50] ss:$0 sps:$4 sm:$0x11]  }
 0x2ae   :  { %839 = vst.msk [vmem:[#allocation3 + $0x50] sm:$0x1] %vm606_vm5, %v832_v47  ;;  %6482 = vmatmul.mubr.msk.bf16.vlgmr.msra.gmra.mrb[24].mxu0 %vm72_vm2, %v6889_v49  ;;  %6794 = vmatprep.subr.msk.bf16.mxu1 %vm72_vm2, %v6890_v50  ;;  %v1459_v55 = vsel %vm72_vm2, %v6890_v50, 0 }
 0x2af   :  { %876 = vst.msk [vmem:[#allocation3 + $0x54] sm:$0xf] %vm603_vm6, %v867_v48  ;;  %6494 = vmatpush3.bf16.xpose.msra.mxu0 %v1532_v51 }
 0x2b1   :  { %v869_v52 = vpop.permute.xlu1 %868  ;;  %v830_v53 = vpop.permute.xlu0 %829 }
 0x2b2   :  { %v6891_v54 = vld [vmem:[#allocation4 + $0x5c] ss:$0 sps:$4 sm:$0x11]   ;;  %877 = vst.msk [vmem:[#allocation3 + $0x58] sm:$0xf] %vm603_vm6, %v869_v52 }
 0x2b3   :  { %838 = vst.msk [vmem:[#allocation3 + $0x4c] sm:$0xf] %vm603_vm6, %v830_v53  ;;  %6796 = vmatprep.subr.msk.bf16.mxu0 %vm72_vm2, %v6891_v54  ;;  %v1535_v58 = vsel %vm72_vm2, %v6891_v54, 0  ;;  %v491_v53 = vld [vmem:[%s9109_s4 + $0x20] sm:$0xff]  ;;  %v490_v54 = vld [vmem:[%s9109_s4 + $0x18] sm:$0xff] }
 0x2b4   :  { %6488 = vmatpush3.bf16.xpose.msra.mxu1 %v1459_v55 }
 0x2b5   :  { %v659_v56 = vpop.permute.xlu1 %658  ;;  %v871_v57 = vpop.permute.xlu0 %870  ;;  %v6894_v63 = vld [vmem:[#allocation3 + $0x50] ss:$0 sps:$4 sm:$0x11]  }
 0x2b6   :  { %668 = vst.msk [vmem:[#allocation5 + $0xc] sm:$0xf] %vm603_vm6, %v659_v56 }
 0x2b7   :  { %878 = vst.msk [vmem:[#allocation3 + $0x5c] sm:$0x1] %vm606_vm5, %v871_v57  ;;  %6496 = vmatpush3.bf16.xpose.msra.mxu0 %v1535_v58 }
 0x2b9   :  { %v625_v59 = vpop.permute.xlu1 %624  ;;  %v621_v60 = vpop.permute.xlu0 %620  ;;  %v6893_v62 = vld [vmem:[#allocation3 + $0x54] sm:$0xff]  }
 0x2ba   :  { %v6892_v61 = vld [vmem:[#allocation3 + $0x48] sm:$0xff]   ;;  %631 = vst.msk [vmem:[#allocation5 + $0x8] sm:$0x1] %vm606_vm5, %v625_v59  ;;  %6497 = vmatprep.mubr.msk.bf16.mxu0 %vm72_vm2, %v6893_v62 }
 0x2bb   :  { %629 = vst.msk [vmem:[#allocation5] sm:$0xf] %vm603_vm6, %v621_v60  ;;  %6489 = vmatprep.mubr.msk.bf16.mxu1 %vm72_vm2, %v6892_v61  ;;  %v495_v62 = vld [vmem:[%s9109_s4 + $0x40] sm:$0x3] }
 0x2bc   :  { %6490 = vmatmul.mubr.msk.bf16.vlgmr.msra.gmra.mrb[32].mxu1 %vm72_vm2, %v6894_v63 }
 0x2bd   :  { %v698_v0 = vpop.permute.xlu1 %697  ;;  %v663_v1 = vpop.permute.xlu0 %662 }
 0x2be   :  { %v6895_v2 = vld [vmem:[#allocation3 + $0x5c] ss:$0 sps:$4 sm:$0x11]   ;;  %707 = vst.msk [vmem:[#allocation5 + $0x18] sm:$0xf] %vm603_vm6, %v698_v0 }
 0x2bf   :  { %670 = vst.msk [vmem:[#allocation5 + $0x14] sm:$0x1] %vm606_vm5, %v663_v1  ;;  %6498 = vmatmul.mubr.msk.bf16.vlgmr.msra.gmra.mrb[28].mxu0 %vm72_vm2, %v6895_v2  ;;  %v498_v2 = vld [vmem:[%s9109_s4 + $0x58] sm:$0x3] }
 0x2c1   :  { %v776_v3 = vpop.permute.xlu1 %775  ;;  %v737_v4 = vpop.permute.xlu0 %736  ;;  %v6897_v12 = vld [vmem:[#allocation5 + $0x8] ss:$0 sps:$4 sm:$0x11]  }
 0x2c2   :  { %785 = vst.msk [vmem:[#allocation5 + $0x30] sm:$0xf] %vm603_vm6, %v776_v3  ;;  %746 = vst.msk [vmem:[#allocation5 + $0x24] sm:$0xf] %vm603_vm6, %v737_v4  ;;  %v1932_v14 = vsel %vm1930_vm7, %v6897_v12, 0 }
 0x2c5   :  { %v854_v5 = vpop.permute.xlu1 %853  ;;  %v702_v6 = vpop.permute.xlu0 %701 }
 0x2c6   :  { %863 = vst.msk [vmem:[#allocation5 + $0x48] sm:$0xf] %vm603_vm6, %v854_v5  ;;  %v6899_v19 = vld [vmem:[#allocation5 + $0x14] ss:$0 sps:$4 sm:$0x11]  }
 0x2c7   :  { %709 = vst.msk [vmem:[#allocation5 + $0x20] sm:$0x1] %vm606_vm5, %v702_v6  ;;  %v1998_v22 = vsel %vm1930_vm7, %v6899_v19, 0 }
 0x2c9   :  { %v623_v7 = vpop.permute.xlu1 %622  ;;  %v741_v8 = vpop.permute.xlu0 %740 }
 0x2ca   :  { %630 = vst.msk [vmem:[#allocation5 + $0x4] sm:$0xf] %vm603_vm6, %v623_v7  ;;  %v493_v7 = vld [vmem:[%s9109_s4 + $0x30] sm:$0xff] }
 0x2cb   :  { %748 = vst.msk [vmem:[#allocation5 + $0x2c] sm:$0x1] %vm606_vm5, %v741_v8 }
 0x2cd   :  { %v815_v9 = vpop.permute.xlu0 %814 }
 0x2ce   :  { %824 = vst.msk [vmem:[#allocation5 + $0x3c] sm:$0xf] %vm603_vm6, %v815_v9 }
 0x2d1   :  { %v780_v10 = vpop.permute.xlu0 %779  ;;  %v6896_v11 = vld [vmem:[#allocation5] sm:$0xff]  }
 0x2d2   :  { %787 = vst.msk [vmem:[#allocation5 + $0x38] sm:$0x1] %vm606_vm5, %v780_v10  ;;  %6501 = vmatprep.subr.bf16.mxu1 %v6896_v11 }
 0x2d3   :  { %6502 = vmatpush3.bf16.msra.mxu1 %v6896_v11 }
 0x2d4   :  { %6797 = vmatprep.subr.msk.bf16.mxu1 %vm1930_vm7, %v6897_v12  ;;  %v496_v12 = vld [vmem:[%s9109_s4 + $0x48] sm:$0xff] }
 0x2d5   :  { %v819_v13 = vpop.permute.xlu0 %818 }
 0x2d6   :  { %826 = vst.msk [vmem:[#allocation5 + $0x44] sm:$0x1] %vm606_vm5, %v819_v13 }
 0x2d7   :  { %6504 = vmatpush3.bf16.msra.mxu1 %v1932_v14 }
 0x2d9   :  { %v661_v15 = vpop.permute.xlu0 %660 }
 0x2da   :  { %669 = vst.msk [vmem:[#allocation5 + $0x10] sm:$0xf] %vm603_vm6, %v661_v15 }
 0x2dd   :  { %v700_v16 = vpop.permute.xlu0 %699 }
 0x2de   :  { %708 = vst.msk [vmem:[#allocation5 + $0x1c] sm:$0xf] %vm603_vm6, %v700_v16 }
 0x2e1   :  { %v739_v17 = vpop.permute.xlu0 %738  ;;  %v6898_v18 = vld [vmem:[#allocation5 + $0xc] sm:$0xff]  }
 0x2e2   :  { %747 = vst.msk [vmem:[#allocation5 + $0x28] sm:$0xf] %vm603_vm6, %v739_v17  ;;  %6509 = vmatprep.subr.bf16.mxu0 %v6898_v18 }
 0x2e3   :  { %6510 = vmatpush3.bf16.msra.mxu0 %v6898_v18 }
 0x2e4   :  { %6798 = vmatprep.subr.msk.bf16.mxu0 %vm1930_vm7, %v6899_v19 }
 0x2e5   :  { %v778_v20 = vpop.permute.xlu0 %777  ;;  %v7765_v21 = vld [vmem:[#allocation5 + $0x18] sm:$0xff]  }
 0x2e6   :  { %786 = vst.msk [vmem:[#allocation5 + $0x34] sm:$0xf] %vm603_vm6, %v778_v20  ;;  %6517 = vmatprep.subr.bf16.mxu1 %v7765_v21 }
 0x2e7   :  { %6512 = vmatpush3.bf16.msra.mxu0 %v1998_v22  ;;  %v497_v22 = vld [vmem:[%s9109_s4 + $0x50] sm:$0xff] }
 0x2e9   :  { %v817_v23 = vpop.permute.xlu0 %816  ;;  %v7770_v24 = vld [vmem:[#allocation5 + $0x24] sm:$0xff]  }
 0x2ea   :  { %825 = vst.msk [vmem:[#allocation5 + $0x40] sm:$0xf] %vm603_vm6, %v817_v23  ;;  %6525 = vmatprep.subr.bf16.mxu0 %v7770_v24  ;;  %v494_v23 = vld [vmem:[%s9109_s4 + $0x38] sm:$0xff] }
 0x2ed   :  { %v856_v26 = vpop.permute.xlu0 %855 }
 0x2ee   :  { %864 = vst.msk [vmem:[#allocation5 + $0x4c] sm:$0xf] %vm603_vm6, %v856_v26 }
 0x35d   :  { %v6443_v28 = vpop.f32.mrb[20].mxu1 }
 0x35e   :  { %v1587_v31 = vmul.f32 0.5, %v6443_v28  ;;  %v6451_v32 = vpop.f32.mrb[16].mxu0  ;;  %v1039_v33 = vpop.f32.mrb[21].mxu1 }
 0x35f   :  { %v1590_v35 = vmul.f32 0.5, %v6451_v32  ;;  %v1585_v36 = vmul.f32 0.5, %v1039_v33  ;;  %v1115_v37 = vpop.f32.mrb[17].mxu0  ;;  %v6444_v38 = vpop.f32.mrb[22].mxu1 }
 0x360   :  { %v6452_v39 = vpop.f32.mrb[18].mxu0  ;;  %v1042_v40 = vpop.f32.mrb[23].mxu1  ;;  %v7781_v41 = vadd.f32 %v1587_v31, %v489_v30  ;;  %v1588_v49 = vmul.f32 0.5, %v1115_v37 }
 0x361   :  { %v1586_v44 = vmul.f32 0.5, %v1042_v40  ;;  %v1118_v45 = vpop.f32.mrb[19].mxu0  ;;  %v7789_v46 = vadd.f32 %v1590_v35, %v492_v34  ;;  %v7795_v51 = vadd.f32 %v1585_v36, %v487_v42  ;;  %v501_v35 = vld [vmem:[%s9109_s4 + $0x70] sm:$0x3]  ;;  %v499_v40 = vld [vmem:[%s9109_s4 + $0x60] sm:$0xff] }
 0x362   :  { %v1589_v47 = vmul.f32 0.5, %v1118_v45  ;;  %v1641_v48 = vsel %vm1640_vm8, %v7781_v41, -inf  ;;  %v7811_v58 = vadd.f32 %v1588_v49, %v490_v54  ;;  %v504_v45 = vld [vmem:[%s9109_s4 + $0x88] sm:$0x3] }
 0x363   :  { %v1650_v50 = vsel %vm1640_vm8, %v7789_v46, -inf  ;;  %1642 = vmax.xlane.f32.xlu0 %v1641_v48  ;;  %v7797_v52 = vadd.f32 %v1586_v44, %v488_v43  ;;  %v1634_v57 = vsel %vm1633_vm9, %v7795_v51, -inf }
 0x364   :  { %1651 = vmax.xlane.f32.xlu1 %v1650_v50  ;;  %v7807_v56 = vadd.f32 %v1589_v47, %v491_v53  ;;  %v1644_v60 = vsel %vm1633_vm9, %v7811_v58, -inf }
 0x365   :  { %v1637_v55 = vsel %vm1633_vm9, %v7797_v52, -inf }
 0x366   :  { %v1647_v59 = vsel %vm1633_vm9, %v7807_v56, -inf }
 0x367   :  { %1638 = vmax.xlane.f32.xlu0 %v1637_v55  ;;  %v502_v55 = vld [vmem:[%s9109_s4 + $0x78] sm:$0xff] }
 0x368   :  { %1635 = vmax.xlane.f32.xlu1 %v1634_v57 }
 0x36b   :  { %1648 = vmax.xlane.f32.xlu0 %v1647_v59 }
 0x36c   :  { %1645 = vmax.xlane.f32.xlu1 %v1644_v60  ;;  %v503_v60 = vld [vmem:[%s9109_s4 + $0x80] sm:$0xff] }
 0x36d   :  { %v6459_v61 = vpop.f32.mrb[24].mxu1 }
 0x36e   :  { %v1593_v63 = vmul.f32 0.5, %v6459_v61  ;;  %v6467_v0 = vpop.f32.mrb[20].mxu0  ;;  %v1191_v1 = vpop.f32.mrb[25].mxu1 }
 0x36f   :  { %v1596_v3 = vmul.f32 0.5, %v6467_v0  ;;  %v1591_v4 = vmul.f32 0.5, %v1191_v1  ;;  %v1267_v5 = vpop.f32.mrb[21].mxu0  ;;  %v6460_v6 = vpop.f32.mrb[26].mxu1 }
 0x370   :  { %v1594_v8 = vmul.f32 0.5, %v1267_v5  ;;  %v6468_v9 = vpop.f32.mrb[22].mxu0  ;;  %v1194_v10 = vpop.f32.mrb[27].mxu1  ;;  %v7826_v11 = vadd.f32 %v1593_v63, %v495_v62 }
 0x371   :  { %v1270_v13 = vpop.f32.mrb[23].mxu0  ;;  %v7831_v14 = vadd.f32 %v1596_v3, %v498_v2  ;;  %v7835_v17 = vadd.f32 %v1591_v4, %v493_v7  ;;  %v1592_v18 = vmul.f32 0.5, %v1194_v10  ;;  %v500_v3 = vld [vmem:[%s9109_s4 + $0x68] sm:$0xff]  ;;  %v507_v9 = vld [vmem:[%s9109_s4 + $0xa0] sm:$0x3] }
 0x372   :  { %v1595_v15 = vmul.f32 0.5, %v1270_v13  ;;  %v1659_v16 = vsel %vm1640_vm8, %v7826_v11, -inf  ;;  %v7839_v20 = vadd.f32 %v1594_v8, %v496_v12 }
 0x373   :  { %v1668_v19 = vsel %vm1640_vm8, %v7831_v14, -inf  ;;  %1660 = vmax.xlane.f32.xlu0 %v1659_v16  ;;  %v1653_v26 = vsel %vm1633_vm9, %v7835_v17, -inf  ;;  %v7853_v31 = vadd.f32 %v1592_v18, %v494_v23  ;;  %v505_v16 = vld [vmem:[%s9109_s4 + $0x90] sm:$0xff]  ;;  %v510_v23 = vld [vmem:[%s9109_s4 + $0xb8] sm:$0x3] }
 0x374   :  { %1669 = vmax.xlane.f32.xlu1 %v1668_v19  ;;  %v7849_v28 = vadd.f32 %v1595_v15, %v497_v22  ;;  %v1662_v30 = vsel %vm1633_vm9, %v7839_v20, -inf }
 0x375   :  { %v1656_v33 = vsel %vm1633_vm9, %v7853_v31, -inf }
 0x376   :  { %v1665_v32 = vsel %vm1633_vm9, %v7849_v28, -inf }
 0x377   :  { %1654 = vmax.xlane.f32.xlu0 %v1653_v26 }
 0x378   :  { %1663 = vmax.xlane.f32.xlu1 %v1662_v30 }
 0x37b   :  { %1666 = vmax.xlane.f32.xlu0 %v1665_v32 }
 0x37c   :  { %1657 = vmax.xlane.f32.xlu1 %v1656_v33 }
 0x37e   :  { %v6475_v34 = vpop.f32.mrb[28].mxu1 }
 0x37f   :  { %v1599_v36 = vmul.f32 0.5, %v6475_v34  ;;  %v1343_v37 = vpop.f32.mrb[29].mxu1 }
 0x380   :  { %v1597_v38 = vmul.f32 0.5, %v1343_v37  ;;  %v6476_v39 = vpop.f32.mrb[30].mxu1 }
 0x381   :  { %v1346_v42 = vpop.f32.mrb[31].mxu1  ;;  %v6483_v43 = vpop.f32.mrb[24].mxu0  ;;  %v7865_v44 = vadd.f32 %v1599_v36, %v501_v35  ;;  %v508_v36 = vld [vmem:[%s9109_s4 + $0xa8] sm:$0xff]  ;;  %v509_v39 = vld [vmem:[%s9109_s4 + $0xb0] sm:$0xff] }
 0x382   :  { %v1602_v47 = vmul.f32 0.5, %v6483_v43  ;;  %v1419_v48 = vpop.f32.mrb[25].mxu0  ;;  %v7872_v54 = vadd.f32 %v1597_v38, %v499_v40  ;;  %v1598_v62 = vmul.f32 0.5, %v1346_v42 }
 0x383   :  { %v1600_v49 = vmul.f32 0.5, %v1419_v48  ;;  %v6484_v50 = vpop.f32.mrb[26].mxu0  ;;  %v1677_v53 = vsel %vm1640_vm8, %v7865_v44, -inf }
 0x384   :  { %1678 = vmax.xlane.f32.xlu0 %v1677_v53  ;;  %v1422_v57 = vpop.f32.mrb[27].mxu0  ;;  %v7877_v59 = vadd.f32 %v1602_v47, %v504_v45  ;;  %v1671_v1 = vsel %vm1633_vm9, %v7872_v54, -inf  ;;  %v7897_v6 = vadd.f32 %v1598_v62, %v500_v3 }
 0x385   :  { %v1601_v61 = vmul.f32 0.5, %v1422_v57  ;;  %v7884_v0 = vadd.f32 %v1600_v49, %v502_v55  ;;  %v506_v49 = vld [vmem:[%s9109_s4 + $0x98] sm:$0xff] }
 0x386   :  { %v1686_v63 = vsel %vm1640_vm8, %v7877_v59, -inf  ;;  %v1674_v8 = vsel %vm1633_vm9, %v7897_v6, -inf }
 0x387   :  { %1687 = vmax.xlane.f32.xlu1 %v1686_v63  ;;  %v7888_v2 = vadd.f32 %v1601_v61, %v503_v60  ;;  %v1680_v5 = vsel %vm1633_vm9, %v7884_v0, -inf }
 0x388   :  { %1672 = vmax.xlane.f32.xlu0 %v1671_v1 }
 0x389   :  { %v1683_v4 = vsel %vm1633_vm9, %v7888_v2, -inf }
 0x38b   :  { %1681 = vmax.xlane.f32.xlu1 %v1680_v5 }
 0x38c   :  { %1684 = vmax.xlane.f32.xlu0 %v1683_v4 }
 0x38f   :  { %v6491_v7 = vpop.f32.mrb[32].mxu1  ;;  %1675 = vmax.xlane.f32.xlu1 %v1674_v8 }
 0x390   :  { %v1605_v10 = vmul.f32 0.5, %v6491_v7  ;;  %v1495_v12 = vpop.f32.mrb[33].mxu1 }
 0x391   :  { %v1603_v13 = vmul.f32 0.5, %v1495_v12  ;;  %v6492_v15 = vpop.f32.mrb[34].mxu1 }
 0x392   :  { %v1498_v18 = vpop.f32.mrb[35].mxu1  ;;  %v6499_v19 = vpop.f32.mrb[28].mxu0  ;;  %v7907_v22 = vadd.f32 %v1605_v10, %v507_v9 }
 0x393   :  { %v1608_v26 = vmul.f32 0.5, %v6499_v19  ;;  %v1571_v30 = vpop.f32.mrb[29].mxu0  ;;  %v7914_v35 = vadd.f32 %v1603_v13, %v505_v16  ;;  %v1604_v42 = vmul.f32 0.5, %v1498_v18 }
 0x394   :  { %v1606_v32 = vmul.f32 0.5, %v1571_v30  ;;  %v6500_v33 = vpop.f32.mrb[30].mxu0  ;;  %v1695_v34 = vsel %vm1640_vm8, %v7907_v22, -inf }
 0x395   :  { %v1574_v37 = vpop.f32.mrb[31].mxu0  ;;  %1696 = vmax.xlane.f32.xlu0 %v1695_v34  ;;  %v7919_v38 = vadd.f32 %v1608_v26, %v510_v23  ;;  %v1689_v47 = vsel %vm1633_vm9, %v7914_v35, -inf  ;;  %v7937_v53 = vadd.f32 %v1604_v42, %v506_v49 }
 0x396   :  { %v1607_v40 = vmul.f32 0.5, %v1574_v37  ;;  %v7926_v45 = vadd.f32 %v1606_v32, %v508_v36 }
 0x397   :  { %v1704_v43 = vsel %vm1640_vm8, %v7919_v38, -inf  ;;  %v1692_v57 = vsel %vm1633_vm9, %v7937_v53, -inf }
 0x398   :  { %1705 = vmax.xlane.f32.xlu1 %v1704_v43  ;;  %v7930_v48 = vadd.f32 %v1607_v40, %v509_v39  ;;  %v1698_v50 = vsel %vm1633_vm9, %v7926_v45, -inf }
 0x399   :  { %1690 = vmax.xlane.f32.xlu0 %v1689_v47 }
 0x39a   :  { %v1701_v55 = vsel %vm1633_vm9, %v7930_v48, -inf }
 0x39c   :  { %1699 = vmax.xlane.f32.xlu1 %v1698_v50 }
 0x39d   :  { %1702 = vmax.xlane.f32.xlu0 %v1701_v55 }
 0x3a0   :  { %1693 = vmax.xlane.f32.xlu1 %v1692_v57 }
 0x3b1   :  { %892 = vrot.lane.b32.xlu1 %v7512_v27, %s9160_s29 }
 0x3b3   :  { %894 = vrot.lane.b32.xlu0 %v7520_v29, %s9160_s29 }
 0x3f0   :  { %v1643_v60 = vpop.xlane.xlu0 %1642 }
 0x3f1   :  { %v1652_v61 = vpop.xlane.xlu1 %1651  ;;  %v1709_v62 = vsub.f32 %v7781_v41, %v1643_v60 }
 0x3f2   :  { %v1712_v63 = vsub.f32 %v7789_v46, %v1652_v61 }
 0x3f3   :  { %v1735_v1 = vmul.f32 1.442695, %v1709_v62 }
 0x3f4   :  { %v1741_v3 = vmul.f32 1.442695, %v1712_v63  ;;  %v1639_v4 = vpop.xlane.xlu0 %1638 }
 0x3f5   :  { %6992 = vpow2.f32 %v1735_v1  ;;  %v1636_v5 = vpop.xlane.xlu1 %1635  ;;  %v1708_v27 = vsub.f32 %v7797_v52, %v1639_v4 }
 0x3f6   :  { %6994 = vpow2.f32 %v1741_v3  ;;  %v1707_v7 = vsub.f32 %v7795_v51, %v1636_v5 }
 0x3f7   :  { %v1733_v46 = vmul.f32 1.442695, %v1708_v27 }
 0x3f8   :  { %v1731_v8 = vmul.f32 1.442695, %v1707_v7  ;;  %v1649_v9 = vpop.xlane.xlu0 %1648 }
 0x3f9   :  { %v1646_v10 = vpop.xlane.xlu1 %1645  ;;  %v1711_v29 = vsub.f32 %v7807_v56, %v1649_v9 }
 0x3fa   :  { %6996 = vpow2.f32 %v1731_v8  ;;  %v1710_v41 = vsub.f32 %v7811_v58, %v1646_v10 }
 0x3fb   :  { %v1739_v12 = vmul.f32 1.442695, %v1711_v29 }
 0x3fc   :  { %v1737_v13 = vmul.f32 1.442695, %v1710_v41 }
 0x3fd   :  { %6998 = vpow2.f32 %v1739_v12 }
 0x3fe   :  { %7000 = vpow2.f32 %v1737_v13 }
 0x3ff   :  { %v7953_v15 = vpop.eup %6992  ;;  %7002 = vpow2.f32 %v1733_v46 }
 0x400   :  { %v7955_v16 = vpop.eup %6994  ;;  %v1661_v51 = vpop.xlane.xlu0 %1660  ;;  %v1785_v52 = vsel %vm1640_vm8, %v7953_v15, 0.0 }
 0x401   :  { %v1670_v18 = vpop.xlane.xlu1 %1669  ;;  %v1715_v56 = vsub.f32 %v7826_v11, %v1661_v51  ;;  %1786 = vadd.xlane.f32.xlu0 %v1785_v52  ;;  %v1794_v58 = vsel %vm1640_vm8, %v7955_v16, 0.0 }
 0x402   :  { %v1718_v19 = vsub.f32 %v7831_v14, %v1670_v18  ;;  %1795 = vadd.xlane.f32.xlu1 %v1794_v58 }
 0x403   :  { %v1747_v23 = vmul.f32 1.442695, %v1715_v56 }
 0x404   :  { %v7963_v26 = vpop.eup %6996  ;;  %v1753_v30 = vmul.f32 1.442695, %v1718_v19  ;;  %v1655_v32 = vpop.xlane.xlu0 %1654 }
 0x405   :  { %7004 = vpow2.f32 %v1747_v23  ;;  %v1664_v33 = vpop.xlane.xlu1 %1663  ;;  %v1713_v34 = vsub.f32 %v7835_v17, %v1655_v32  ;;  %v1779_v36 = vsel %vm1633_vm9, %v7963_v26, 0.0 }
 0x406   :  { %7006 = vpow2.f32 %v1753_v30  ;;  %v1716_v11 = vsub.f32 %v7839_v20, %v1664_v33  ;;  %1780 = vadd.xlane.f32.xlu0 %v1779_v36 }
 0x407   :  { %v7969_v37 = vpop.eup %6998  ;;  %v1743_v14 = vmul.f32 1.442695, %v1713_v34 }
 0x408   :  { %v7971_v39 = vpop.eup %7000  ;;  %v1749_v40 = vmul.f32 1.442695, %v1716_v11  ;;  %v1667_v42 = vpop.xlane.xlu0 %1666  ;;  %v1791_v43 = vsel %vm1633_vm9, %v7969_v37, 0.0 }
 0x409   :  { %7008 = vpow2.f32 %v1743_v14  ;;  %v1717_v17 = vsub.f32 %v7849_v28, %v1667_v42  ;;  %v1658_v47 = vpop.xlane.xlu1 %1657  ;;  %v1788_v49 = vsel %vm1633_vm9, %v7971_v39, 0.0  ;;  %v7978_v50 = vpop.eup %7002 }
 0x40a   :  { %7010 = vpow2.f32 %v1749_v40  ;;  %v1714_v20 = vsub.f32 %v7853_v31, %v1658_v47  ;;  %1792 = vadd.xlane.f32.xlu0 %v1791_v43  ;;  %1789 = vadd.xlane.f32.xlu1 %v1788_v49  ;;  %v1782_v60 = vsel %vm1633_vm9, %v7978_v50, 0.0 }
 0x40b   :  { %v1751_v55 = vmul.f32 1.442695, %v1717_v17 }
 0x40c   :  { %v1745_v57 = vmul.f32 1.442695, %v1714_v20 }
 0x40d   :  { %7012 = vpow2.f32 %v1751_v55 }
 0x40e   :  { %7014 = vpow2.f32 %v1745_v57  ;;  %1783 = vadd.xlane.f32.xlu1 %v1782_v60 }
 0x40f   :  { %v7983_v28 = vpop.eup %7004 }
 0x410   :  { %v7985_v61 = vpop.eup %7006  ;;  %v1803_v62 = vsel %vm1640_vm8, %v7983_v28, 0.0 }
 0x411   :  { %v1679_v63 = vpop.xlane.xlu0 %1678  ;;  %1804 = vadd.xlane.f32.xlu0 %v1803_v62  ;;  %v1812_v31 = vsel %vm1640_vm8, %v7985_v61, 0.0 }
 0x412   :  { %v1721_v1 = vsub.f32 %v7865_v44, %v1679_v63  ;;  %1813 = vadd.xlane.f32.xlu1 %v1812_v31 }
 0x413   :  { %v7992_v3 = vpop.eup %7008 }
 0x414   :  { %v7994_v4 = vpop.eup %7010  ;;  %v1759_v5 = vmul.f32 1.442695, %v1721_v1  ;;  %v1688_v7 = vpop.xlane.xlu1 %1687  ;;  %v1797_v8 = vsel %vm1633_vm9, %v7992_v3, 0.0 }
 0x415   :  { %v1724_v27 = vsub.f32 %v7877_v59, %v1688_v7  ;;  %v1673_v9 = vpop.xlane.xlu0 %1672  ;;  %1798 = vadd.xlane.f32.xlu0 %v1797_v8  ;;  %v1806_v10 = vsel %vm1633_vm9, %v7994_v4, 0.0 }
 0x416   :  { %7016 = vpow2.f32 %v1759_v5  ;;  %v1719_v44 = vsub.f32 %v7872_v54, %v1673_v9  ;;  %1807 = vadd.xlane.f32.xlu1 %v1806_v10 }
 0x417   :  { %v8002_v29 = vpop.eup %7012  ;;  %v1765_v41 = vmul.f32 1.442695, %v1724_v27 }
 0x418   :  { %v8004_v12 = vpop.eup %7014  ;;  %v1755_v46 = vmul.f32 1.442695, %v1719_v44  ;;  %v1682_v13 = vpop.xlane.xlu1 %1681  ;;  %v1809_v51 = vsel %vm1633_vm9, %v8002_v29, 0.0 }
 0x419   :  { %7018 = vpow2.f32 %v1765_v41  ;;  %v1722_v59 = vsub.f32 %v7884_v0, %v1682_v13  ;;  %v1685_v52 = vpop.xlane.xlu0 %1684  ;;  %1810 = vadd.xlane.f32.xlu0 %v1809_v51  ;;  %v1800_v18 = vsel %vm1633_vm9, %v8004_v12, 0.0 }
 0x41a   :  { %7020 = vpow2.f32 %v1755_v46  ;;  %1801 = vadd.xlane.f32.xlu1 %v1800_v18  ;;  %v1723_v56 = vsub.f32 %v7888_v2, %v1685_v52 }
 0x41b   :  { %v1761_v54 = vmul.f32 1.442695, %v1722_v59 }
 0x41c   :  { %v1676_v58 = vpop.xlane.xlu1 %1675  ;;  %v1763_v32 = vmul.f32 1.442695, %v1723_v56 }
 0x41d   :  { %7022 = vpow2.f32 %v1761_v54  ;;  %v1720_v19 = vsub.f32 %v7897_v6, %v1676_v58 }
 0x41f   :  { %v1757_v23 = vmul.f32 1.442695, %v1720_v19 }
 0x420   :  { %v8013_v30 = vpop.eup %7016 }
 0x421   :  { %7024 = vpow2.f32 %v1757_v23  ;;  %v1821_v33 = vsel %vm1640_vm8, %v8013_v30, 0.0 }
 0x422   :  { %v1697_v0 = vpop.xlane.xlu0 %1696  ;;  %1822 = vadd.xlane.f32.xlu1 %v1821_v33  ;;  %7026 = vpow2.f32 %v1763_v32 }
 0x423   :  { %v1727_v34 = vsub.f32 %v7907_v22, %v1697_v0  ;;  %v8018_v36 = vpop.eup %7018 }
 0x424   :  { %v8020_v11 = vpop.eup %7020  ;;  %v1830_v6 = vsel %vm1640_vm8, %v8018_v36, 0.0 }
 0x425   :  { %v1771_v2 = vmul.f32 1.442695, %v1727_v34  ;;  %v1706_v14 = vpop.xlane.xlu1 %1705  ;;  %v1815_v42 = vsel %vm1633_vm9, %v8020_v11, 0.0 }
 0x426   :  { %v1730_v40 = vsub.f32 %v7919_v38, %v1706_v14  ;;  %v1691_v43 = vpop.xlane.xlu0 %1690  ;;  %1816 = vadd.xlane.f32.xlu0 %v1815_v42  ;;  %1831 = vadd.xlane.f32.xlu1 %v1830_v6 }
 0x427   :  { %v1725_v22 = vsub.f32 %v7914_v35, %v1691_v43  ;;  %v8028_v17 = vpop.eup %7022  ;;  %7028 = vpow2.f32 %v1771_v2 }
 0x428   :  { %v1777_v47 = vmul.f32 1.442695, %v1730_v40  ;;  %v1824_v55 = vsel %vm1633_vm9, %v8028_v17, 0.0 }
 0x429   :  { %v1767_v49 = vmul.f32 1.442695, %v1725_v22  ;;  %v1700_v20 = vpop.xlane.xlu1 %1699 }
 0x42a   :  { %v1728_v57 = vsub.f32 %v7926_v45, %v1700_v20  ;;  %v1703_v38 = vpop.xlane.xlu0 %1702  ;;  %1825 = vadd.xlane.f32.xlu1 %v1824_v55 }
 0x42b   :  { %7030 = vpow2.f32 %v1767_v49  ;;  %v8033_v60 = vpop.eup %7024  ;;  %v1729_v45 = vsub.f32 %v7930_v48, %v1703_v38 }
 0x42c   :  { %7032 = vpow2.f32 %v1777_v47  ;;  %v1773_v62 = vmul.f32 1.442695, %v1728_v57  ;;  %v1818_v63 = vsel %vm1633_vm9, %v8033_v60, 0.0  ;;  %v8038_v5 = vpop.eup %7026 }
 0x42d   :  { %v1694_v35 = vpop.xlane.xlu1 %1693  ;;  %v1827_v27 = vsel %vm1633_vm9, %v8038_v5, 0.0  ;;  %v1775_v10 = vmul.f32 1.442695, %v1729_v45 }
 0x42e   :  { %v1726_v31 = vsub.f32 %v7937_v53, %v1694_v35  ;;  %v895_v1 = vpop.permute.xlu0 %894  ;;  %1819 = vadd.xlane.f32.xlu1 %v1818_v63  ;;  %7034 = vpow2.f32 %v1773_v62 }
 0x42f   :  { %903 = vst.msk [vmem:[#allocation5 + $0x58] sm:$0xf] %vm603_vm6, %v895_v1  ;;  %v6904_v1 = vld [vmem:[#allocation5 + $0x3c] sm:$0xff]  }
 0x430   :  { %v1769_v7 = vmul.f32 1.442695, %v1726_v31 }
 0x431   :  { %v893_v8 = vpop.permute.xlu1 %892  ;;  %v8045_v9 = vpop.eup %7028 }
 0x432   :  { %902 = vst.msk [vmem:[#allocation5 + $0x54] sm:$0xf] %vm603_vm6, %v893_v8  ;;  %1828 = vadd.xlane.f32.xlu1 %v1827_v27  ;;  %7036 = vpow2.f32 %v1769_v7  ;;  %v1839_v44 = vsel %vm1640_vm8, %v8045_v9, 0.0 }
 0x433   :  { %7038 = vpow2.f32 %v1775_v10  ;;  %v6905_v10 = vld [vmem:[#allocation5 + $0x30] sm:$0xff]  }
 0x435   :  { %v8047_v53 = vpop.eup %7030 }
 0x436   :  { %v1833_v48 = vsel %vm1633_vm9, %v8047_v53, 0.0  ;;  %v8053_v41 = vpop.eup %7032  ;;  %1840 = vadd.xlane.f32.xlu1 %v1839_v44 }
 0x437   :  { %1834 = vadd.xlane.f32.xlu0 %v1833_v48  ;;  %v1848_v46 = vsel %vm1640_vm8, %v8053_v41, 0.0 }
 0x438   :  { %v8057_v13 = vpop.eup %7034 }
 0x439   :  { %v1842_v51 = vsel %vm1633_vm9, %v8057_v13, 0.0 }
 0x43a   :  { %1849 = vadd.xlane.f32.xlu1 %v1848_v46 }
 0x43c   :  { %v8061_v59 = vpop.eup %7036 }
 0x43d   :  { %v1836_v52 = vsel %vm1633_vm9, %v8061_v59, 0.0  ;;  %v8065_v18 = vpop.eup %7038 }
 0x43e   :  { %1843 = vadd.xlane.f32.xlu1 %v1842_v51  ;;  %v1845_v54 = vsel %vm1633_vm9, %v8065_v18, 0.0 }
 0x442   :  { %1837 = vadd.xlane.f32.xlu1 %v1836_v52 }
 0x446   :  { %1846 = vadd.xlane.f32.xlu1 %v1845_v54 }
 0x44d   :  { %896 = vrot.lane.b32.xlu0 %v7510_v25, %s9160_s29  ;;  %s9205_s29 = smov 40  }
 0x457   :  { %857 = vrot.lane.b32.xlu1 %v7510_v25, %s9176_s2  ;;  %s9201_s2 = smov 56  }
 0x48e   :  { %v1787_v56 = vpop.xlane.xlu0 %1786 }
 0x48f   :  { %v1796_v58 = vpop.xlane.xlu1 %1795 }
 0x490   :  { %7040 = vrcp.f32 %v1796_v58 }
 0x491   :  { %7042 = vrcp.f32 %v1787_v56 }
 0x493   :  { %v1781_v19 = vpop.xlane.xlu0 %1780 }
 0x497   :  { %v1793_v23 = vpop.xlane.xlu0 %1792  ;;  %v1790_v32 = vpop.xlane.xlu1 %1789 }
 0x498   :  { %7044 = vrcp.f32 %v1793_v23 }
 0x499   :  { %7046 = vrcp.f32 %v1790_v32 }
 0x49a   :  { %7048 = vrcp.f32 %v1781_v19  ;;  %v7041_v2 = vpop.eup %7040 }
 0x49b   :  { %v1784_v0 = vpop.xlane.xlu1 %1783  ;;  %v7043_v14 = vpop.eup %7042  ;;  %v1880_v22 = vmul.f32 %v7041_v2, %v7955_v16  ;;  %v6902_v16 = vld [vmem:[#allocation5 + $0x2c] ss:$0 sps:$4 sm:$0x11]  }
 0x49c   :  { %7050 = vrcp.f32 %v1784_v0  ;;  %v1877_v38 = vmul.f32 %v7043_v14, %v7953_v15  ;;  %v6903_v15 = vld [vmem:[#allocation5 + $0x20] ss:$0 sps:$4 sm:$0x11]   ;;  %v6908_v2 = vld [vmem:[#allocation5 + $0x48] sm:$0xff]  }
 0x49d   :  { %v1902_v35 = vpack.c.bf16 %v1880_v22, %v1880_v22  ;;  %v2064_v27 = vsel %vm1930_vm7, %v6903_v15, 0 }
 0x49e   :  { %v1805_v33 = vpop.xlane.xlu0 %1804  ;;  %v1900_v31 = vpack.c.bf16 %v1877_v38, %v1877_v38 }
 0x49f   :  { %v1814_v34 = vpop.xlane.xlu1 %1813  ;;  %7052 = vrcp.f32 %v1805_v33 }
 0x4a0   :  { %7054 = vrcp.f32 %v1814_v34 }
 0x4a2   :  { %v7045_v6 = vpop.eup %7044  ;;  %v1799_v40 = vpop.xlane.xlu0 %1798 }
 0x4a3   :  { %v7047_v42 = vpop.eup %7046  ;;  %v1808_v25 = vpop.xlane.xlu1 %1807  ;;  %v1879_v43 = vmul.f32 %v7045_v6, %v7969_v37 }
 0x4a4   :  { %v7049_v47 = vpop.eup %7048  ;;  %v1878_v49 = vmul.f32 %v7047_v42, %v7971_v39  ;;  %7056 = vrcp.f32 %v1808_v25 }
 0x4a5   :  { %7058 = vrcp.f32 %v1799_v40  ;;  %v1875_v63 = vmul.f32 %v7049_v47, %v7963_v26 }
 0x4a6   :  { %v7051_v20 = vpop.eup %7050  ;;  %v1811_v55 = vpop.xlane.xlu0 %1810  ;;  %v1901_v57 = vpack.c.bf16 %v1879_v43, %v1878_v49 }
 0x4a7   :  { %7060 = vrcp.f32 %v1811_v55  ;;  %v1802_v62 = vpop.xlane.xlu1 %1801  ;;  %v1876_v37 = vmul.f32 %v7051_v20, %v7978_v50  ;;  %v2130_v50 = vsel %vm1930_vm7, %v6902_v16, 0 }
 0x4a8   :  { %6513 = vmatprep.mubr.msk.bf16.mxu0 %vm1633_vm9, %v1901_v57  ;;  %7062 = vrcp.f32 %v1802_v62 }
 0x4a9   :  { %6514 = vmatmul.mubr.msk.bf16.vlgmr.msra.gmra.mrb[32].mxu0 %vm1633_vm9, %v1902_v35  ;;  %v1899_v39 = vpack.c.bf16 %v1876_v37, %v1875_v63  ;;  %v7053_v26 = vpop.eup %7052 }
 0x4aa   :  { %6526 = vmatpush3.bf16.msra.mxu0 %v7770_v24  ;;  %v7055_v45 = vpop.eup %7054  ;;  %v1883_v52 = vmul.f32 %v7053_v26, %v7983_v28  ;;  %v6906_v28 = vld [vmem:[#allocation5 + $0x38] ss:$0 sps:$4 sm:$0x11]  }
 0x4ab   :  { %6800 = vmatprep.subr.msk.bf16.mxu0 %vm1930_vm7, %v6902_v16  ;;  %6505 = vmatprep.mubr.msk.bf16.mxu1 %vm1633_vm9, %v1899_v39  ;;  %v1886_v48 = vmul.f32 %v7055_v45, %v7985_v61  ;;  %v2196_v34 = vsel %vm1930_vm7, %v6906_v28, 0 }
 0x4ac   :  { %6506 = vmatmul.mubr.msk.bf16.vlgmr.msra.gmra.mrb[36].mxu1 %vm1633_vm9, %v1900_v31  ;;  %v1904_v0 = vpack.c.bf16 %v1883_v52, %v1883_v52 }
 0x4ad   :  { %6518 = vmatpush3.bf16.msra.mxu1 %v7765_v21  ;;  %v1906_v32 = vpack.c.bf16 %v1886_v48, %v1886_v48 }
 0x4ae   :  { %6528 = vmatpush3.bf16.msra.mxu0 %v2130_v50  ;;  %6799 = vmatprep.subr.msk.bf16.mxu1 %vm1930_vm7, %v6903_v15  ;;  %v7057_v7 = vpop.eup %7056 }
 0x4af   :  { %6541 = vmatprep.subr.bf16.mxu0 %v6904_v1  ;;  %v1823_v24 = vpop.xlane.xlu1 %1822  ;;  %v7059_v8 = vpop.eup %7058  ;;  %v1884_v21 = vmul.f32 %v7057_v7, %v7994_v4  ;;  %v6907_v4 = vld [vmem:[#allocation5 + $0x44] ss:$0 sps:$4 sm:$0x11]  }
 0x4b0   :  { %v1881_v56 = vmul.f32 %v7059_v8, %v7992_v3  ;;  %7064 = vrcp.f32 %v1823_v24 }
 0x4b1   :  { %v7061_v44 = vpop.eup %7060  ;;  %6520 = vmatpush3.bf16.msra.mxu1 %v2064_v27 }
 0x4b2   :  { %v7063_v46 = vpop.eup %7062  ;;  %6533 = vmatprep.subr.bf16.mxu1 %v6905_v10  ;;  %v1885_v51 = vmul.f32 %v7061_v44, %v8002_v29  ;;  %v2262_v29 = vsel %vm1930_vm7, %v6907_v4, 0 }
 0x4b3   :  { %v1832_v54 = vpop.xlane.xlu1 %1831  ;;  %v1882_v58 = vmul.f32 %v7063_v46, %v8004_v12  ;;  %v1817_v61 = vpop.xlane.xlu0 %1816  ;;  %v6909_v12 = vld [vmem:[#allocation5 + $0x54] sm:$0xff]  }
 0x4b4   :  { %v1905_v19 = vpack.c.bf16 %v1885_v51, %v1884_v21  ;;  %7066 = vrcp.f32 %v1817_v61 }
 0x4b5   :  { %v1903_v23 = vpack.c.bf16 %v1882_v58, %v1881_v56 }
 0x4b6   :  { %6529 = vmatprep.mubr.msk.bf16.mxu0 %vm1633_vm9, %v1905_v19 }
 0x4b7   :  { %6521 = vmatprep.mubr.msk.bf16.mxu1 %vm1633_vm9, %v1903_v23  ;;  %v1826_v33 = vpop.xlane.xlu1 %1825  ;;  %6530 = vmatmul.mubr.msk.bf16.vlgmr.msra.gmra.mrb[36].mxu0 %vm1633_vm9, %v1906_v32 }
 0x4b8   :  { %6522 = vmatmul.mubr.msk.bf16.vlgmr.msra.gmra.mrb[40].mxu1 %vm1633_vm9, %v1904_v0  ;;  %6542 = vmatpush3.bf16.msra.mxu0 %v6904_v1 }
 0x4b9   :  { %6534 = vmatpush3.bf16.msra.mxu1 %v6905_v10  ;;  %6802 = vmatprep.subr.msk.bf16.mxu0 %vm1930_vm7, %v6907_v4 }
 0x4ba   :  { %6801 = vmatprep.subr.msk.bf16.mxu1 %vm1930_vm7, %v6906_v28  ;;  %v7065_v6 = vpop.eup %7064 }
 0x4bb   :  { %v1820_v3 = vpop.xlane.xlu1 %1819  ;;  %v1889_v22 = vmul.f32 %v7065_v6, %v8013_v30 }
 0x4bc   :  { %7068 = vrcp.f32 %v1820_v3  ;;  %6544 = vmatpush3.bf16.msra.mxu0 %v2262_v29 }
 0x4bd   :  { %7070 = vrcp.f32 %v1832_v54  ;;  %6536 = vmatpush3.bf16.msra.mxu1 %v2196_v34  ;;  %6557 = vmatprep.subr.bf16.mxu0 %v6909_v12  ;;  %v1908_v63 = vpack.c.bf16 %v1889_v22, %v1889_v22 }
 0x4be   :  { %7072 = vrcp.f32 %v1826_v33  ;;  %6549 = vmatprep.subr.bf16.mxu1 %v6908_v2  ;;  %v7067_v25 = vpop.eup %7066 }
 0x4bf   :  { %v1829_v14 = vpop.xlane.xlu1 %1828  ;;  %v1887_v55 = vmul.f32 %v7067_v25, %v8020_v11 }
 0x4c0   :  { %7074 = vrcp.f32 %v1829_v14 }
 0x4c3   :  { %v1841_v40 = vpop.xlane.xlu1 %1840 }
 0x4c4   :  { %v1835_v42 = vpop.xlane.xlu0 %1834 }
 0x4c5   :  { %7076 = vrcp.f32 %v1835_v42 }
 0x4c6   :  { %v7069_v43 = vpop.eup %7068  ;;  %7078 = vrcp.f32 %v1841_v40 }
 0x4c7   :  { %v7071_v47 = vpop.eup %7070  ;;  %v1850_v49 = vpop.xlane.xlu1 %1849  ;;  %v1888_v57 = vmul.f32 %v7069_v43, %v8033_v60 }
 0x4c8   :  { %v897_v20 = vpop.permute.xlu0 %896  ;;  %v7073_v38 = vpop.eup %7072  ;;  %v1892_v37 = vmul.f32 %v7071_v47, %v8018_v36 }
 0x4c9   :  { %904 = vst.msk [vmem:[#allocation5 + $0x5c] sm:$0x1] %vm606_vm5, %v897_v20  ;;  %v1907_v62 = vpack.c.bf16 %v1888_v57, %v1887_v55  ;;  %v1890_v30 = vmul.f32 %v7073_v38, %v8028_v17 }
 0x4ca   :  { %v7075_v35 = vpop.eup %7074  ;;  %v1910_v60 = vpack.c.bf16 %v1892_v37, %v1892_v37 }
 0x4cb   :  { %6537 = vmatprep.mubr.msk.bf16.mxu1 %vm1633_vm9, %v1907_v62  ;;  %v1844_v16 = vpop.xlane.xlu1 %1843  ;;  %v1891_v39 = vmul.f32 %v7075_v35, %v8038_v5 }
 0x4cc   :  { %6538 = vmatmul.mubr.msk.bf16.vlgmr.msra.gmra.mrb[44].mxu1 %vm1633_vm9, %v1908_v63 }
 0x4cd   :  { %6550 = vmatpush3.bf16.msra.mxu1 %v6908_v2  ;;  %v1909_v11 = vpack.c.bf16 %v1891_v39, %v1890_v30 }
 0x4cf   :  { %6545 = vmatprep.mubr.msk.bf16.mxu0 %vm1633_vm9, %v1909_v11  ;;  %v1838_v31 = vpop.xlane.xlu1 %1837  ;;  %v7077_v26 = vpop.eup %7076 }
 0x4d0   :  { %v6910_v15 = vld [vmem:[#allocation5 + $0x5c] ss:$0 sps:$4 sm:$0x11]   ;;  %7080 = vrcp.f32 %v1838_v31  ;;  %6546 = vmatmul.mubr.msk.bf16.vlgmr.msra.gmra.mrb[40].mxu0 %vm1633_vm9, %v1910_v60  ;;  %v7079_v50 = vpop.eup %7078  ;;  %v1893_v7 = vmul.f32 %v7077_v26, %v8047_v53 }
 0x4d1   :  { %7082 = vrcp.f32 %v1850_v49  ;;  %6558 = vmatpush3.bf16.msra.mxu0 %v6909_v12  ;;  %v2394_v36 = vsel %vm1930_vm7, %v6910_v15, 0  ;;  %v1895_v51 = vmul.f32 %v7079_v50, %v8045_v9 }
 0x4d2   :  { %7084 = vrcp.f32 %v1844_v16  ;;  %6804 = vmatprep.subr.msk.bf16.mxu0 %vm1930_vm7, %v6910_v15  ;;  %v6912_v15 = vld [vmem:[%s9112_s7] sm:$0xff]  }
 0x4d3   :  { %v1847_v17 = vpop.xlane.xlu1 %1846  ;;  %v1912_v54 = vpack.c.bf16 %v1895_v51, %v1895_v51 }
 0x4d4   :  { %7086 = vrcp.f32 %v1847_v17 }
 0x4d5   :  { %6560 = vmatpush3.bf16.msra.mxu0 %v2394_v36  ;;  %v6913_v36 = vld [vmem:[%s9112_s7 + $0x8] sm:$0xff]  }
 0x4d7   :  { %v858_v5 = vpop.permute.xlu1 %857 }
 0x4d8   :  { %865 = vst.msk [vmem:[#allocation5 + $0x50] sm:$0x1] %vm606_vm5, %v858_v5 }
 0x4da   :  { %v7081_v1 = vpop.eup %7080 }
 0x4db   :  { %v7083_v45 = vpop.eup %7082  ;;  %v1894_v24 = vmul.f32 %v7081_v1, %v8061_v59 }
 0x4dc   :  { %v7085_v8 = vpop.eup %7084  ;;  %v1898_v44 = vmul.f32 %v7083_v45, %v8053_v41 }
 0x4dd   :  { %v1911_v27 = vpack.c.bf16 %v1894_v24, %v1893_v7  ;;  %v1896_v46 = vmul.f32 %v7085_v8, %v8057_v13 }
 0x4de   :  { %v7087_v10 = vpop.eup %7086  ;;  %v1914_v59 = vpack.c.bf16 %v1898_v44, %v1898_v44 }
 0x4df   :  { %6553 = vmatprep.mubr.msk.bf16.mxu1 %vm1633_vm9, %v1911_v27  ;;  %v6911_v48 = vld [vmem:[#allocation5 + $0x50] ss:$0 sps:$4 sm:$0x11]   ;;  %v1897_v21 = vmul.f32 %v7087_v10, %v8065_v18 }
 0x4e0   :  { %6803 = vmatprep.subr.msk.bf16.mxu1 %vm1930_vm7, %v6911_v48  ;;  %v2328_v53 = vsel %vm1930_vm7, %v6911_v48, 0 }
 0x4e1   :  { %v1913_v52 = vpack.c.bf16 %v1897_v21, %v1896_v46  ;;  %6552 = vmatpush3.bf16.msra.mxu1 %v2328_v53 }
 0x4e2   :  { %6565 = vmatprep.subr.bf16.mxu1 %v6912_v15 }
 0x4e3   :  { %6561 = vmatprep.mubr.msk.bf16.mxu0 %vm1633_vm9, %v1913_v52 }
 0x4e4   :  { %6562 = vmatmul.mubr.msk.bf16.vlgmr.msra.gmra.mrb[44].mxu0 %vm1633_vm9, %v1914_v59  ;;  %6554 = vmatmul.mubr.msk.bf16.vlgmr.msra.gmra.mrb[48].mxu1 %vm1633_vm9, %v1912_v54 }
 0x4e5   :  { %6566 = vmatpush3.bf16.msra.mxu1 %v6912_v15 }
 0x4e6   :  { %6567 = vmatprep.subr.bf16.mxu1 %v6913_v36 }
 0x4e9   :  { %6568 = vmatpush3.bf16.msra.mxu1 %v6913_v36 }
 0x57c   :  { %v6515_v41 = vpop.f32.mrb[32].mxu0 }
 0x57d   :  { %v6143_v13 = vpack.c.bf16 %v6515_v41, %v6515_v41  ;;  %v2034_v56 = vpop.f32.mrb[33].mxu0 }
 0x57e   :  { %v6516_v18 = vpop.f32.mrb[34].mxu0  ;;  %v6141_v0 = vpack.c.bf16 %v2034_v56, %v2034_v56 }
 0x57f   :  { %2474 = vrot.lane.b32.xlu1 %v6143_v13, %s9156_s1  ;;  %v2037_v9 = vpop.f32.mrb[35].mxu0  ;;  %v6507_v58 = vpop.f32.mrb[36].mxu1 }
 0x580   :  { %v6142_v19 = vpack.c.bf16 %v2037_v9, %v2037_v9  ;;  %v6140_v23 = vpack.c.bf16 %v6507_v58, %v6507_v58  ;;  %v1968_v32 = vpop.f32.mrb[37].mxu1 }
 0x581   :  { %v6138_v61 = vpack.c.bf16 %v1968_v32, %v1968_v32  ;;  %v6508_v33 = vpop.f32.mrb[38].mxu1 }
 0x582   :  { %2459 = vst.msk [vmem:[#allocation6 + $0x8] sm:$0x1] %vm606_vm5, %v6140_v23  ;;  %2472 = vrot.lane.b32.xlu0 %v6142_v19, %s9156_s1  ;;  %v1971_v4 = vpop.f32.mrb[39].mxu1 }
 0x583   :  { %2457 = vst.msk [vmem:[#allocation6] sm:$0xf] %vm603_vm6, %v6138_v61  ;;  %2470 = vrot.lane.b32.xlu1 %v6141_v0, %s9156_s1  ;;  %v6139_v28 = vpack.c.bf16 %v1971_v4, %v1971_v4  ;;  %s9172_s1 = smov 24  }
 0x585   :  { %2458 = vst.msk [vmem:[#allocation6 + $0x4] sm:$0xf] %vm603_vm6, %v6139_v28 }
 0x58a   :  { %v6531_v3 = vpop.f32.mrb[36].mxu0 }
 0x58b   :  { %v6523_v29 = vpop.f32.mrb[40].mxu1  ;;  %v6149_v12 = vpack.c.bf16 %v6531_v3, %v6531_v3  ;;  %v2166_v34 = vpop.f32.mrb[37].mxu0 }
 0x58c   :  { %v6146_v2 = vpack.c.bf16 %v6523_v29, %v6523_v29  ;;  %v2100_v14 = vpop.f32.mrb[41].mxu1  ;;  %v6532_v6 = vpop.f32.mrb[38].mxu0  ;;  %v6147_v43 = vpack.c.bf16 %v2166_v34, %v2166_v34  ;;  %v5932_v34 = vld [vmem:[%s9113_s8] ss:$0 sm:$0xff] }
 0x58d   :  { %v6524_v40 = vpop.f32.mrb[42].mxu1  ;;  %2522 = vrot.lane.b32.xlu1 %v6149_v12, %s9154_s0  ;;  %v2169_v42 = vpop.f32.mrb[39].mxu0  ;;  %v6144_v22 = vpack.c.bf16 %v2100_v14, %v2100_v14 }
 0x58e   :  { %2498 = vrot.lane.b32.xlu0 %v6146_v2, %s9158_s22  ;;  %v2103_v25 = vpop.f32.mrb[43].mxu1  ;;  %v6148_v49 = vpack.c.bf16 %v2169_v42, %v2169_v42 }
 0x58f   :  { %v6145_v47 = vpack.c.bf16 %v2103_v25, %v2103_v25 }
 0x591   :  { %2518 = vrot.lane.b32.xlu1 %v6147_v43, %s9154_s0  ;;  %v7232_v43 = vld [vmem:[#allocation2] sm:$0xff] }
 0x592   :  { %2494 = vrot.lane.b32.xlu0 %v6144_v22, %s9158_s22 }
 0x595   :  { %2496 = vrot.lane.b32.xlu1 %v6145_v47, %s9158_s22  ;;  %s9202_s22 = smov 52  }
 0x596   :  { %2520 = vrot.lane.b32.xlu0 %v6148_v49, %s9154_s0  ;;  %v7233_v49 = vld [vmem:[#allocation2 + $0x10] sm:$0x3]  ;;  %s9206_s0 = smov 36  }
 0x59f   :  { %v6539_v20 = vpop.f32.mrb[44].mxu1 }
 0x5a0   :  { %v6152_v55 = vpack.c.bf16 %v6539_v20, %v6539_v20  ;;  %v2232_v57 = vpop.f32.mrb[45].mxu1 }
 0x5a1   :  { %v6540_v38 = vpop.f32.mrb[46].mxu1  ;;  %v6150_v63 = vpack.c.bf16 %v2232_v57, %v2232_v57 }
 0x5a2   :  { %2546 = vrot.lane.b32.xlu0 %v6152_v55, %s9174_s30  ;;  %v2235_v62 = vpop.f32.mrb[47].mxu1  ;;  %v7234_v55 = vld [vmem:[#allocation2 + $0x8] sm:$0xff] }
 0x5a3   :  { %v6547_v35 = vpop.f32.mrb[40].mxu0  ;;  %v6151_v31 = vpack.c.bf16 %v2235_v62, %v2235_v62 }
 0x5a4   :  { %v6155_v37 = vpack.c.bf16 %v6547_v35, %v6547_v35  ;;  %v2298_v16 = vpop.f32.mrb[41].mxu0 }
 0x5a5   :  { %v6548_v30 = vpop.f32.mrb[42].mxu0  ;;  %v6153_v60 = vpack.c.bf16 %v2298_v16, %v2298_v16 }
 0x5a6   :  { %2542 = vrot.lane.b32.xlu0 %v6150_v63, %s9174_s30  ;;  %2570 = vrot.lane.b32.xlu1 %v6155_v37, %s9162_s21  ;;  %v2301_v39 = vpop.f32.mrb[43].mxu0 }
 0x5a7   :  { %v6154_v11 = vpack.c.bf16 %v2301_v39, %v2301_v39 }
 0x5aa   :  { %2566 = vrot.lane.b32.xlu1 %v6153_v60, %s9162_s21  ;;  %2568 = vrot.lane.b32.xlu0 %v6154_v11, %s9162_s21  ;;  %s9170_s21 = smov 28  }
 0x5ae   :  { %2544 = vrot.lane.b32.xlu1 %v6151_v31, %s9174_s30  ;;  %s9209_s30 = smov 4  }
 0x5b7   :  { %v6563_v17 = vpop.f32.mrb[44].mxu0  ;;  %v6555_v26 = vpop.f32.mrb[48].mxu1 }
 0x5b8   :  { %v2430_v5 = vpop.f32.mrb[45].mxu0  ;;  %v6158_v1 = vpack.c.bf16 %v6555_v26, %v6555_v26  ;;  %v2364_v7 = vpop.f32.mrb[49].mxu1  ;;  %v6161_v48 = vpack.c.bf16 %v6563_v17, %v6563_v17 }
 0x5b9   :  { %v6159_v50 = vpack.c.bf16 %v2430_v5, %v2430_v5  ;;  %v6564_v45 = vpop.f32.mrb[46].mxu0  ;;  %v6556_v8 = vpop.f32.mrb[50].mxu1  ;;  %v6156_v44 = vpack.c.bf16 %v2364_v7, %v2364_v7  ;;  %v6917_v7 = vld [vmem:[%s9116_s11 + $0x8] sm:$0xff]  }
 0x5ba   :  { %v2433_v24 = vpop.f32.mrb[47].mxu0  ;;  %2594 = vrot.lane.b32.xlu0 %v6158_v1, %s9172_s1  ;;  %v2367_v27 = vpop.f32.mrb[51].mxu1  ;;  %v6916_v45 = vld [vmem:[%s9116_s11] sm:$0xff]  }
 0x5bb   :  { %2614 = vrot.lane.b32.xlu1 %v6159_v50, %s9170_s21  ;;  %v6157_v10 = vpack.c.bf16 %v2367_v27, %v2367_v27  ;;  %v6160_v46 = vpack.c.bf16 %v2433_v24, %v2433_v24  ;;  %6573 = vmatprep.subr.bf16.mxu0 %v6916_v45 }
 0x5bc   :  { %6574 = vmatpush3.bf16.msra.mxu0 %v6916_v45 }
 0x5bd   :  { %6575 = vmatprep.subr.bf16.mxu0 %v6917_v7 }
 0x5be   :  { %2590 = vrot.lane.b32.xlu0 %v6156_v44, %s9172_s1 }
 0x5bf   :  { %2592 = vrot.lane.b32.xlu1 %v6157_v10, %s9172_s1  ;;  %s9199_s1 = smov 64  }
 0x5c0   :  { %6576 = vmatpush3.bf16.msra.mxu0 %v6917_v7 }
 0x5c2   :  { %2616 = vrot.lane.b32.xlu0 %v6160_v46, %s9170_s21 }
 0x5c3   :  { %2618 = vrot.lane.b32.xlu1 %v6161_v48, %s9170_s21  ;;  %s9203_s21 = smov 48  }
 0x5f1   :  { %v2475_v21 = vpop.permute.xlu1 %2474 }
 0x5f2   :  { %2483 = vst.msk [vmem:[#allocation6 + $0x8] sm:$0x1] %vm2482_vm10, %v2475_v21 }
 0x5f4   :  { %v2473_v51 = vpop.permute.xlu0 %2472 }
 0x5f5   :  { %2481 = vst.msk [vmem:[#allocation6 + $0x4] sm:$0xf] %vm2479_vm11, %v2473_v51  ;;  %v2471_v53 = vpop.permute.xlu1 %2470 }
 0x5f6   :  { %2480 = vst.msk [vmem:[#allocation6] sm:$0xf] %vm2479_vm11, %v2471_v53 }
 0x5ff   :  { %v2523_v52 = vpop.permute.xlu1 %2522 }
 0x600   :  { %v2499_v59 = vpop.permute.xlu0 %2498 }
 0x601   :  { %2507 = vst.msk [vmem:[#allocation6 + $0x8] sm:$0x1] %vm2506_vm12, %v2499_v59 }
 0x602   :  { %2531 = vst.msk [vmem:[#allocation6 + $0x8] sm:$0x1] %vm9164_vm13, %v2523_v52  ;;  %vm9182_vm13 = vcmask 191648   ;;  %v5939_v52 = vld [vmem:[%s9114_s9] ss:$0 sm:$0xff] }
 0x603   :  { %v2519_v54 = vpop.permute.xlu1 %2518 }
 0x604   :  { %v2495_v41 = vpop.permute.xlu0 %2494 }
 0x605   :  { %2504 = vst.msk [vmem:[#allocation6] sm:$0xf] %vm9167_vm14, %v2495_v41 }
 0x606   :  { %2528 = vst.msk [vmem:[#allocation6] sm:$0xf] %vm9165_vm15, %v2519_v54 }
 0x607   :  { %v2497_v13 = vpop.permute.xlu1 %2496 }
 0x608   :  { %v2521_v56 = vpop.permute.xlu0 %2520  ;;  %2505 = vst.msk [vmem:[#allocation6 + $0x4] sm:$0xf] %vm9167_vm14, %v2497_v13  ;;  %vm9180_vm14 = vcmask 257248  }
 0x609   :  { %2529 = vst.msk [vmem:[#allocation6 + $0x4] sm:$0xf] %vm9165_vm15, %v2521_v56  ;;  %vm2602_vm15 = vcmask 221376  }
 0x614   :  { %v2547_v18 = vpop.permute.xlu0 %2546 }
 0x615   :  { %2555 = vst.msk [vmem:[#allocation6 + $0x8] sm:$0x1] %vm9166_vm0, %v2547_v18  ;;  %vm9181_vm0 = vcmask 224448   ;;  %v5940_v18 = vld [vmem:[%s9115_s10] ss:$0 sm:$0xff] }
 0x618   :  { %v2543_v9 = vpop.permute.xlu0 %2542  ;;  %v2571_v58 = vpop.permute.xlu1 %2570 }
 0x619   :  { %2552 = vst.msk [vmem:[#allocation6] sm:$0xf] %vm2551_vm1, %v2543_v9 }
 0x61a   :  { %2579 = vst.msk [vmem:[#allocation6 + $0x8] sm:$0x1] %vm9168_vm3, %v2571_v58  ;;  %vm9169_vm3 = vcmask 254176  }
 0x61c   :  { %v2567_v19 = vpop.permute.xlu1 %2566  ;;  %v2569_v32 = vpop.permute.xlu0 %2568 }
 0x61d   :  { %2576 = vst.msk [vmem:[#allocation6] sm:$0xf] %vm9182_vm13, %v2567_v19 }
 0x620   :  { %v2545_v23 = vpop.permute.xlu1 %2544 }
 0x621   :  { %2553 = vst.msk [vmem:[#allocation6 + $0x4] sm:$0xf] %vm2551_vm1, %v2545_v23 }
 0x622   :  { %2577 = vst.msk [vmem:[#allocation6 + $0x4] sm:$0xf] %vm9182_vm13, %v2569_v32 }
 0x62c   :  { %v2595_v61 = vpop.permute.xlu0 %2594 }
 0x62d   :  { %v2615_v0 = vpop.permute.xlu1 %2614  ;;  %2603 = vst.msk [vmem:[#allocation6 + $0x8] sm:$0x1] %vm2602_vm15, %v2595_v61 }
 0x630   :  { %v2591_v4 = vpop.permute.xlu0 %2590 }
 0x631   :  { %v2593_v33 = vpop.permute.xlu1 %2592  ;;  %2600 = vst.msk [vmem:[#allocation6] sm:$0xf] %vm9181_vm0, %v2591_v4  ;;  %v6918_v4 = vld [vmem:[%s9118_s13] sm:$0xff]  }
 0x632   :  { %2601 = vst.msk [vmem:[#allocation6 + $0x4] sm:$0xf] %vm9181_vm0, %v2593_v33  ;;  %6581 = vmatprep.subr.bf16.mxu1 %v6918_v4 }
 0x633   :  { %2624 = vst.msk [vmem:[#allocation6] sm:$0xf] %vm9180_vm14, %v2615_v0 }
 0x634   :  { %v2617_v3 = vpop.permute.xlu0 %2616 }
 0x635   :  { %v2619_v28 = vpop.permute.xlu1 %2618  ;;  %2625 = vst.msk [vmem:[#allocation6 + $0x4] sm:$0xf] %vm9180_vm14, %v2617_v3  ;;  %v6920_v3 = vld [vmem:[%s9118_s13 + $0x10] sm:$0xff]  }
 0x636   :  { %2627 = vst.msk [vmem:[#allocation6 + $0x8] sm:$0x1] %vm9169_vm3, %v2619_v28  ;;  %vm2727_vm3 = vcmask 254976   ;;  %v6919_v28 = vld [vmem:[%s9118_s13 + $0x8] sm:$0xff]  }
 0x63c   :  { %v6914_v29 = vld [vmem:[#allocation6] sm:$0xff]  }
 0x63d   :  { %v6915_v12 = vld [vmem:[#allocation6 + $0x8] ss:$0 sps:$4 sm:$0x11]   ;;  %6569 = vmatprep.mubr.msk.bf16.mxu1 %vm275_vm4, %v6914_v29  ;;  %v6921_v29 = vld [vmem:[%s9118_s13 + $0x18] sm:$0xff]  }
 0x63e   :  { %6570 = vmatmul.mubr.msk.bf16.vlgmr.msra.gmra.mrb[52].mxu1 %vm275_vm4, %v6915_v12  ;;  %v6922_v12 = vld [vmem:[%s9118_s13 + $0x20] sm:$0xff]  }
 0x63f   :  { %6582 = vmatpush3.bf16.msra.mxu1 %v6918_v4 }
 0x640   :  { %6583 = vmatprep.subr.bf16.mxu1 %v6919_v28 }
 0x643   :  { %6584 = vmatpush3.bf16.msra.mxu1 %v6919_v28 }
 0x644   :  { %6585 = vmatprep.subr.bf16.mxu1 %v6920_v3 }
 0x647   :  { %6586 = vmatpush3.bf16.msra.mxu1 %v6920_v3 }
 0x648   :  { %6587 = vmatprep.subr.bf16.mxu1 %v6921_v29 }
 0x64b   :  { %6588 = vmatpush3.bf16.msra.mxu1 %v6921_v29 }
 0x64c   :  { %6589 = vmatprep.subr.bf16.mxu1 %v6922_v12 }
 0x64f   :  { %6590 = vmatpush3.bf16.msra.mxu1 %v6922_v12 }
 0x711   :  { %v6571_v2 = vpop.f32.mrb[52].mxu1 }
 0x712   :  { %v2702_v14 = vpop.f32.mrb[53].mxu1  ;;  %v2711_v6 = vadd.f32 %v6571_v2, %v5932_v34  ;;  %v6924_v2 = vld [vmem:[%s9118_s13 + $0x30] sm:$0xff]  }
 0x713   :  { %v2703_v40 = vadd.f32 %v5932_v34, %v2702_v14  ;;  %v6572_v42 = vpop.f32.mrb[54].mxu1  ;;  %v6925_v14 = vld [vmem:[%s9118_s13 + $0x38] sm:$0xff]  }
 0x714   :  { %v2705_v25 = vpop.f32.mrb[55].mxu1  ;;  %v2718_v20 = vadd.f32 %v7233_v49, %v2711_v6  ;;  %v5941_v6 = vld [vmem:[%s9117_s12] ss:$0 sm:$0xff] }
 0x715   :  { %v2716_v22 = vadd.f32 %v7232_v43, %v2703_v40  ;;  %v2706_v47 = vadd.f32 %v5932_v34, %v2705_v25  ;;  %v6923_v34 = vld [vmem:[%s9118_s13 + $0x28] sm:$0xff]  }
 0x716   :  { %v2728_v35 = vsel %vm2727_vm3, %v2718_v20, 0.0  ;;  %6591 = vmatprep.subr.bf16.mxu1 %v6923_v34 }
 0x717   :  { %v2717_v57 = vadd.f32 %v7234_v55, %v2706_v47  ;;  %v2721_v38 = vsel %vm275_vm4, %v2716_v22, 0.0  ;;  %6592 = vmatpush3.bf16.msra.mxu1 %v6923_v34 }
 0x718   :  { %2722 = vadd.xlane.f32.xlu0 %v2721_v38  ;;  %6593 = vmatprep.subr.bf16.mxu1 %v6924_v2 }
 0x719   :  { %v2724_v62 = vsel %vm275_vm4, %v2717_v57, 0.0 }
 0x71a   :  { %2725 = vadd.xlane.f32.xlu1 %v2724_v62 }
 0x71b   :  { %6594 = vmatpush3.bf16.msra.mxu1 %v6924_v2 }
 0x71c   :  { %2729 = vadd.xlane.f32.xlu0 %v2728_v35  ;;  %6595 = vmatprep.subr.bf16.mxu1 %v6925_v14 }
 0x71f   :  { %6596 = vmatpush3.bf16.msra.mxu1 %v6925_v14 }
 0x7a5   :  { %v2723_v63 = vpop.xlane.xlu0 %2722 }
 0x7a6   :  { %v2732_v37 = vmul.f32 0.03125, %v2723_v63 }
 0x7a7   :  { %v2726_v16 = vpop.xlane.xlu1 %2725 }
 0x7a8   :  { %v2735_v30 = vsub.f32 %v2716_v22, %v2732_v37  ;;  %v2733_v39 = vmul.f32 0.03125, %v2726_v16 }
 0x7a9   :  { %v2730_v11 = vpop.xlane.xlu0 %2729 }
 0x7aa   :  { %v2736_v60 = vsub.f32 %v2717_v57, %v2733_v39  ;;  %v2734_v31 = vmul.f32 0.03125, %v2730_v11  ;;  %v2738_v15 = vmul.f32 %v2735_v30, %v2735_v30 }
 0x7ac   :  { %v2737_v36 = vsub.f32 %v2718_v20, %v2734_v31  ;;  %v2741_v17 = vsel %vm275_vm4, %v2738_v15, 0.0  ;;  %v2739_v5 = vmul.f32 %v2736_v60, %v2736_v60 }
 0x7ad   :  { %2742 = vadd.xlane.f32.xlu0 %v2741_v17 }
 0x7ae   :  { %v2744_v26 = vsel %vm275_vm4, %v2739_v5, 0.0  ;;  %v2740_v50 = vmul.f32 %v2737_v36, %v2737_v36 }
 0x7af   :  { %2745 = vadd.xlane.f32.xlu1 %v2744_v26 }
 0x7b0   :  { %v2747_v1 = vsel %vm2727_vm3, %v2740_v50, 0.0 }
 0x7b1   :  { %2748 = vadd.xlane.f32.xlu0 %v2747_v1 }
 0x83a   :  { %v2743_v24 = vpop.xlane.xlu0 %2742 }
 0x83b   :  { %v2750_v8 = vmul.f32 0.03125, %v2743_v24 }
 0x83c   :  { %v2746_v27 = vpop.xlane.xlu1 %2745 }
 0x83d   :  { %v2753_v10 = vadd.f32 1e-05, %v2750_v8  ;;  %v2751_v44 = vmul.f32 0.03125, %v2746_v27 }
 0x83e   :  { %v2749_v48 = vpop.xlane.xlu0 %2748 }
 0x83f   :  { %7088 = vrsqrt.f32 %v2753_v10  ;;  %v2754_v46 = vadd.f32 1e-05, %v2751_v44  ;;  %v2752_v21 = vmul.f32 0.03125, %v2749_v48 }
 0x841   :  { %7090 = vrsqrt.f32 %v2754_v46  ;;  %v2755_v51 = vadd.f32 1e-05, %v2752_v21 }
 0x843   :  { %7092 = vrsqrt.f32 %v2755_v51 }
 0x849   :  { %v7089_v53 = vpop.eup %7088 }
 0x84a   :  { %v2759_v59 = vmul.f32 %v7089_v53, %v2735_v30 }
 0x84b   :  { %v7091_v54 = vpop.eup %7090 }
 0x84c   :  { %v2760_v41 = vmul.f32 %v7091_v54, %v2736_v60  ;;  %v2768_v13 = vmul.f32 %v5939_v52, %v2759_v59 }
 0x84d   :  { %v7093_v56 = vpop.eup %7092 }
 0x84e   :  { %v2761_v9 = vmul.f32 %v7093_v56, %v2737_v36  ;;  %v2769_v58 = vmul.f32 %v5939_v52, %v2760_v41  ;;  %v8203_v19 = vadd.f32 %v5940_v18, %v2768_v13 }
 0x850   :  { %v8205_v23 = vadd.f32 %v5940_v18, %v2769_v58  ;;  %v2770_v32 = vmul.f32 %v5939_v52, %v2761_v9 }
 0x852   :  { %v2780_v0 = vpack.c.bf16 %v8205_v23, %v8203_v19  ;;  %v8209_v61 = vadd.f32 %v5940_v18, %v2770_v32 }
 0x854   :  { %6577 = vmatprep.mubr.msk.bf16.mxu0 %vm275_vm4, %v2780_v0  ;;  %v2781_v33 = vpack.c.bf16 %v8209_v61, %v8209_v61 }
 0x856   :  { %6578 = vmatmul.mubr.msk.bf16.vlgmr.msra.gmra.mrb[48].mxu0 %vm275_vm4, %v2781_v33 }
 0x929   :  { %v6579_v40 = vpop.f32.mrb[48].mxu0 }
 0x92a   :  { %v8242_v42 = vadd.f32 %v6579_v40, %v5941_v6  ;;  %v2845_v25 = vpop.f32.mrb[49].mxu0 }
 0x92b   :  { %v8244_v43 = vadd.f32 %v5941_v6, %v2845_v25  ;;  %v6580_v22 = vpop.f32.mrb[50].mxu0 }
 0x92c   :  { %v8247_v47 = vmul.f32 0.70710677, %v8242_v42  ;;  %v2848_v49 = vpop.f32.mrb[51].mxu0 }
 0x92d   :  { %v8250_v20 = vmul.f32 0.70710677, %v8244_v43  ;;  %v8252_v55 = vadd.f32 %v5941_v6, %v2848_v49 }
 0x92e   :  { %v2867_v57 = vand.u32 2147483647, %v8247_v47  ;;  %vm2927_vm14 = vcmp.ge.f32.partialorder %v8247_v47, 0.0 }
 0x92f   :  { %v2865_v38 = vand.u32 2147483647, %v8250_v20  ;;  %v8257_v62 = vmul.f32 0.70710677, %v8252_v55  ;;  %vm2925_vm0 = vcmp.ge.f32.partialorder %v8250_v20, 0.0 }
 0x930   :  { %v2870_v35 = vmul.f32 0.3275911, %v2867_v57  ;;  %v2909_v60 = vsub.f32 0.0, %v2867_v57 }
 0x931   :  { %v2868_v63 = vmul.f32 0.3275911, %v2865_v38  ;;  %v2866_v37 = vand.u32 2147483647, %v8257_v62  ;;  %v2907_v31 = vsub.f32 0.0, %v2865_v38  ;;  %vm2926_vm13 = vcmp.ge.f32.partialorder %v8257_v62, 0.0 }
 0x932   :  { %v2873_v16 = vadd.f32 1.0, %v2870_v35  ;;  %v2912_v36 = vmul.f32 %v2909_v60, %v2867_v57  ;;  %v2861_v60 = vmul.f32 0.5, %v8242_v42 }
 0x933   :  { %v2871_v30 = vadd.f32 1.0, %v2868_v63  ;;  %v2869_v39 = vmul.f32 0.3275911, %v2866_v37  ;;  %v2908_v17 = vsub.f32 0.0, %v2866_v37  ;;  %v2910_v50 = vmul.f32 %v2907_v31, %v2865_v38 }
 0x934   :  { %7094 = vrcp.f32 %v2873_v16  ;;  %v2917_v24 = vmul.f32 1.442695, %v2912_v36  ;;  %v2860_v36 = vmul.f32 0.5, %v8252_v55 }
 0x935   :  { %7096 = vrcp.f32 %v2871_v30  ;;  %v2872_v11 = vadd.f32 1.0, %v2869_v39  ;;  %v2911_v27 = vmul.f32 %v2908_v17, %v2866_v37  ;;  %v2913_v44 = vmul.f32 1.442695, %v2910_v50 }
 0x937   :  { %7098 = vrcp.f32 %v2872_v11  ;;  %v2915_v52 = vmul.f32 1.442695, %v2911_v27 }
 0x938   :  { %7100 = vpow2.f32 %v2917_v24 }
 0x939   :  { %7102 = vpow2.f32 %v2913_v44 }
 0x93a   :  { %7104 = vpow2.f32 %v2915_v52 }
 0x93e   :  { %v7095_v15 = vpop.eup %7094 }
 0x93f   :  { %v7097_v5 = vpop.eup %7096  ;;  %v2882_v26 = vmul.f32 1.0614054, %v7095_v15 }
 0x940   :  { %v2880_v1 = vmul.f32 1.0614054, %v7097_v5 }
 0x941   :  { %v2885_v45 = vadd.f32 -1.4531521, %v2882_v26  ;;  %v7099_v7 = vpop.eup %7098 }
 0x942   :  { %v2883_v8 = vadd.f32 -1.4531521, %v2880_v1  ;;  %v2881_v48 = vmul.f32 1.0614054, %v7099_v7  ;;  %v7101_v29 = vpop.eup %7100  ;;  %v5946_v1 = vld [vmem:[%s9119_s14] ss:$0 sm:$0xff] }
 0x943   :  { %v2888_v10 = vmul.f32 %v7095_v15, %v2885_v45  ;;  %v7103_v34 = vpop.eup %7102 }
 0x944   :  { %v2886_v46 = vmul.f32 %v7097_v5, %v2883_v8  ;;  %v2884_v51 = vadd.f32 -1.4531521, %v2881_v48  ;;  %v7105_v22 = vpop.eup %7104 }
 0x945   :  { %v2891_v21 = vadd.f32 1.4214138, %v2888_v10 }
 0x946   :  { %v2889_v53 = vadd.f32 1.4214138, %v2886_v46  ;;  %v2887_v54 = vmul.f32 %v7099_v7, %v2884_v51 }
 0x947   :  { %v2894_v59 = vmul.f32 %v7095_v15, %v2891_v21 }
 0x948   :  { %v2892_v41 = vmul.f32 %v7097_v5, %v2889_v53  ;;  %v2890_v56 = vadd.f32 1.4214138, %v2887_v54 }
 0x949   :  { %v2897_v13 = vadd.f32 -0.28449672, %v2894_v59 }
 0x94a   :  { %v2895_v18 = vadd.f32 -0.28449672, %v2892_v41  ;;  %v2893_v58 = vmul.f32 %v7099_v7, %v2890_v56 }
 0x94b   :  { %v2900_v9 = vmul.f32 %v7095_v15, %v2897_v13 }
 0x94c   :  { %v2898_v32 = vmul.f32 %v7097_v5, %v2895_v18  ;;  %v2896_v33 = vadd.f32 -0.28449672, %v2893_v58 }
 0x94d   :  { %v2903_v0 = vadd.f32 0.2548296, %v2900_v9 }
 0x94e   :  { %v2901_v4 = vadd.f32 0.2548296, %v2898_v32  ;;  %v2899_v3 = vmul.f32 %v7099_v7, %v2896_v33  ;;  %v6926_v32 = vld [vmem:[%s9110_s5 + $0x10] sm:$0xff]  }
 0x94f   :  { %v2906_v28 = vmul.f32 %v7095_v15, %v2903_v0  ;;  %v2859_v15 = vmul.f32 0.5, %v8244_v43  ;;  %v6927_v0 = vld [vmem:[%s9110_s5 + $0x18] sm:$0xff]   ;;  %6601 = vmatprep.subr.bf16.mxu0 %v6926_v32  ;;  %s9204_s5 = smov 44  }
 0x950   :  { %v2904_v12 = vmul.f32 %v7097_v5, %v2901_v4  ;;  %v2902_v14 = vadd.f32 0.2548296, %v2899_v3  ;;  %6602 = vmatpush3.bf16.msra.mxu0 %v6926_v32 }
 0x951   :  { %v2921_v2 = vmul.f32 %v7101_v29, %v2906_v28  ;;  %6603 = vmatprep.subr.bf16.mxu0 %v6927_v0 }
 0x952   :  { %v2919_v6 = vmul.f32 %v7103_v34, %v2904_v12  ;;  %v2905_v25 = vmul.f32 %v7099_v7, %v2902_v14 }
 0x953   :  { %v2924_v40 = vsub.f32 1.0, %v2921_v2 }
 0x954   :  { %v2922_v49 = vsub.f32 1.0, %v2919_v6  ;;  %v2920_v38 = vmul.f32 %v7105_v22, %v2905_v25  ;;  %6604 = vmatpush3.bf16.msra.mxu0 %v6927_v0 }
 0x955   :  { %v2930_v57 = vsub.f32 0.0, %v2924_v40 }
 0x956   :  { %v2928_v35 = vsub.f32 0.0, %v2922_v49  ;;  %v2923_v37 = vsub.f32 1.0, %v2920_v38 }
 0x957   :  { %v2933_v63 = vsel %vm2927_vm14, %v2924_v40, %v2930_v57  ;;  %v5955_v40 = vld [vmem:[%s9120_s15] ss:$0 sm:$0xff] }
 0x958   :  { %v2931_v16 = vsel %vm2925_vm0, %v2922_v49, %v2928_v35  ;;  %v2936_v30 = vadd.f32 1.0, %v2933_v63  ;;  %v2929_v39 = vsub.f32 0.0, %v2923_v37  ;;  %v5956_v35 = vld [vmem:[%s9121_s16] ss:$0 sm:$0xff]  ;;  %vm9225_vm0 = vcmask 257248  }
 0x959   :  { %v2934_v11 = vadd.f32 1.0, %v2931_v16 }
 0x95a   :  { %v2932_v31 = vsel %vm2926_vm13, %v2923_v37, %v2929_v39  ;;  %v2939_v47 = vmul.f32 %v2936_v30, %v2861_v60 }
 0x95b   :  { %v2935_v17 = vadd.f32 1.0, %v2932_v31  ;;  %v2937_v5 = vmul.f32 %v2934_v11, %v2859_v15  ;;  %v5962_v15 = vld [vmem:[%s9111_s6 + $0x1] ss:$0 sm:$0xff]  ;;  %s9191_s6 = smov 116  }
 0x95c   :  { %v2941_v20 = vpack.c.bf16 %v2939_v47, %v2939_v47 }
 0x95d   :  { %v2938_v26 = vmul.f32 %v2935_v17, %v2860_v36 }
 0x95f   :  { %v2940_v50 = vpack.c.bf16 %v2938_v26, %v2937_v5 }
 0x961   :  { %6597 = vmatprep.mubr.bf16.mxu1 %v2940_v50 }
 0x962   :  { %6598 = vmatmul.mubr.bf16.vlgmr.msra.gmra.mrb[56].mxu1 %v2941_v20 }
 0xa35   :  { %v6599_v62 = vpop.f32.mrb[56].mxu1 }
 0xa36   :  { %v3047_v45 = vpop.f32.mrb[57].mxu1  ;;  %v3056_v42 = vadd.f32 %v6599_v62, %v5946_v1 }
 0xa37   :  { %v3048_v7 = vadd.f32 %v5946_v1, %v3047_v45  ;;  %v6600_v24 = vpop.f32.mrb[58].mxu1 }
 0xa38   :  { %v3050_v43 = vpop.f32.mrb[59].mxu1  ;;  %v3063_v27 = vadd.f32 %v3056_v42, %v8209_v61 }
 0xa39   :  { %v3061_v55 = vadd.f32 %v3048_v7, %v8203_v19  ;;  %v3051_v8 = vadd.f32 %v5946_v1, %v3050_v43 }
 0xa3a   :  { %v3072_v46 = vsel %vm2727_vm3, %v3063_v27, 0.0 }
 0xa3b   :  { %v3062_v10 = vadd.f32 %v3051_v8, %v8205_v23  ;;  %v3066_v44 = vsel %vm275_vm4, %v3061_v55, 0.0 }
 0xa3c   :  { %3067 = vadd.xlane.f32.xlu1 %v3066_v44 }
 0xa3d   :  { %v3069_v48 = vsel %vm275_vm4, %v3062_v10, 0.0 }
 0xa3e   :  { %3070 = vadd.xlane.f32.xlu0 %v3069_v48 }
 0xa40   :  { %3073 = vadd.xlane.f32.xlu1 %v3072_v46 }
 0xac9   :  { %v3068_v21 = vpop.xlane.xlu1 %3067 }
 0xaca   :  { %v3075_v51 = vmul.f32 0.03125, %v3068_v21 }
 0xacb   :  { %v3071_v53 = vpop.xlane.xlu0 %3070 }
 0xacc   :  { %v3078_v52 = vsub.f32 %v3061_v55, %v3075_v51  ;;  %v3076_v59 = vmul.f32 0.03125, %v3071_v53 }
 0xacd   :  { %v3074_v19 = vpop.xlane.xlu1 %3073 }
 0xace   :  { %v3079_v54 = vsub.f32 %v3062_v10, %v3076_v59  ;;  %v3077_v41 = vmul.f32 0.03125, %v3074_v19  ;;  %v3081_v61 = vmul.f32 %v3078_v52, %v3078_v52 }
 0xad0   :  { %v3080_v13 = vsub.f32 %v3063_v27, %v3077_v41  ;;  %v3084_v23 = vsel %vm275_vm4, %v3081_v61, 0.0  ;;  %v3082_v56 = vmul.f32 %v3079_v54, %v3079_v54 }
 0xad1   :  { %3085 = vadd.xlane.f32.xlu0 %v3084_v23 }
 0xad2   :  { %v3087_v18 = vsel %vm275_vm4, %v3082_v56, 0.0  ;;  %v3083_v9 = vmul.f32 %v3080_v13, %v3080_v13 }
 0xad3   :  { %3088 = vadd.xlane.f32.xlu1 %v3087_v18 }
 0xad4   :  { %v3090_v58 = vsel %vm2727_vm3, %v3083_v9, 0.0 }
 0xad5   :  { %3091 = vadd.xlane.f32.xlu0 %v3090_v58 }
 0xb5e   :  { %v3086_v33 = vpop.xlane.xlu0 %3085 }
 0xb5f   :  { %v3093_v4 = vmul.f32 0.03125, %v3086_v33 }
 0xb60   :  { %v3089_v28 = vpop.xlane.xlu1 %3088 }
 0xb61   :  { %v3096_v3 = vadd.f32 1e-05, %v3093_v4  ;;  %v3094_v29 = vmul.f32 0.03125, %v3089_v28 }
 0xb62   :  { %v3092_v12 = vpop.xlane.xlu0 %3091 }
 0xb63   :  { %7106 = vrsqrt.f32 %v3096_v3  ;;  %v3097_v34 = vadd.f32 1e-05, %v3094_v29  ;;  %v3095_v2 = vmul.f32 0.03125, %v3092_v12 }
 0xb65   :  { %7108 = vrsqrt.f32 %v3097_v34  ;;  %v3098_v14 = vadd.f32 1e-05, %v3095_v2 }
 0xb67   :  { %7110 = vrsqrt.f32 %v3098_v14 }
 0xb6d   :  { %v7107_v6 = vpop.eup %7106 }
 0xb6e   :  { %v3102_v25 = vmul.f32 %v7107_v6, %v3078_v52 }
 0xb6f   :  { %v7109_v22 = vpop.eup %7108 }
 0xb70   :  { %v3103_v49 = vmul.f32 %v7109_v22, %v3079_v54  ;;  %v3111_v57 = vmul.f32 %v5955_v40, %v3102_v25 }
 0xb71   :  { %v7111_v38 = vpop.eup %7110 }
 0xb72   :  { %v3104_v63 = vmul.f32 %v7111_v38, %v3080_v13  ;;  %v3112_v37 = vmul.f32 %v5955_v40, %v3103_v49  ;;  %v8290_v16 = vadd.f32 %v5956_v35, %v3111_v57 }
 0xb74   :  { %v8292_v30 = vadd.f32 %v5956_v35, %v3112_v37  ;;  %v3113_v39 = vmul.f32 %v5955_v40, %v3104_v63 }
 0xb76   :  { %v3123_v11 = vpack.c.bf16 %v8292_v30, %v8290_v16  ;;  %v8296_v60 = vadd.f32 %v5956_v35, %v3113_v39 }
 0xb78   :  { %6605 = vmatprep.mubr.msk.bf16.mxu0 %vm275_vm4, %v3123_v11  ;;  %v3124_v31 = vpack.c.bf16 %v8296_v60, %v8296_v60 }
 0xb7a   :  { %6606 = vmatmul.mubr.msk.bf16.vlgmr.msra.gmra.mrb[52].mxu0 %vm275_vm4, %v3124_v31 }
 0xc4d   :  { %v6607_v36 = vpop.f32.mrb[52].mxu0 }
 0xc4e   :  { %v3199_v17 = vadd.f32 %v6607_v36, %v5962_v15  ;;  %v3190_v47 = vpop.f32.mrb[53].mxu0 }
 0xc4f   :  { %v3191_v5 = vadd.f32 %v5962_v15, %v3190_v47  ;;  %v6608_v26 = vpop.f32.mrb[54].mxu0 }
 0xc50   :  { %v8305_v50 = vpack.c.bf16 %v3199_v17, %v3199_v17  ;;  %v3193_v20 = vpop.f32.mrb[55].mxu0 }
 0xc51   :  { %v8307_v1 = vpack.c.bf16 %v3191_v5, %v3191_v5  ;;  %v3194_v62 = vadd.f32 %v5962_v15, %v3193_v20 }
 0xc52   :  { %3219 = vst.msk [vmem:[#allocation3 + $0x8] sm:$0x1] %vm606_vm5, %v8305_v50  ;;  %3224 = vrot.lane.b32.xlu1 %v8305_v50, %s7286_s20 }
 0xc53   :  { %3217 = vst.msk [vmem:[#allocation3] sm:$0xf] %vm603_vm6, %v8307_v1  ;;  %v8315_v45 = vpack.c.bf16 %v3194_v62, %v3194_v62  ;;  %3292 = vrot.lane.b32.xlu0 %v8307_v1, %s7287_s24 }
 0xc55   :  { %3218 = vst.msk [vmem:[#allocation3 + $0x4] sm:$0xf] %vm603_vm6, %v8315_v45 }
 0xc56   :  { %3260 = vrot.lane.b32.xlu1 %v8305_v50, %s7285_s23 }
 0xc57   :  { %3222 = vrot.lane.b32.xlu0 %v8315_v45, %s7286_s20 }
 0xc59   :  { %v6932_v18 = vld [vmem:[#allocation3 + $0x8] ss:$0 sps:$4 sm:$0x11]  }
 0xc5a   :  { %3220 = vrot.lane.b32.xlu1 %v8307_v1, %s7286_s20  ;;  %s9192_s20 = smov 76  }
 0xc5b   :  { %3244 = vrot.lane.b32.xlu0 %v8307_v1, %s7289_s3 }
 0xc5c   :  { %v6928_v42 = vld [vmem:[#allocation3] sm:$0xff]  }
 0xc5d   :  { %6613 = vmatprep.mubr.msk.bf16.mxu0 %vm72_vm2, %v6928_v42 }
 0xc5e   :  { %3256 = vrot.lane.b32.xlu1 %v8307_v1, %s7285_s23 }
 0xc5f   :  { %3328 = vrot.lane.b32.xlu0 %v8307_v1, %s7291_s27 }
 0xc62   :  { %3296 = vrot.lane.b32.xlu1 %v8305_v50, %s7287_s24 }
 0xc63   :  { %3248 = vrot.lane.b32.xlu0 %v8305_v50, %s7289_s3 }
 0xc66   :  { %3280 = vrot.lane.b32.xlu1 %v8307_v1, %s7288_s25 }
 0xc67   :  { %3258 = vrot.lane.b32.xlu0 %v8315_v45, %s7285_s23  ;;  %s9193_s23 = smov 112  }
 0xc6a   :  { %3364 = vrot.lane.b32.xlu1 %v8307_v1, %s7290_s26 }
 0xc6b   :  { %3332 = vrot.lane.b32.xlu0 %v8305_v50, %s7291_s27 }
 0xc6e   :  { %3284 = vrot.lane.b32.xlu1 %v8305_v50, %s7288_s25 }
 0xc6f   :  { %3316 = vrot.lane.b32.xlu0 %v8307_v1, %s9191_s6 }
 0xc72   :  { %3294 = vrot.lane.b32.xlu1 %v8315_v45, %s7287_s24  ;;  %s9194_s24 = smov 108  }
 0xc73   :  { %3400 = vrot.lane.b32.xlu0 %v8307_v1, %s9192_s20 }
 0xc76   :  { %3246 = vrot.lane.b32.xlu1 %v8315_v45, %s7289_s3  ;;  %s9195_s3 = smov 68  }
 0xc77   :  { %3320 = vrot.lane.b32.xlu0 %v8305_v50, %s9191_s6 }
 0xc7a   :  { %3330 = vrot.lane.b32.xlu1 %v8315_v45, %s7291_s27  ;;  %s9196_s27 = smov 72  }
 0xc7b   :  { %3404 = vrot.lane.b32.xlu0 %v8305_v50, %s9192_s20 }
 0xc7e   :  { %3368 = vrot.lane.b32.xlu1 %v8305_v50, %s7290_s26 }
 0xc7f   :  { %3282 = vrot.lane.b32.xlu0 %v8315_v45, %s7288_s25  ;;  %s9197_s25 = smov 100  }
 0xc82   :  { %3352 = vrot.lane.b32.xlu1 %v8307_v1, %s9193_s23 }
 0xc83   :  { %3366 = vrot.lane.b32.xlu0 %v8315_v45, %s7290_s26  ;;  %s9198_s26 = smov 104  }
 0xc86   :  { %3318 = vrot.lane.b32.xlu1 %v8315_v45, %s9191_s6  ;;  %s9210_s6 = smov 12  }
 0xc87   :  { %3388 = vrot.lane.b32.xlu0 %v8307_v1, %s9194_s24 }
 0xc8a   :  { %3402 = vrot.lane.b32.xlu1 %v8315_v45, %s9192_s20  ;;  %s9211_s20 = smov 24  }
 0xc8b   :  { %3472 = vrot.lane.b32.xlu0 %v8307_v1, %s9195_s3 }
 0xc8e   :  { %3436 = vrot.lane.b32.xlu1 %v8307_v1, %s9196_s27 }
 0xc8f   :  { %3354 = vrot.lane.b32.xlu0 %v8315_v45, %s9193_s23 }
 0xc92   :  { %3356 = vrot.lane.b32.xlu1 %v8305_v50, %s9193_s23 }
 0xc93   :  { %3438 = vrot.lane.b32.xlu0 %v8315_v45, %s9196_s27 }
 0xc96   :  { %3390 = vrot.lane.b32.xlu1 %v8315_v45, %s9194_s24 }
 0xc97   :  { %3392 = vrot.lane.b32.xlu0 %v8305_v50, %s9194_s24 }
 0xc9a   :  { %3474 = vrot.lane.b32.xlu1 %v8315_v45, %s9195_s3 }
 0xc9b   :  { %3476 = vrot.lane.b32.xlu0 %v8305_v50, %s9195_s3 }
 0xc9e   :  { %3440 = vrot.lane.b32.xlu1 %v8305_v50, %s9196_s27 }
 0xc9f   :  { %3460 = vrot.lane.b32.xlu0 %v8307_v1, %s9197_s25 }
 0xca2   :  { %3424 = vrot.lane.b32.xlu1 %v8307_v1, %s9198_s26 }
 0xca3   :  { %3426 = vrot.lane.b32.xlu0 %v8315_v45, %s9198_s26 }
 0xca6   :  { %3428 = vrot.lane.b32.xlu1 %v8305_v50, %s9198_s26  ;;  %s9213_s26 = smov 28  }
 0xca7   :  { %3464 = vrot.lane.b32.xlu0 %v8305_v50, %s9197_s25 }
 0xcaa   :  { %3462 = vrot.lane.b32.xlu1 %v8315_v45, %s9197_s25  ;;  %s9212_s25 = smov 20  }
 0xcab   :  { %3232 = vrot.lane.b32.xlu0 %v8307_v1, %s9199_s1 }
 0xcae   :  { %3268 = vrot.lane.b32.xlu1 %v8307_v1, %s9200_s28 }
 0xcaf   :  { %3236 = vrot.lane.b32.xlu0 %v8305_v50, %s9199_s1 }
 0xcb2   :  { %3304 = vrot.lane.b32.xlu1 %v8307_v1, %s9201_s2 }
 0xcb3   :  { %3272 = vrot.lane.b32.xlu0 %v8305_v50, %s9200_s28 }
 0xcb6   :  { %3340 = vrot.lane.b32.xlu1 %v8307_v1, %s9202_s22 }
 0xcb7   :  { %3308 = vrot.lane.b32.xlu0 %v8305_v50, %s9201_s2 }
 0xcba   :  { %3344 = vrot.lane.b32.xlu1 %v8305_v50, %s9202_s22 }
 0xcbb   :  { %3376 = vrot.lane.b32.xlu0 %v8307_v1, %s9203_s21 }
 0xcbe   :  { %3412 = vrot.lane.b32.xlu1 %v8307_v1, %s9204_s5 }
 0xcbf   :  { %3380 = vrot.lane.b32.xlu0 %v8305_v50, %s9203_s21 }
 0xcc2   :  { %3234 = vrot.lane.b32.xlu1 %v8315_v45, %s9199_s1 }
 0xcc3   :  { %3416 = vrot.lane.b32.xlu0 %v8305_v50, %s9204_s5 }
 0xcc4   :  { %v3225_v7 = vpop.permute.xlu1 %3224 }
 0xcc5   :  { %3231 = vst.msk [vmem:[#allocation4 + $0x8] sm:$0x1] %vm606_vm5, %v3225_v7  ;;  %v3293_v24 = vpop.permute.xlu0 %3292 }
 0xcc6   :  { %3301 = vst.msk [vmem:[#allocation4 + $0x18] sm:$0xf] %vm603_vm6, %v3293_v24  ;;  %3306 = vrot.lane.b32.xlu1 %v8315_v45, %s9201_s2 }
 0xcc7   :  { %3448 = vrot.lane.b32.xlu0 %v8307_v1, %s9205_s29 }
 0xcc8   :  { %v3261_v43 = vpop.permute.xlu1 %3260 }
 0xcc9   :  { %3267 = vst.msk [vmem:[#allocation4 + $0x14] sm:$0x1] %vm606_vm5, %v3261_v43  ;;  %v3223_v55 = vpop.permute.xlu0 %3222 }
 0xcca   :  { %3230 = vst.msk [vmem:[#allocation4 + $0x4] sm:$0xf] %vm603_vm6, %v3223_v55  ;;  %3342 = vrot.lane.b32.xlu1 %v8315_v45, %s9202_s22 }
 0xccb   :  { %3270 = vrot.lane.b32.xlu0 %v8315_v45, %s9200_s28 }
 0xccc   :  { %v3221_v8 = vpop.permute.xlu1 %3220  ;;  %v6930_v53 = vld [vmem:[#allocation4 + $0x8] ss:$0 sps:$4 sm:$0x11]  }
 0xccd   :  { %3229 = vst.msk [vmem:[#allocation4] sm:$0xf] %vm603_vm6, %v3221_v8  ;;  %v3245_v27 = vpop.permute.xlu0 %3244  ;;  %v3594_v41 = vsel %vm72_vm2, %v6930_v53, 0 }
 0xcce   :  { %3253 = vst.msk [vmem:[#allocation3 + $0xc] sm:$0xf] %vm603_vm6, %v3245_v27 }
 0xccf   :  { %3378 = vrot.lane.b32.xlu0 %v8315_v45, %s9203_s21 }
 0xcd0   :  { %v3257_v10 = vpop.permute.xlu1 %3256  ;;  %v6933_v32 = vld [vmem:[#allocation4 + $0x14] ss:$0 sps:$4 sm:$0x11]  }
 0xcd1   :  { %3265 = vst.msk [vmem:[#allocation4 + $0xc] sm:$0xf] %vm603_vm6, %v3257_v10  ;;  %v3329_v44 = vpop.permute.xlu0 %3328  ;;  %v3670_v12 = vsel %vm72_vm2, %v6933_v32, 0 }
 0xcd2   :  { %3337 = vst.msk [vmem:[#allocation4 + $0x24] sm:$0xf] %vm603_vm6, %v3329_v44 }
 0xcd3   :  { %3414 = vrot.lane.b32.xlu0 %v8315_v45, %s9204_s5 }
 0xcd4   :  { %v3297_v48 = vpop.permute.xlu1 %3296  ;;  %v6929_v46 = vld [vmem:[#allocation4] sm:$0xff]  }
 0xcd5   :  { %3303 = vst.msk [vmem:[#allocation4 + $0x20] sm:$0x1] %vm606_vm5, %v3297_v48  ;;  %v3249_v21 = vpop.permute.xlu0 %3248  ;;  %6805 = vmatprep.subr.msk.bf16.mxu0 %vm72_vm2, %v6929_v46  ;;  %v3591_v51 = vsel %vm72_vm2, %v6929_v46, 0 }
 0xcd6   :  { %3255 = vst.msk [vmem:[#allocation3 + $0x14] sm:$0x1] %vm606_vm5, %v3249_v21  ;;  %6610 = vmatpush3.bf16.xpose.msra.mxu0 %v3591_v51 }
 0xcd7   :  { %3450 = vrot.lane.b32.xlu0 %v8315_v45, %s9205_s29  ;;  %6806 = vmatprep.subr.msk.bf16.mxu0 %vm72_vm2, %v6930_v53 }
 0xcd8   :  { %v3281_v52 = vpop.permute.xlu1 %3280 }
 0xcd9   :  { %3289 = vst.msk [vmem:[#allocation3 + $0x18] sm:$0xf] %vm603_vm6, %v3281_v52  ;;  %v3259_v59 = vpop.permute.xlu0 %3258 }
 0xcda   :  { %3266 = vst.msk [vmem:[#allocation4 + $0x10] sm:$0xf] %vm603_vm6, %v3259_v59 }
 0xcdc   :  { %v3365_v19 = vpop.permute.xlu1 %3364  ;;  %v6935_v34 = vld [vmem:[#allocation4 + $0x20] ss:$0 sps:$4 sm:$0x11]  }
 0xcdd   :  { %3373 = vst.msk [vmem:[#allocation4 + $0x30] sm:$0xf] %vm603_vm6, %v3365_v19  ;;  %v3333_v54 = vpop.permute.xlu0 %3332  ;;  %v6937_v25 = vld [vmem:[#allocation3 + $0x14] ss:$0 sps:$4 sm:$0x11]   ;;  %v3746_v57 = vsel %vm72_vm2, %v6935_v34, 0 }
 0xcde   :  { %3339 = vst.msk [vmem:[#allocation4 + $0x2c] sm:$0x1] %vm606_vm5, %v3333_v54  ;;  %6612 = vmatpush3.bf16.xpose.msra.mxu0 %v3594_v41 }
 0xce0   :  { %v3285_v61 = vpop.permute.xlu1 %3284 }
 0xce1   :  { %3291 = vst.msk [vmem:[#allocation3 + $0x20] sm:$0x1] %vm606_vm5, %v3285_v61  ;;  %v3317_v13 = vpop.permute.xlu0 %3316  ;;  %v6931_v23 = vld [vmem:[#allocation4 + $0xc] sm:$0xff]  }
 0xce2   :  { %3325 = vst.msk [vmem:[#allocation3 + $0x24] sm:$0xf] %vm603_vm6, %v3317_v13  ;;  %6807 = vmatprep.subr.msk.bf16.mxu0 %vm72_vm2, %v6931_v23  ;;  %v3667_v58 = vsel %vm72_vm2, %v6931_v23, 0 }
 0xce4   :  { %v3295_v56 = vpop.permute.xlu1 %3294 }
 0xce5   :  { %3302 = vst.msk [vmem:[#allocation4 + $0x1c] sm:$0xf] %vm603_vm6, %v3295_v56  ;;  %v3401_v9 = vpop.permute.xlu0 %3400  ;;  %6614 = vmatmul.mubr.msk.bf16.vlgmr.msra.gmra.mrb[56].mxu0 %vm72_vm2, %v6932_v18  ;;  %v6939_v35 = vld [vmem:[#allocation4 + $0x2c] ss:$0 sps:$4 sm:$0x11]  }
 0xce6   :  { %3409 = vst.msk [vmem:[#allocation4 + $0x3c] sm:$0xf] %vm603_vm6, %v3401_v9  ;;  %6618 = vmatpush3.bf16.xpose.msra.mxu0 %v3667_v58  ;;  %v3822_v17 = vsel %vm72_vm2, %v6939_v35, 0 }
 0xce7   :  { %6808 = vmatprep.subr.msk.bf16.mxu0 %vm72_vm2, %v6933_v32 }
 0xce8   :  { %v3247_v0 = vpop.permute.xlu1 %3246  ;;  %v6941_v31 = vld [vmem:[#allocation3 + $0x20] ss:$0 sps:$4 sm:$0x11]  }
 0xce9   :  { %3254 = vst.msk [vmem:[#allocation3 + $0x10] sm:$0xf] %vm603_vm6, %v3247_v0  ;;  %v3321_v33 = vpop.permute.xlu0 %3320 }
 0xcea   :  { %3327 = vst.msk [vmem:[#allocation3 + $0x2c] sm:$0x1] %vm606_vm5, %v3321_v33 }
 0xcec   :  { %v3331_v4 = vpop.permute.xlu1 %3330  ;;  %v6934_v28 = vld [vmem:[#allocation4 + $0x18] sm:$0xff]  }
 0xced   :  { %3338 = vst.msk [vmem:[#allocation4 + $0x28] sm:$0xf] %vm603_vm6, %v3331_v4  ;;  %v3405_v3 = vpop.permute.xlu0 %3404  ;;  %6809 = vmatprep.subr.msk.bf16.mxu1 %vm72_vm2, %v6934_v28  ;;  %v3743_v29 = vsel %vm72_vm2, %v6934_v28, 0 }
 0xcee   :  { %3411 = vst.msk [vmem:[#allocation4 + $0x44] sm:$0x1] %vm606_vm5, %v3405_v3  ;;  %6626 = vmatpush3.bf16.xpose.msra.mxu1 %v3743_v29  ;;  %6620 = vmatpush3.bf16.xpose.msra.mxu0 %v3670_v12 }
 0xcef   :  { %6810 = vmatprep.subr.msk.bf16.mxu1 %vm72_vm2, %v6935_v34 }
 0xcf0   :  { %v3369_v2 = vpop.permute.xlu1 %3368  ;;  %v6936_v14 = vld [vmem:[#allocation3 + $0xc] sm:$0xff]  }
 0xcf1   :  { %3375 = vst.msk [vmem:[#allocation4 + $0x38] sm:$0x1] %vm606_vm5, %v3369_v2  ;;  %v3283_v6 = vpop.permute.xlu0 %3282  ;;  %6621 = vmatprep.mubr.msk.bf16.mxu0 %vm72_vm2, %v6936_v14  ;;  %v6945_v7 = vld [vmem:[#allocation3 + $0x2c] ss:$0 sps:$4 sm:$0x11]  }
 0xcf2   :  { %3290 = vst.msk [vmem:[#allocation3 + $0x1c] sm:$0xf] %vm603_vm6, %v3283_v6 }
 0xcf4   :  { %v3353_v40 = vpop.permute.xlu1 %3352  ;;  %v6938_v22 = vld [vmem:[#allocation4 + $0x24] sm:$0xff]  }
 0xcf5   :  { %3361 = vst.msk [vmem:[#allocation3 + $0x30] sm:$0xf] %vm603_vm6, %v3353_v40  ;;  %v3367_v49 = vpop.permute.xlu0 %3366  ;;  %6622 = vmatmul.mubr.msk.bf16.vlgmr.msra.gmra.mrb[60].mxu0 %vm72_vm2, %v6937_v25  ;;  %6811 = vmatprep.subr.msk.bf16.mxu0 %vm72_vm2, %v6938_v22  ;;  %v3819_v38 = vsel %vm72_vm2, %v6938_v22, 0  ;;  %v6947_v8 = vld [vmem:[#allocation4 + $0x44] ss:$0 sps:$4 sm:$0x11]  }
 0xcf6   :  { %3374 = vst.msk [vmem:[#allocation4 + $0x34] sm:$0xf] %vm603_vm6, %v3367_v49  ;;  %6628 = vmatpush3.bf16.xpose.msra.mxu1 %v3746_v57  ;;  %6634 = vmatpush3.bf16.xpose.msra.mxu0 %v3819_v38  ;;  %v3974_v52 = vsel %vm72_vm2, %v6947_v8, 0 }
 0xcf7   :  { %6812 = vmatprep.subr.msk.bf16.mxu0 %vm72_vm2, %v6939_v35 }
 0xcf8   :  { %v3319_v63 = vpop.permute.xlu1 %3318  ;;  %v6943_v5 = vld [vmem:[#allocation4 + $0x38] ss:$0 sps:$4 sm:$0x11]  }
 0xcf9   :  { %3326 = vst.msk [vmem:[#allocation3 + $0x28] sm:$0xf] %vm603_vm6, %v3319_v63  ;;  %v3389_v37 = vpop.permute.xlu0 %3388  ;;  %v6940_v39 = vld [vmem:[#allocation3 + $0x18] sm:$0xff]   ;;  %v3898_v27 = vsel %vm72_vm2, %v6943_v5, 0 }
 0xcfa   :  { %3397 = vst.msk [vmem:[#allocation3 + $0x3c] sm:$0xf] %vm603_vm6, %v3389_v37  ;;  %6629 = vmatprep.mubr.msk.bf16.mxu1 %vm72_vm2, %v6940_v39 }
 0xcfc   :  { %v3403_v11 = vpop.permute.xlu1 %3402 }
 0xcfd   :  { %3410 = vst.msk [vmem:[#allocation4 + $0x40] sm:$0xf] %vm603_vm6, %v3403_v11  ;;  %v3473_v15 = vpop.permute.xlu0 %3472  ;;  %v6942_v36 = vld [vmem:[#allocation4 + $0x30] sm:$0xff]   ;;  %6630 = vmatmul.mubr.msk.bf16.vlgmr.msra.gmra.mrb[60].mxu1 %vm72_vm2, %v6941_v31 }
 0xcfe   :  { %3481 = vst.msk [vmem:[#allocation4 + $0x54] sm:$0xf] %vm603_vm6, %v3473_v15  ;;  %6813 = vmatprep.subr.msk.bf16.mxu1 %vm72_vm2, %v6942_v36  ;;  %6636 = vmatpush3.bf16.xpose.msra.mxu0 %v3822_v17  ;;  %v3895_v47 = vsel %vm72_vm2, %v6942_v36, 0 }
 0xcff   :  { %6642 = vmatpush3.bf16.xpose.msra.mxu1 %v3895_v47 }
 0xd00   :  { %v3437_v26 = vpop.permute.xlu1 %3436  ;;  %v6944_v20 = vld [vmem:[#allocation3 + $0x24] sm:$0xff]   ;;  %6814 = vmatprep.subr.msk.bf16.mxu1 %vm72_vm2, %v6943_v5 }
 0xd01   :  { %3445 = vst.msk [vmem:[#allocation4 + $0x48] sm:$0xf] %vm603_vm6, %v3437_v26  ;;  %v3355_v62 = vpop.permute.xlu0 %3354  ;;  %6637 = vmatprep.mubr.msk.bf16.mxu0 %vm72_vm2, %v6944_v20 }
 0xd02   :  { %3362 = vst.msk [vmem:[#allocation3 + $0x34] sm:$0xf] %vm603_vm6, %v3355_v62 }
 0xd04   :  { %v3357_v42 = vpop.permute.xlu1 %3356  ;;  %v6946_v24 = vld [vmem:[#allocation4 + $0x3c] sm:$0xff]  }
 0xd05   :  { %3363 = vst.msk [vmem:[#allocation3 + $0x38] sm:$0x1] %vm606_vm5, %v3357_v42  ;;  %v3439_v43 = vpop.permute.xlu0 %3438  ;;  %6638 = vmatmul.mubr.msk.bf16.vlgmr.msra.gmra.mrb[64].mxu0 %vm72_vm2, %v6945_v7  ;;  %6815 = vmatprep.subr.msk.bf16.mxu0 %vm72_vm2, %v6946_v24  ;;  %v3971_v55 = vsel %vm72_vm2, %v6946_v24, 0 }
 0xd06   :  { %3446 = vst.msk [vmem:[#allocation4 + $0x4c] sm:$0xf] %vm603_vm6, %v3439_v43  ;;  %6650 = vmatpush3.bf16.xpose.msra.mxu0 %v3971_v55 }
 0xd07   :  { %6644 = vmatpush3.bf16.xpose.msra.mxu1 %v3898_v27  ;;  %6816 = vmatprep.subr.msk.bf16.mxu0 %vm72_vm2, %v6947_v8 }
 0xd08   :  { %v3391_v10 = vpop.permute.xlu1 %3390 }
 0xd09   :  { %3398 = vst.msk [vmem:[#allocation3 + $0x40] sm:$0xf] %vm603_vm6, %v3391_v10  ;;  %v3393_v44 = vpop.permute.xlu0 %3392  ;;  %v6948_v48 = vld [vmem:[#allocation3 + $0x30] sm:$0xff]  }
 0xd0a   :  { %3399 = vst.msk [vmem:[#allocation3 + $0x44] sm:$0x1] %vm606_vm5, %v3393_v44  ;;  %6645 = vmatprep.mubr.msk.bf16.mxu1 %vm72_vm2, %v6948_v48 }
 0xd0c   :  { %v3475_v46 = vpop.permute.xlu1 %3474  ;;  %v6949_v21 = vld [vmem:[#allocation3 + $0x38] ss:$0 sps:$4 sm:$0x11]  }
 0xd0d   :  { %3482 = vst.msk [vmem:[#allocation4 + $0x58] sm:$0xf] %vm603_vm6, %v3475_v46  ;;  %v3477_v51 = vpop.permute.xlu0 %3476  ;;  %v6950_v53 = vld [vmem:[#allocation4 + $0x48] sm:$0xff]   ;;  %v7235_v46 = vld [vmem:[%s9109_s4 + $0x10] sm:$0x3] }
 0xd0e   :  { %3483 = vst.msk [vmem:[#allocation4 + $0x5c] sm:$0x1] %vm606_vm5, %v3477_v51  ;;  %6646 = vmatmul.mubr.msk.bf16.vlgmr.msra.gmra.mrb[64].mxu1 %vm72_vm2, %v6949_v21  ;;  %6817 = vmatprep.subr.msk.bf16.mxu1 %vm72_vm2, %v6950_v53  ;;  %v4047_v59 = vsel %vm72_vm2, %v6950_v53, 0  ;;  %v7236_v53 = vld [vmem:[%s9109_s4] sm:$0xff] }
 0xd0f   :  { %6652 = vmatpush3.bf16.xpose.msra.mxu0 %v3974_v52  ;;  %6658 = vmatpush3.bf16.xpose.msra.mxu1 %v4047_v59 }
 0xd10   :  { %v3441_v19 = vpop.permute.xlu1 %3440  ;;  %v6951_v54 = vld [vmem:[#allocation3 + $0x3c] sm:$0xff]  }
 0xd11   :  { %3447 = vst.msk [vmem:[#allocation4 + $0x50] sm:$0x1] %vm606_vm5, %v3441_v19  ;;  %v3461_v41 = vpop.permute.xlu0 %3460  ;;  %6653 = vmatprep.mubr.msk.bf16.mxu0 %vm72_vm2, %v6951_v54  ;;  %v6952_v13 = vld [vmem:[#allocation3 + $0x44] ss:$0 sps:$4 sm:$0x11]  }
 0xd12   :  { %3469 = vst.msk [vmem:[#allocation3 + $0x54] sm:$0xf] %vm603_vm6, %v3461_v41 }
 0xd14   :  { %v3425_v61 = vpop.permute.xlu1 %3424  ;;  %v6953_v23 = vld [vmem:[#allocation4 + $0x54] sm:$0xff]  }
 0xd15   :  { %3433 = vst.msk [vmem:[#allocation3 + $0x48] sm:$0xf] %vm603_vm6, %v3425_v61  ;;  %v3427_v56 = vpop.permute.xlu0 %3426  ;;  %v6954_v18 = vld [vmem:[#allocation4 + $0x5c] ss:$0 sps:$4 sm:$0x11]   ;;  %6819 = vmatprep.subr.msk.bf16.mxu0 %vm72_vm2, %v6953_v23  ;;  %v4123_v9 = vsel %vm72_vm2, %v6953_v23, 0 }
 0xd16   :  { %3434 = vst.msk [vmem:[#allocation3 + $0x4c] sm:$0xf] %vm603_vm6, %v3427_v56  ;;  %6654 = vmatmul.mubr.msk.bf16.vlgmr.msra.gmra.mrb[68].mxu0 %vm72_vm2, %v6952_v13  ;;  %v4126_v29 = vsel %vm72_vm2, %v6954_v18, 0 }
 0xd17   :  { %6666 = vmatpush3.bf16.xpose.msra.mxu0 %v4123_v9 }
 0xd18   :  { %v3429_v58 = vpop.permute.xlu1 %3428  ;;  %v6955_v32 = vld [vmem:[#allocation4 + $0x50] ss:$0 sps:$4 sm:$0x11]   ;;  %6820 = vmatprep.subr.msk.bf16.mxu0 %vm72_vm2, %v6954_v18 }
 0xd19   :  { %3435 = vst.msk [vmem:[#allocation3 + $0x50] sm:$0x1] %vm606_vm5, %v3429_v58  ;;  %v3465_v0 = vpop.permute.xlu0 %3464  ;;  %6818 = vmatprep.subr.msk.bf16.mxu1 %vm72_vm2, %v6955_v32  ;;  %v4050_v33 = vsel %vm72_vm2, %v6955_v32, 0  ;;  %v7237_v32 = vld [vmem:[%s9109_s4 + $0x40] sm:$0x3] }
 0xd1a   :  { %3471 = vst.msk [vmem:[#allocation3 + $0x5c] sm:$0x1] %vm606_vm5, %v3465_v0  ;;  %6660 = vmatpush3.bf16.xpose.msra.mxu1 %v4050_v33 }
 0xd1c   :  { %v3463_v4 = vpop.permute.xlu1 %3462 }
 0xd1d   :  { %3470 = vst.msk [vmem:[#allocation3 + $0x58] sm:$0xf] %vm603_vm6, %v3463_v4  ;;  %v3233_v28 = vpop.permute.xlu0 %3232  ;;  %v6956_v3 = vld [vmem:[#allocation3 + $0x48] sm:$0xff]  }
 0xd1e   :  { %3241 = vst.msk [vmem:[#allocation5] sm:$0xf] %vm603_vm6, %v3233_v28  ;;  %6661 = vmatprep.mubr.msk.bf16.mxu1 %vm72_vm2, %v6956_v3 }
 0xd1f   :  { %6668 = vmatpush3.bf16.xpose.msra.mxu0 %v4126_v29  ;;  %v7238_v29 = vld [vmem:[%s9109_s4 + $0x30] sm:$0xff] }
 0xd20   :  { %v3269_v12 = vpop.permute.xlu1 %3268  ;;  %v6957_v34 = vld [vmem:[#allocation3 + $0x50] ss:$0 sps:$4 sm:$0x11]  }
 0xd21   :  { %3277 = vst.msk [vmem:[#allocation5 + $0xc] sm:$0xf] %vm603_vm6, %v3269_v12  ;;  %v3237_v2 = vpop.permute.xlu0 %3236  ;;  %6662 = vmatmul.mubr.msk.bf16.vlgmr.msra.gmra.mrb[68].mxu1 %vm72_vm2, %v6957_v34  ;;  %v6959_v25 = vld [vmem:[#allocation3 + $0x5c] ss:$0 sps:$4 sm:$0x11]  }
 0xd22   :  { %3243 = vst.msk [vmem:[#allocation5 + $0x8] sm:$0x1] %vm606_vm5, %v3237_v2  ;;  %v7239_v2 = vld [vmem:[%s9109_s4 + $0x38] sm:$0xff] }
 0xd24   :  { %v3305_v14 = vpop.permute.xlu1 %3304  ;;  %v6958_v6 = vld [vmem:[#allocation3 + $0x54] sm:$0xff]  }
 0xd25   :  { %3313 = vst.msk [vmem:[#allocation5 + $0x18] sm:$0xf] %vm603_vm6, %v3305_v14  ;;  %v3273_v40 = vpop.permute.xlu0 %3272  ;;  %6669 = vmatprep.mubr.msk.bf16.mxu0 %vm72_vm2, %v6958_v6  ;;  %v7240_v6 = vld [vmem:[%s9109_s4 + $0x28] sm:$0x3] }
 0xd26   :  { %3279 = vst.msk [vmem:[#allocation5 + $0x14] sm:$0x1] %vm606_vm5, %v3273_v40  ;;  %6670 = vmatmul.mubr.msk.bf16.vlgmr.msra.gmra.mrb[72].mxu0 %vm72_vm2, %v6959_v25  ;;  %vm9214_vm2 = vcmask 93248  }
 0xd28   :  { %v3341_v22 = vpop.permute.xlu1 %3340 }
 0xd29   :  { %3349 = vst.msk [vmem:[#allocation5 + $0x24] sm:$0xf] %vm603_vm6, %v3341_v22  ;;  %v3309_v49 = vpop.permute.xlu0 %3308  ;;  %v6961_v47 = vld [vmem:[#allocation5 + $0x8] ss:$0 sps:$4 sm:$0x11]  }
 0xd2a   :  { %3315 = vst.msk [vmem:[#allocation5 + $0x20] sm:$0x1] %vm606_vm5, %v3309_v49  ;;  %v4520_v20 = vsel %vm1930_vm7, %v6961_v47, 0 }
 0xd2c   :  { %v3345_v57 = vpop.permute.xlu1 %3344 }
 0xd2d   :  { %3351 = vst.msk [vmem:[#allocation5 + $0x2c] sm:$0x1] %vm606_vm5, %v3345_v57  ;;  %v3377_v38 = vpop.permute.xlu0 %3376  ;;  %v7241_v57 = vld [vmem:[%s9109_s4 + $0x8] sm:$0xff] }
 0xd2e   :  { %3385 = vst.msk [vmem:[#allocation5 + $0x30] sm:$0xf] %vm603_vm6, %v3377_v38 }
 0xd30   :  { %v3413_v35 = vpop.permute.xlu1 %3412 }
 0xd31   :  { %3421 = vst.msk [vmem:[#allocation5 + $0x3c] sm:$0xf] %vm603_vm6, %v3413_v35  ;;  %v3381_v63 = vpop.permute.xlu0 %3380  ;;  %v6963_v62 = vld [vmem:[#allocation5 + $0x20] ss:$0 sps:$4 sm:$0x11]  }
 0xd32   :  { %3387 = vst.msk [vmem:[#allocation5 + $0x38] sm:$0x1] %vm606_vm5, %v3381_v63  ;;  %v4652_v24 = vsel %vm1930_vm7, %v6963_v62, 0 }
 0xd34   :  { %v3235_v37 = vpop.permute.xlu1 %3234 }
 0xd35   :  { %3242 = vst.msk [vmem:[#allocation5 + $0x4] sm:$0xf] %vm603_vm6, %v3235_v37  ;;  %v3417_v39 = vpop.permute.xlu0 %3416 }
 0xd36   :  { %3423 = vst.msk [vmem:[#allocation5 + $0x44] sm:$0x1] %vm606_vm5, %v3417_v39 }
 0xd38   :  { %v3307_v11 = vpop.permute.xlu1 %3306 }
 0xd39   :  { %3314 = vst.msk [vmem:[#allocation5 + $0x1c] sm:$0xf] %vm603_vm6, %v3307_v11  ;;  %v3449_v31 = vpop.permute.xlu0 %3448  ;;  %v7242_v11 = vld [vmem:[%s9109_s4 + $0x18] sm:$0xff] }
 0xd3a   :  { %3457 = vst.msk [vmem:[#allocation5 + $0x48] sm:$0xf] %vm603_vm6, %v3449_v31 }
 0xd3c   :  { %v3343_v15 = vpop.permute.xlu1 %3342  ;;  %v6960_v36 = vld [vmem:[#allocation5] sm:$0xff]  }
 0xd3d   :  { %3350 = vst.msk [vmem:[#allocation5 + $0x28] sm:$0xf] %vm603_vm6, %v3343_v15  ;;  %v3271_v17 = vpop.permute.xlu0 %3270  ;;  %6673 = vmatprep.subr.bf16.mxu1 %v6960_v36 }
 0xd3e   :  { %3278 = vst.msk [vmem:[#allocation5 + $0x10] sm:$0xf] %vm603_vm6, %v3271_v17  ;;  %6674 = vmatpush3.bf16.msra.mxu1 %v6960_v36 }
 0xd3f   :  { %6821 = vmatprep.subr.msk.bf16.mxu1 %vm1930_vm7, %v6961_v47 }
 0xd40   :  { %v6962_v5 = vld [vmem:[#allocation5 + $0x18] sm:$0xff]  }
 0xd41   :  { %v3379_v26 = vpop.permute.xlu0 %3378  ;;  %6689 = vmatprep.subr.bf16.mxu0 %v6962_v5 }
 0xd42   :  { %3386 = vst.msk [vmem:[#allocation5 + $0x34] sm:$0xf] %vm603_vm6, %v3379_v26  ;;  %6676 = vmatpush3.bf16.msra.mxu1 %v4520_v20  ;;  %6690 = vmatpush3.bf16.msra.mxu0 %v6962_v5 }
 0xd43   :  { %6823 = vmatprep.subr.msk.bf16.mxu0 %vm1930_vm7, %v6963_v62 }
 0xd45   :  { %v3415_v42 = vpop.permute.xlu0 %3414  ;;  %v8561_v7 = vld [vmem:[#allocation5 + $0xc] sm:$0xff]  }
 0xd46   :  { %3422 = vst.msk [vmem:[#allocation5 + $0x40] sm:$0xf] %vm603_vm6, %v3415_v42  ;;  %6681 = vmatprep.subr.bf16.mxu1 %v8561_v7  ;;  %6692 = vmatpush3.bf16.msra.mxu0 %v4652_v24  ;;  %v7243_v42 = vld [vmem:[%s9109_s4 + $0x70] sm:$0x3] }
 0xd49   :  { %v3451_v43 = vpop.permute.xlu0 %3450  ;;  %v8566_v55 = vld [vmem:[#allocation5 + $0x30] sm:$0xff]  }
 0xd4a   :  { %3458 = vst.msk [vmem:[#allocation5 + $0x4c] sm:$0xf] %vm603_vm6, %v3451_v43  ;;  %6705 = vmatprep.subr.bf16.mxu0 %v8566_v55 }
 0xdb8   :  { %v6615_v8 = vpop.f32.mrb[56].mxu0 }
 0xdb9   :  { %v4178_v27 = vmul.f32 0.5, %v6615_v8  ;;  %v3630_v10 = vpop.f32.mrb[57].mxu0 }
 0xdba   :  { %v4176_v44 = vmul.f32 0.5, %v3630_v10  ;;  %v6616_v48 = vpop.f32.mrb[58].mxu0 }
 0xdbb   :  { %v8573_v21 = vadd.f32 %v7235_v46, %v4178_v27  ;;  %v3633_v51 = vpop.f32.mrb[59].mxu0 }
 0xdbc   :  { %v8578_v52 = vadd.f32 %v7236_v53, %v4176_v44  ;;  %v4177_v3 = vmul.f32 0.5, %v3633_v51  ;;  %v7244_v44 = vld [vmem:[%s9109_s4 + $0x60] sm:$0xff]  ;;  %v7245_v51 = vld [vmem:[%s9109_s4 + $0x68] sm:$0xff] }
 0xdbd   :  { %v4230_v59 = vsel %vm1640_vm8, %v8573_v21, -inf }
 0xdbe   :  { %4231 = vmax.xlane.f32.xlu0 %v4230_v59  ;;  %v4224_v19 = vsel %vm1633_vm9, %v8578_v52, -inf  ;;  %v8611_v38 = vadd.f32 %v7241_v57, %v4177_v3  ;;  %v7246_v59 = vld [vmem:[%s9109_s4 + $0x58] sm:$0x3] }
 0xdbf   :  { %4225 = vmax.xlane.f32.xlu1 %v4224_v19 }
 0xdc0   :  { %v4227_v36 = vsel %vm1633_vm9, %v8611_v38, -inf }
 0xdc8   :  { %v6623_v54 = vpop.f32.mrb[60].mxu0 }
 0xdc9   :  { %v3706_v41 = vpop.f32.mrb[61].mxu0  ;;  %v4181_v4 = vmul.f32 0.5, %v6623_v54 }
 0xdca   :  { %v6624_v61 = vpop.f32.mrb[62].mxu0  ;;  %v4179_v25 = vmul.f32 0.5, %v3706_v41 }
 0xdcb   :  { %v3709_v13 = vpop.f32.mrb[63].mxu0  ;;  %v8604_v40 = vadd.f32 %v7240_v6, %v4181_v4 }
 0xdcc   :  { %v8618_v31 = vadd.f32 %v7242_v11, %v4179_v25  ;;  %v4180_v10 = vmul.f32 0.5, %v3709_v13  ;;  %v7247_v13 = vld [vmem:[%s9109_s4 + $0x20] sm:$0xff]  ;;  %v7250_v11 = vld [vmem:[%s9109_s4 + $0x90] sm:$0xff] }
 0xdcd   :  { %v4239_v15 = vsel %vm1640_vm8, %v8604_v40, -inf }
 0xdce   :  { %v4233_v17 = vsel %vm1633_vm9, %v8618_v31, -inf }
 0xdd0   :  { %v6631_v23 = vpop.f32.mrb[60].mxu1 }
 0xdd1   :  { %v4184_v56 = vmul.f32 0.5, %v6631_v23  ;;  %v3782_v18 = vpop.f32.mrb[61].mxu1  ;;  %v8653_v23 = vadd.f32 %v7247_v13, %v4180_v10 }
 0xdd2   :  { %v4182_v9 = vmul.f32 0.5, %v3782_v18  ;;  %v6632_v58 = vpop.f32.mrb[62].mxu1 }
 0xdd3   :  { %v8587_v0 = vadd.f32 %v7237_v32, %v4184_v56  ;;  %v3785_v33 = vpop.f32.mrb[63].mxu1  ;;  %v7248_v32 = vld [vmem:[%s9109_s4 + $0x48] sm:$0xff] }
 0xdd4   :  { %v4183_v28 = vmul.f32 0.5, %v3785_v33  ;;  %v8592_v12 = vadd.f32 %v7238_v29, %v4182_v9 }
 0xdd5   :  { %v4248_v34 = vsel %vm1640_vm8, %v8587_v0, -inf }
 0xdd6   :  { %v8599_v14 = vadd.f32 %v7239_v2, %v4183_v28  ;;  %4249 = vmax.xlane.f32.xlu0 %v4248_v34  ;;  %v4242_v63 = vsel %vm1633_vm9, %v8592_v12, -inf  ;;  %v4236_v28 = vsel %vm1633_vm9, %v8653_v23, -inf }
 0xdd8   :  { %v6639_v22 = vpop.f32.mrb[64].mxu0  ;;  %v4245_v49 = vsel %vm1633_vm9, %v8599_v14, -inf }
 0xdd9   :  { %4246 = vmax.xlane.f32.xlu1 %v4245_v49  ;;  %v3858_v35 = vpop.f32.mrb[65].mxu0  ;;  %v4187_v8 = vmul.f32 0.5, %v6639_v22  ;;  %v7249_v22 = vld [vmem:[%s9109_s4 + $0xa0] sm:$0x3] }
 0xdda   :  { %4243 = vmax.xlane.f32.xlu0 %v4242_v63  ;;  %v6640_v37 = vpop.f32.mrb[66].mxu0  ;;  %v4185_v54 = vmul.f32 0.5, %v3858_v35 }
 0xddb   :  { %v3861_v39 = vpop.f32.mrb[67].mxu0  ;;  %v8646_v19 = vadd.f32 %v7246_v59, %v4187_v8 }
 0xddc   :  { %v8660_v33 = vadd.f32 %v7248_v32, %v4185_v54  ;;  %v4186_v37 = vmul.f32 0.5, %v3861_v39  ;;  %v7252_v39 = vld [vmem:[%s9109_s4 + $0x88] sm:$0x3] }
 0xddd   :  { %4240 = vmax.xlane.f32.xlu1 %v4239_v15  ;;  %v4257_v4 = vsel %vm1640_vm8, %v8646_v19, -inf }
 0xdde   :  { %4228 = vmax.xlane.f32.xlu0 %v4227_v36  ;;  %v4251_v3 = vsel %vm1633_vm9, %v8660_v33, -inf }
 0xde1   :  { %v6647_v47 = vpop.f32.mrb[64].mxu1  ;;  %4234 = vmax.xlane.f32.xlu1 %v4233_v17 }
 0xde2   :  { %v4190_v5 = vmul.f32 0.5, %v6647_v47  ;;  %v3934_v26 = vpop.f32.mrb[65].mxu1  ;;  %v7251_v47 = vld [vmem:[%s9109_s4 + $0x98] sm:$0xff] }
 0xde3   :  { %v4188_v20 = vmul.f32 0.5, %v3934_v26  ;;  %v6648_v62 = vpop.f32.mrb[66].mxu1 }
 0xde4   :  { %v8629_v24 = vadd.f32 %v7243_v42, %v4190_v5  ;;  %v3937_v43 = vpop.f32.mrb[67].mxu1 }
 0xde5   :  { %v4189_v27 = vmul.f32 0.5, %v3937_v43  ;;  %v8634_v48 = vadd.f32 %v7244_v44, %v4188_v20 }
 0xde6   :  { %v4266_v46 = vsel %vm1640_vm8, %v8629_v24, -inf }
 0xde7   :  { %v8641_v53 = vadd.f32 %v7245_v51, %v4189_v27  ;;  %4267 = vmax.xlane.f32.xlu0 %v4266_v46  ;;  %v4260_v18 = vsel %vm1633_vm9, %v8634_v48, -inf  ;;  %v7253_v27 = vld [vmem:[%s9109_s4 + $0x50] sm:$0xff]  ;;  %v7254_v51 = vld [vmem:[%s9109_s4 + $0x78] sm:$0xff] }
 0xde8   :  { %v8695_v10 = vadd.f32 %v7253_v27, %v4186_v37 }
 0xde9   :  { %v6655_v41 = vpop.f32.mrb[68].mxu0  ;;  %v4263_v61 = vsel %vm1633_vm9, %v8641_v53, -inf }
 0xdea   :  { %v4010_v56 = vpop.f32.mrb[69].mxu0  ;;  %4264 = vmax.xlane.f32.xlu1 %v4263_v61  ;;  %v4193_v35 = vmul.f32 0.5, %v6655_v41  ;;  %v7255_v61 = vld [vmem:[%s9109_s4 + $0x80] sm:$0xff] }
 0xdeb   :  { %v6656_v9 = vpop.f32.mrb[70].mxu0  ;;  %4261 = vmax.xlane.f32.xlu0 %v4260_v18  ;;  %v4191_v42 = vmul.f32 0.5, %v4010_v56  ;;  %v4254_v18 = vsel %vm1633_vm9, %v8695_v10, -inf }
 0xdec   :  { %v4013_v58 = vpop.f32.mrb[71].mxu0  ;;  %v8688_v62 = vadd.f32 %v7252_v39, %v4193_v35  ;;  %v7256_v9 = vld [vmem:[%s9109_s4 + $0xb8] sm:$0x3] }
 0xded   :  { %v4192_v44 = vmul.f32 0.5, %v4013_v58  ;;  %v8702_v59 = vadd.f32 %v7254_v51, %v4191_v42 }
 0xdee   :  { %4258 = vmax.xlane.f32.xlu1 %v4257_v4  ;;  %v4275_v41 = vsel %vm1640_vm8, %v8688_v62, -inf }
 0xdef   :  { %4237 = vmax.xlane.f32.xlu0 %v4236_v28  ;;  %v8709_v13 = vadd.f32 %v7255_v61, %v4192_v44  ;;  %v4269_v4 = vsel %vm1633_vm9, %v8702_v59, -inf  ;;  %v7257_v28 = vld [vmem:[%s9109_s4 + $0xb0] sm:$0xff] }
 0xdf2   :  { %4252 = vmax.xlane.f32.xlu1 %v4251_v3 }
 0xdf4   :  { %v6663_v29 = vpop.f32.mrb[68].mxu1 }
 0xdf5   :  { %v4196_v34 = vmul.f32 0.5, %v6663_v29  ;;  %v4086_v2 = vpop.f32.mrb[69].mxu1  ;;  %v4272_v29 = vsel %vm1633_vm9, %v8709_v13, -inf }
 0xdf6   :  { %v4194_v6 = vmul.f32 0.5, %v4086_v2  ;;  %v6664_v25 = vpop.f32.mrb[70].mxu1 }
 0xdf7   :  { %v8671_v49 = vadd.f32 %v7249_v22, %v4196_v34  ;;  %v4089_v57 = vpop.f32.mrb[71].mxu1  ;;  %v7258_v34 = vld [vmem:[%s9109_s4 + $0xa8] sm:$0xff]  ;;  %s9207_s4 = smov 8  }
 0xdf8   :  { %v4195_v63 = vmul.f32 0.5, %v4089_v57  ;;  %v8676_v15 = vadd.f32 %v7250_v11, %v4194_v6 }
 0xdf9   :  { %v6671_v36 = vpop.f32.mrb[72].mxu0  ;;  %v4284_v17 = vsel %vm1640_vm8, %v8671_v49, -inf }
 0xdfa   :  { %v8683_v5 = vadd.f32 %v7251_v47, %v4195_v63  ;;  %4285 = vmax.xlane.f32.xlu0 %v4284_v17  ;;  %v4162_v26 = vpop.f32.mrb[73].mxu0  ;;  %v4278_v46 = vsel %vm1633_vm9, %v8676_v15, -inf  ;;  %v4199_v54 = vmul.f32 0.5, %v6671_v36 }
 0xdfb   :  { %v6672_v20 = vpop.f32.mrb[74].mxu0  ;;  %v4197_v32 = vmul.f32 0.5, %v4162_v26 }
 0xdfc   :  { %v4165_v43 = vpop.f32.mrb[75].mxu0  ;;  %v4281_v8 = vsel %vm1633_vm9, %v8683_v5, -inf  ;;  %v8716_v58 = vadd.f32 %v7256_v9, %v4199_v54 }
 0xdfd   :  { %4282 = vmax.xlane.f32.xlu1 %v4281_v8  ;;  %v4198_v56 = vmul.f32 0.5, %v4165_v43  ;;  %v8730_v2 = vadd.f32 %v7258_v34, %v4197_v32 }
 0xdfe   :  { %4279 = vmax.xlane.f32.xlu0 %v4278_v46  ;;  %v4293_v6 = vsel %vm1640_vm8, %v8716_v58, -inf }
 0xdff   :  { %v8723_v3 = vadd.f32 %v7257_v28, %v4198_v56  ;;  %v4287_v22 = vsel %vm1633_vm9, %v8730_v2, -inf }
 0xe01   :  { %4276 = vmax.xlane.f32.xlu1 %v4275_v41  ;;  %v4290_v25 = vsel %vm1633_vm9, %v8723_v3, -inf }
 0xe02   :  { %4255 = vmax.xlane.f32.xlu0 %v4254_v18 }
 0xe05   :  { %4270 = vmax.xlane.f32.xlu1 %v4269_v4 }
 0xe06   :  { %4273 = vmax.xlane.f32.xlu0 %v4272_v29 }
 0xe09   :  { %4294 = vmax.xlane.f32.xlu1 %v4293_v6 }
 0xe0a   :  { %4291 = vmax.xlane.f32.xlu0 %v4290_v25 }
 0xe0d   :  { %4288 = vmax.xlane.f32.xlu1 %v4287_v22 }
 0xe1e   :  { %3484 = vrot.lane.b32.xlu1 %v8307_v1, %s9206_s0 }
 0xe20   :  { %3486 = vrot.lane.b32.xlu0 %v8315_v45, %s9206_s0 }
 0xe4b   :  { %v4232_v57 = vpop.xlane.xlu0 %4231 }
 0xe4c   :  { %v4298_v35 = vsub.f32 %v8573_v21, %v4232_v57  ;;  %v4226_v63 = vpop.xlane.xlu1 %4225 }
 0xe4d   :  { %v4296_v37 = vsub.f32 %v8578_v52, %v4226_v63 }
 0xe4e   :  { %v4324_v11 = vmul.f32 1.442695, %v4298_v35 }
 0xe4f   :  { %v4320_v36 = vmul.f32 1.442695, %v4296_v37 }
 0xe50   :  { %7112 = vpow2.f32 %v4324_v11 }
 0xe51   :  { %7114 = vpow2.f32 %v4320_v36 }
 0xe5a   :  { %v8744_v17 = vpop.eup %7112 }
 0xe5b   :  { %v4374_v47 = vsel %vm1640_vm8, %v8744_v17, 0.0  ;;  %v8748_v26 = vpop.eup %7114 }
 0xe5c   :  { %4375 = vadd.xlane.f32.xlu0 %v4374_v47  ;;  %v4368_v1 = vsel %vm1633_vm9, %v8748_v26, 0.0 }
 0xe60   :  { %4369 = vadd.xlane.f32.xlu0 %v4368_v1 }
 0xe63   :  { %v4250_v45 = vpop.xlane.xlu0 %4249 }
 0xe64   :  { %v4304_v21 = vsub.f32 %v8587_v0, %v4250_v45 }
 0xe66   :  { %v4336_v52 = vmul.f32 1.442695, %v4304_v21  ;;  %v4247_v20 = vpop.xlane.xlu1 %4246 }
 0xe67   :  { %v4303_v39 = vsub.f32 %v8599_v14, %v4247_v20  ;;  %v4244_v42 = vpop.xlane.xlu0 %4243 }
 0xe68   :  { %7116 = vpow2.f32 %v4336_v52  ;;  %v4302_v43 = vsub.f32 %v8592_v12, %v4244_v42 }
 0xe69   :  { %v4334_v8 = vmul.f32 1.442695, %v4303_v39 }
 0xe6a   :  { %v4332_v27 = vmul.f32 1.442695, %v4302_v43  ;;  %v4241_v44 = vpop.xlane.xlu1 %4240 }
 0xe6b   :  { %7118 = vpow2.f32 %v4334_v8  ;;  %v4301_v46 = vsub.f32 %v8604_v40, %v4241_v44  ;;  %v4229_v51 = vpop.xlane.xlu0 %4228 }
 0xe6c   :  { %7120 = vpow2.f32 %v4332_v27  ;;  %v4297_v54 = vsub.f32 %v8611_v38, %v4229_v51 }
 0xe6d   :  { %v4330_v41 = vmul.f32 1.442695, %v4301_v46 }
 0xe6e   :  { %v4322_v0 = vmul.f32 1.442695, %v4297_v54  ;;  %v4235_v61 = vpop.xlane.xlu1 %4234 }
 0xe6f   :  { %v4299_v14 = vsub.f32 %v8618_v31, %v4235_v61 }
 0xe70   :  { %7122 = vpow2.f32 %v4322_v0 }
 0xe71   :  { %7124 = vpow2.f32 %v4330_v41  ;;  %v4326_v4 = vmul.f32 1.442695, %v4299_v14 }
 0xe72   :  { %v8757_v56 = vpop.eup %7116 }
 0xe73   :  { %v4392_v12 = vsel %vm1640_vm8, %v8757_v56, 0.0 }
 0xe74   :  { %v4268_v18 = vpop.xlane.xlu0 %4267  ;;  %4393 = vadd.xlane.f32.xlu1 %v4392_v12 }
 0xe75   :  { %v8762_v9 = vpop.eup %7118  ;;  %v4310_v40 = vsub.f32 %v8629_v24, %v4268_v18 }
 0xe76   :  { %v8765_v32 = vpop.eup %7120  ;;  %v4389_v38 = vsel %vm1633_vm9, %v8762_v9, 0.0 }
 0xe77   :  { %v4348_v28 = vmul.f32 1.442695, %v4310_v40  ;;  %v4265_v29 = vpop.xlane.xlu1 %4264  ;;  %4390 = vadd.xlane.f32.xlu0 %v4389_v38  ;;  %v4386_v31 = vsel %vm1633_vm9, %v8765_v32, 0.0 }
 0xe78   :  { %v4309_v34 = vsub.f32 %v8641_v53, %v4265_v29  ;;  %v4262_v6 = vpop.xlane.xlu0 %4261  ;;  %4387 = vadd.xlane.f32.xlu1 %v4386_v31 }
 0xe79   :  { %7126 = vpow2.f32 %v4348_v28  ;;  %v4308_v25 = vsub.f32 %v8634_v48, %v4262_v6 }
 0xe7a   :  { %v8773_v24 = vpop.eup %7122  ;;  %7128 = vpow2.f32 %v4326_v4  ;;  %v4346_v22 = vmul.f32 1.442695, %v4309_v34 }
 0xe7b   :  { %v4344_v57 = vmul.f32 1.442695, %v4308_v25  ;;  %v4259_v35 = vpop.xlane.xlu1 %4258  ;;  %v4371_v63 = vsel %vm1633_vm9, %v8773_v24, 0.0  ;;  %v8777_v37 = vpop.eup %7124 }
 0xe7c   :  { %v4307_v11 = vsub.f32 %v8646_v19, %v4259_v35  ;;  %v4238_v36 = vpop.xlane.xlu0 %4237  ;;  %4372 = vadd.xlane.f32.xlu1 %v4371_v63  ;;  %v4383_v45 = vsel %vm1640_vm8, %v8777_v37, 0.0 }
 0xe7d   :  { %7130 = vpow2.f32 %v4344_v57  ;;  %v4300_v53 = vsub.f32 %v8653_v23, %v4238_v36 }
 0xe7e   :  { %7132 = vpow2.f32 %v4346_v22  ;;  %v4342_v48 = vmul.f32 1.442695, %v4307_v11 }
 0xe7f   :  { %v4328_v47 = vmul.f32 1.442695, %v4300_v53  ;;  %v4253_v1 = vpop.xlane.xlu1 %4252 }
 0xe80   :  { %v4305_v21 = vsub.f32 %v8660_v33, %v4253_v1  ;;  %4384 = vadd.xlane.f32.xlu1 %v4383_v45 }
 0xe81   :  { %7134 = vpow2.f32 %v4328_v47 }
 0xe82   :  { %7136 = vpow2.f32 %v4342_v48  ;;  %v4338_v19 = vmul.f32 1.442695, %v4305_v21 }
 0xe83   :  { %v8784_v52 = vpop.eup %7126 }
 0xe84   :  { %v4410_v20 = vsel %vm1640_vm8, %v8784_v52, 0.0  ;;  %v8788_v39 = vpop.eup %7128  ;;  %7138 = vpow2.f32 %v4338_v19 }
 0xe85   :  { %4411 = vadd.xlane.f32.xlu1 %v4410_v20  ;;  %v4377_v33 = vsel %vm1633_vm9, %v8788_v39, 0.0 }
 0xe87   :  { %v8790_v23 = vpop.eup %7130  ;;  %v4286_v42 = vpop.xlane.xlu0 %4285 }
 0xe88   :  { %v4316_v43 = vsub.f32 %v8671_v49, %v4286_v42  ;;  %v4404_v8 = vsel %vm1633_vm9, %v8790_v23, 0.0  ;;  %v8797_v27 = vpop.eup %7132 }
 0xe89   :  { %4378 = vadd.xlane.f32.xlu1 %v4377_v33  ;;  %4405 = vadd.xlane.f32.xlu0 %v4404_v8  ;;  %v4407_v0 = vsel %vm1633_vm9, %v8797_v27, 0.0 }
 0xe8a   :  { %v4360_v44 = vmul.f32 1.442695, %v4316_v43  ;;  %v4283_v46 = vpop.xlane.xlu1 %4282 }
 0xe8b   :  { %v8799_v51 = vpop.eup %7134  ;;  %v4315_v54 = vsub.f32 %v8683_v5, %v4283_v46  ;;  %v4280_v41 = vpop.xlane.xlu0 %4279 }
 0xe8c   :  { %7140 = vpow2.f32 %v4360_v44  ;;  %v4314_v49 = vsub.f32 %v8676_v15, %v4280_v41  ;;  %v4380_v61 = vsel %vm1633_vm9, %v8799_v51, 0.0  ;;  %v8807_v14 = vpop.eup %7136 }
 0xe8d   :  { %v4358_v12 = vmul.f32 1.442695, %v4315_v54  ;;  %4408 = vadd.xlane.f32.xlu1 %v4407_v0  ;;  %4381 = vadd.xlane.f32.xlu0 %v4380_v61  ;;  %v4401_v4 = vsel %vm1640_vm8, %v8807_v14, 0.0 }
 0xe8e   :  { %v4356_v18 = vmul.f32 1.442695, %v4314_v49  ;;  %v4277_v40 = vpop.xlane.xlu1 %4276  ;;  %v8813_v28 = vpop.eup %7138 }
 0xe8f   :  { %7142 = vpow2.f32 %v4358_v12  ;;  %v4313_v5 = vsub.f32 %v8688_v62, %v4277_v40  ;;  %v4256_v38 = vpop.xlane.xlu0 %4255  ;;  %v4395_v22 = vsel %vm1633_vm9, %v8813_v28, 0.0 }
 0xe90   :  { %7144 = vpow2.f32 %v4356_v18  ;;  %v4306_v15 = vsub.f32 %v8695_v10, %v4256_v38 }
 0xe91   :  { %v4354_v29 = vmul.f32 1.442695, %v4313_v5  ;;  %4402 = vadd.xlane.f32.xlu1 %v4401_v4 }
 0xe92   :  { %v4340_v31 = vmul.f32 1.442695, %v4306_v15  ;;  %v4271_v34 = vpop.xlane.xlu1 %4270 }
 0xe93   :  { %7146 = vpow2.f32 %v4354_v29  ;;  %v4311_v6 = vsub.f32 %v8702_v59, %v4271_v34  ;;  %v4274_v25 = vpop.xlane.xlu0 %4273 }
 0xe94   :  { %7148 = vpow2.f32 %v4340_v31  ;;  %v4312_v62 = vsub.f32 %v8709_v13, %v4274_v25 }
 0xe95   :  { %v4350_v10 = vmul.f32 1.442695, %v4311_v6  ;;  %4396 = vadd.xlane.f32.xlu1 %v4395_v22 }
 0xe96   :  { %v8819_v57 = vpop.eup %7140  ;;  %v4352_v35 = vmul.f32 1.442695, %v4312_v62  ;;  %v4295_v63 = vpop.xlane.xlu1 %4294 }
 0xe97   :  { %7150 = vpow2.f32 %v4350_v10  ;;  %v4319_v11 = vsub.f32 %v8716_v58, %v4295_v63  ;;  %v4292_v36 = vpop.xlane.xlu0 %4291  ;;  %v4428_v59 = vsel %vm1640_vm8, %v8819_v57, 0.0 }
 0xe98   :  { %v4318_v53 = vsub.f32 %v8723_v3, %v4292_v36  ;;  %4429 = vadd.xlane.f32.xlu0 %v4428_v59  ;;  %7152 = vpow2.f32 %v4352_v35 }
 0xe99   :  { %v8825_v13 = vpop.eup %7142  ;;  %v4366_v48 = vmul.f32 1.442695, %v4319_v11 }
 0xe9a   :  { %v8827_v47 = vpop.eup %7144  ;;  %v4364_v1 = vmul.f32 1.442695, %v4318_v53  ;;  %v4289_v45 = vpop.xlane.xlu1 %4288  ;;  %v4425_v21 = vsel %vm1633_vm9, %v8825_v13, 0.0 }
 0xe9b   :  { %7154 = vpow2.f32 %v4366_v48  ;;  %v4317_v58 = vsub.f32 %v8730_v2, %v4289_v45  ;;  %v3487_v19 = vpop.permute.xlu0 %3486  ;;  %v4422_v20 = vsel %vm1633_vm9, %v8827_v47, 0.0 }
 0xe9c   :  { %3494 = vst.msk [vmem:[#allocation5 + $0x58] sm:$0xf] %vm603_vm6, %v3487_v19  ;;  %4423 = vadd.xlane.f32.xlu1 %v4422_v20  ;;  %4426 = vadd.xlane.f32.xlu0 %v4425_v21  ;;  %7156 = vpow2.f32 %v4364_v1  ;;  %v6967_v19 = vld [vmem:[#allocation5 + $0x14] ss:$0 sps:$4 sm:$0x11]   ;;  %v6968_v20 = vld [vmem:[#allocation5 + $0x48] sm:$0xff]  }
 0xe9d   :  { %v8835_v3 = vpop.eup %7146  ;;  %v4362_v42 = vmul.f32 1.442695, %v4317_v58 }
 0xe9e   :  { %v8837_v43 = vpop.eup %7148  ;;  %v3485_v33 = vpop.permute.xlu1 %3484  ;;  %v4419_v8 = vsel %vm1640_vm8, %v8835_v3, 0.0 }
 0xe9f   :  { %7158 = vpow2.f32 %v4362_v42  ;;  %3493 = vst.msk [vmem:[#allocation5 + $0x54] sm:$0xf] %vm603_vm6, %v3485_v33  ;;  %v4398_v2 = vsel %vm1633_vm9, %v8837_v43, 0.0  ;;  %v6969_v42 = vld [vmem:[#allocation5 + $0x24] sm:$0xff]  }
 0xea0   :  { %4399 = vadd.xlane.f32.xlu1 %v4398_v2  ;;  %4420 = vadd.xlane.f32.xlu0 %v4419_v8 }
 0xea1   :  { %v8844_v44 = vpop.eup %7150 }
 0xea2   :  { %v4413_v46 = vsel %vm1633_vm9, %v8844_v44, 0.0  ;;  %v8848_v54 = vpop.eup %7152 }
 0xea3   :  { %v4416_v61 = vsel %vm1633_vm9, %v8848_v54, 0.0 }
 0xea4   :  { %4414 = vadd.xlane.f32.xlu1 %v4413_v46 }
 0xea5   :  { %v8850_v41 = vpop.eup %7154 }
 0xea6   :  { %v4437_v49 = vsel %vm1640_vm8, %v8850_v41, 0.0  ;;  %v8854_v0 = vpop.eup %7156  ;;  %vm9218_vm8 = vcmask 126048  }
 0xea7   :  { %4438 = vadd.xlane.f32.xlu0 %v4437_v49  ;;  %v4434_v18 = vsel %vm1633_vm9, %v8854_v0, 0.0 }
 0xea8   :  { %4417 = vadd.xlane.f32.xlu1 %v4416_v61 }
 0xea9   :  { %v8858_v12 = vpop.eup %7158 }
 0xeaa   :  { %v4431_v40 = vsel %vm1633_vm9, %v8858_v12, 0.0 }
 0xeab   :  { %4435 = vadd.xlane.f32.xlu0 %v4434_v18 }
 0xeac   :  { %4432 = vadd.xlane.f32.xlu1 %v4431_v40 }
 0xebd   :  { %3452 = vrot.lane.b32.xlu1 %v8305_v50, %s9205_s29  ;;  %s9208_s29 = smov 16  }
 0xec1   :  { %3488 = vrot.lane.b32.xlu0 %v8305_v50, %s9206_s0 }
 0xee9   :  { %v4376_v5 = vpop.xlane.xlu0 %4375 }
 0xeed   :  { %v4370_v38 = vpop.xlane.xlu0 %4369 }
 0xf01   :  { %v4394_v15 = vpop.xlane.xlu1 %4393 }
 0xf02   :  { %7160 = vrcp.f32 %v4394_v15 }
 0xf04   :  { %v4391_v4 = vpop.xlane.xlu0 %4390 }
 0xf05   :  { %7162 = vrcp.f32 %v4391_v4  ;;  %v4388_v29 = vpop.xlane.xlu1 %4387 }
 0xf06   :  { %7164 = vrcp.f32 %v4388_v29 }
 0xf07   :  { %7166 = vrcp.f32 %v4376_v5 }
 0xf08   :  { %7168 = vrcp.f32 %v4370_v38 }
 0xf09   :  { %v4373_v31 = vpop.xlane.xlu1 %4372 }
 0xf0a   :  { %7170 = vrcp.f32 %v4373_v31 }
 0xf0c   :  { %v7161_v34 = vpop.eup %7160 }
 0xf0d   :  { %v4385_v6 = vpop.xlane.xlu1 %4384  ;;  %v4472_v22 = vmul.f32 %v7161_v34, %v8757_v56 }
 0xf0e   :  { %7172 = vrcp.f32 %v4385_v6 }
 0xf0f   :  { %v7163_v25 = vpop.eup %7162  ;;  %v4493_v48 = vpack.c.bf16 %v4472_v22, %v4472_v22 }
 0xf10   :  { %v7165_v62 = vpop.eup %7164  ;;  %v4471_v50 = vmul.f32 %v7163_v25, %v8762_v9  ;;  %v6966_v9 = vld [vmem:[#allocation5 + $0x38] ss:$0 sps:$4 sm:$0x11]  }
 0xf11   :  { %v7167_v10 = vpop.eup %7166  ;;  %v4470_v35 = vmul.f32 %v7165_v62, %v8765_v32 }
 0xf12   :  { %v7169_v63 = vpop.eup %7168  ;;  %v4412_v11 = vpop.xlane.xlu1 %4411  ;;  %v4466_v53 = vmul.f32 %v7167_v10, %v8744_v17 }
 0xf13   :  { %v4492_v36 = vpack.c.bf16 %v4471_v50, %v4470_v35  ;;  %v4464_v1 = vmul.f32 %v7169_v63, %v8748_v26  ;;  %7174 = vrcp.f32 %v4412_v11 }
 0xf14   :  { %v7171_v59 = vpop.eup %7170  ;;  %v4489_v17 = vpack.c.bf16 %v4466_v53, %v4466_v53 }
 0xf15   :  { %6693 = vmatprep.mubr.msk.bf16.mxu0 %vm1633_vm9, %v4492_v36  ;;  %v4465_v45 = vmul.f32 %v7171_v59, %v8773_v24  ;;  %v4784_v24 = vsel %vm1930_vm7, %v6966_v9, 0 }
 0xf16   :  { %v4379_v21 = vpop.xlane.xlu1 %4378  ;;  %6694 = vmatmul.mubr.msk.bf16.vlgmr.msra.gmra.mrb[76].mxu0 %vm1633_vm9, %v4493_v48  ;;  %v4406_v56 = vpop.xlane.xlu0 %4405 }
 0xf17   :  { %6706 = vmatpush3.bf16.msra.mxu0 %v8566_v55  ;;  %v4488_v32 = vpack.c.bf16 %v4465_v45, %v4464_v1  ;;  %7176 = vrcp.f32 %v4406_v56  ;;  %v4586_v55 = vsel %vm1930_vm7, %v6967_v19, 0 }
 0xf18   :  { %6825 = vmatprep.subr.msk.bf16.mxu0 %vm1930_vm7, %v6966_v9  ;;  %7178 = vrcp.f32 %v4379_v21  ;;  %v7173_v8 = vpop.eup %7172 }
 0xf19   :  { %6677 = vmatprep.mubr.msk.bf16.mxu1 %vm1633_vm9, %v4488_v32  ;;  %v4469_v38 = vmul.f32 %v7173_v8, %v8777_v37  ;;  %v6970_v37 = vld [vmem:[#allocation5 + $0x2c] ss:$0 sps:$4 sm:$0x11]   ;;  %v6973_v8 = vld [vmem:[#allocation5 + $0x54] sm:$0xff]  }
 0xf1a   :  { %v4409_v26 = vpop.xlane.xlu1 %4408  ;;  %6678 = vmatmul.mubr.msk.bf16.vlgmr.msra.gmra.mrb[72].mxu1 %vm1633_vm9, %v4489_v17  ;;  %v4382_v58 = vpop.xlane.xlu0 %4381 }
 0xf1b   :  { %7180 = vrcp.f32 %v4409_v26  ;;  %6682 = vmatpush3.bf16.msra.mxu1 %v8561_v7  ;;  %6708 = vmatpush3.bf16.msra.mxu0 %v4784_v24 }
 0xf1c   :  { %7182 = vrcp.f32 %v4382_v58  ;;  %6822 = vmatprep.subr.msk.bf16.mxu1 %vm1930_vm7, %v6967_v19  ;;  %6721 = vmatprep.subr.bf16.mxu0 %v6968_v20 }
 0xf1d   :  { %v7175_v2 = vpop.eup %7174 }
 0xf1e   :  { %v4403_v33 = vpop.xlane.xlu1 %4402  ;;  %v4478_v18 = vmul.f32 %v7175_v2, %v8784_v52  ;;  %v4491_v52 = vpack.c.bf16 %v4469_v38, %v4469_v38 }
 0xf1f   :  { %6684 = vmatpush3.bf16.msra.mxu1 %v4586_v55  ;;  %7184 = vrcp.f32 %v4403_v33 }
 0xf20   :  { %6697 = vmatprep.subr.bf16.mxu1 %v6969_v42  ;;  %v4497_v22 = vpack.c.bf16 %v4478_v18, %v4478_v18 }
 0xf21   :  { %v7177_v46 = vpop.eup %7176 }
 0xf22   :  { %v7179_v49 = vpop.eup %7178  ;;  %v4397_v40 = vpop.xlane.xlu1 %4396  ;;  %v4476_v15 = vmul.f32 %v7177_v46, %v8790_v23 }
 0xf23   :  { %v4467_v29 = vmul.f32 %v7179_v49, %v8788_v39 }
 0xf25   :  { %v7181_v61 = vpop.eup %7180  ;;  %v4430_v7 = vpop.xlane.xlu0 %4429 }
 0xf26   :  { %v7183_v5 = vpop.eup %7182  ;;  %v4477_v4 = vmul.f32 %v7181_v61, %v8797_v27  ;;  %v4718_v27 = vsel %vm1930_vm7, %v6970_v37, 0 }
 0xf27   :  { %v4468_v31 = vmul.f32 %v7183_v5, %v8799_v51  ;;  %v6971_v51 = vld [vmem:[#allocation5 + $0x3c] sm:$0xff]  }
 0xf28   :  { %v4496_v34 = vpack.c.bf16 %v4477_v4, %v4476_v15 }
 0xf29   :  { %v4424_v6 = vpop.xlane.xlu1 %4423  ;;  %v4427_v25 = vpop.xlane.xlu0 %4426  ;;  %v4490_v62 = vpack.c.bf16 %v4468_v31, %v4467_v29 }
 0xf2a   :  { %7186 = vrcp.f32 %v4424_v6  ;;  %6709 = vmatprep.mubr.msk.bf16.mxu0 %vm1633_vm9, %v4496_v34  ;;  %v7185_v10 = vpop.eup %7184 }
 0xf2b   :  { %7188 = vrcp.f32 %v4427_v25  ;;  %6685 = vmatprep.mubr.msk.bf16.mxu1 %vm1633_vm9, %v4490_v62  ;;  %6710 = vmatmul.mubr.msk.bf16.vlgmr.msra.gmra.mrb[80].mxu0 %vm1633_vm9, %v4497_v22  ;;  %v4475_v45 = vmul.f32 %v7185_v10, %v8807_v14 }
 0xf2c   :  { %7190 = vrcp.f32 %v4397_v40  ;;  %6686 = vmatmul.mubr.msk.bf16.vlgmr.msra.gmra.mrb[76].mxu1 %vm1633_vm9, %v4491_v52  ;;  %6722 = vmatpush3.bf16.msra.mxu0 %v6968_v20 }
 0xf2d   :  { %6698 = vmatpush3.bf16.msra.mxu1 %v6969_v42  ;;  %v4400_v39 = vpop.xlane.xlu1 %4399  ;;  %v4421_v23 = vpop.xlane.xlu0 %4420  ;;  %v4495_v24 = vpack.c.bf16 %v4475_v45, %v4475_v45 }
 0xf2e   :  { %6824 = vmatprep.subr.msk.bf16.mxu1 %vm1930_vm7, %v6970_v37  ;;  %7192 = vrcp.f32 %v4400_v39 }
 0xf2f   :  { %7194 = vrcp.f32 %v4421_v23 }
 0xf31   :  { %6700 = vmatpush3.bf16.msra.mxu1 %v4718_v27  ;;  %v4415_v50 = vpop.xlane.xlu1 %4414 }
 0xf32   :  { %6713 = vmatprep.subr.bf16.mxu1 %v6971_v51  ;;  %7196 = vrcp.f32 %v4415_v50 }
 0xf34   :  { %v7187_v35 = vpop.eup %7186  ;;  %v4439_v63 = vpop.xlane.xlu0 %4438 }
 0xf35   :  { %v7189_v11 = vpop.eup %7188  ;;  %v4418_v36 = vpop.xlane.xlu1 %4417  ;;  %v4482_v59 = vmul.f32 %v7187_v35, %v8827_v47 }
 0xf36   :  { %v7191_v53 = vpop.eup %7190  ;;  %7198 = vrcp.f32 %v4418_v36  ;;  %v4483_v48 = vmul.f32 %v7189_v11, %v8825_v13 }
 0xf37   :  { %7200 = vrcp.f32 %v4430_v7  ;;  %v4473_v32 = vmul.f32 %v7191_v53, %v8813_v28  ;;  %v6972_v28 = vld [vmem:[#allocation5 + $0x44] ss:$0 sps:$4 sm:$0x11]  }
 0xf38   :  { %v7193_v1 = vpop.eup %7192  ;;  %v4436_v21 = vpop.xlane.xlu0 %4435  ;;  %v4500_v56 = vpack.c.bf16 %v4483_v48, %v4482_v59  ;;  %v4850_v33 = vsel %vm1930_vm7, %v6972_v28, 0 }
 0xf39   :  { %7202 = vrcp.f32 %v4436_v21  ;;  %v4433_v9 = vpop.xlane.xlu1 %4432  ;;  %v4474_v17 = vmul.f32 %v7193_v1, %v8837_v43  ;;  %v7195_v13 = vpop.eup %7194 }
 0xf3a   :  { %7204 = vrcp.f32 %v4433_v9  ;;  %6725 = vmatprep.mubr.msk.bf16.mxu0 %vm1633_vm9, %v4500_v56  ;;  %v4481_v19 = vmul.f32 %v7195_v13, %v8835_v3 }
 0xf3b   :  { %7206 = vrcp.f32 %v4439_v63  ;;  %v4494_v47 = vpack.c.bf16 %v4474_v17, %v4473_v32 }
 0xf3c   :  { %v3489_v26 = vpop.permute.xlu0 %3488  ;;  %v7197_v58 = vpop.eup %7196  ;;  %v4499_v61 = vpack.c.bf16 %v4481_v19, %v4481_v19 }
 0xf3d   :  { %3495 = vst.msk [vmem:[#allocation5 + $0x5c] sm:$0x1] %vm606_vm5, %v3489_v26  ;;  %v3453_v14 = vpop.permute.xlu1 %3452  ;;  %6701 = vmatprep.mubr.msk.bf16.mxu1 %vm1633_vm9, %v4494_v47  ;;  %v4479_v20 = vmul.f32 %v7197_v58, %v8844_v44 }
 0xf3e   :  { %3459 = vst.msk [vmem:[#allocation5 + $0x50] sm:$0x1] %vm606_vm5, %v3453_v14  ;;  %6702 = vmatmul.mubr.msk.bf16.vlgmr.msra.gmra.mrb[80].mxu1 %vm1633_vm9, %v4495_v24 }
 0xf3f   :  { %6714 = vmatpush3.bf16.msra.mxu1 %v6971_v51 }
 0xf40   :  { %v7199_v43 = vpop.eup %7198  ;;  %6826 = vmatprep.subr.msk.bf16.mxu1 %vm1930_vm7, %v6972_v28 }
 0xf41   :  { %v4480_v55 = vmul.f32 %v7199_v43, %v8848_v54  ;;  %v7201_v42 = vpop.eup %7200 }
 0xf42   :  { %v4484_v7 = vmul.f32 %v7201_v42, %v8819_v57 }
 0xf43   :  { %v7203_v2 = vpop.eup %7202  ;;  %6716 = vmatpush3.bf16.msra.mxu1 %v4850_v33  ;;  %v4498_v46 = vpack.c.bf16 %v4480_v55, %v4479_v20 }
 0xf44   :  { %v7205_v49 = vpop.eup %7204  ;;  %6729 = vmatprep.subr.bf16.mxu1 %v6973_v8  ;;  %v6974_v18 = vld [vmem:[#allocation5 + $0x5c] ss:$0 sps:$4 sm:$0x11]   ;;  %v4486_v40 = vmul.f32 %v7203_v2, %v8854_v0  ;;  %v4501_v57 = vpack.c.bf16 %v4484_v7, %v4484_v7  ;;  %v6977_v7 = vld [vmem:[%s9112_s7 + $0x18] sm:$0xff]  }
 0xf45   :  { %v7207_v3 = vpop.eup %7206  ;;  %6717 = vmatprep.mubr.msk.bf16.mxu1 %vm1633_vm9, %v4498_v46  ;;  %v6975_v44 = vld [vmem:[#allocation5 + $0x50] ss:$0 sps:$4 sm:$0x11]   ;;  %v4485_v54 = vmul.f32 %v7205_v49, %v8858_v12  ;;  %v4982_v0 = vsel %vm1930_vm7, %v6974_v18, 0 }
 0xf46   :  { %6718 = vmatmul.mubr.msk.bf16.vlgmr.msra.gmra.mrb[84].mxu1 %vm1633_vm9, %v4499_v61  ;;  %6827 = vmatprep.subr.msk.bf16.mxu0 %vm1930_vm7, %v6975_v44  ;;  %v4916_v5 = vsel %vm1930_vm7, %v6975_v44, 0  ;;  %v4487_v15 = vmul.f32 %v7207_v3, %v8850_v41  ;;  %v6976_v3 = vld [vmem:[%s9112_s7 + $0x10] sm:$0xff]  }
 0xf47   :  { %6730 = vmatpush3.bf16.msra.mxu1 %v6973_v8  ;;  %v4502_v38 = vpack.c.bf16 %v4486_v40, %v4485_v54  ;;  %6724 = vmatpush3.bf16.msra.mxu0 %v4916_v5 }
 0xf48   :  { %6828 = vmatprep.subr.msk.bf16.mxu1 %vm1930_vm7, %v6974_v18  ;;  %v4503_v12 = vpack.c.bf16 %v4487_v15, %v4487_v15  ;;  %6737 = vmatprep.subr.bf16.mxu0 %v6976_v3  ;;  %vm9217_vm7 = vcmask 155776  }
 0xf49   :  { %6733 = vmatprep.mubr.msk.bf16.mxu1 %vm1633_vm9, %v4502_v38 }
 0xf4a   :  { %6726 = vmatmul.mubr.msk.bf16.vlgmr.msra.gmra.mrb[84].mxu0 %vm1633_vm9, %v4501_v57 }
 0xf4b   :  { %6732 = vmatpush3.bf16.msra.mxu1 %v4982_v0  ;;  %6738 = vmatpush3.bf16.msra.mxu0 %v6976_v3 }
 0xf4c   :  { %6739 = vmatprep.subr.bf16.mxu0 %v6977_v7 }
 0xf4e   :  { %6734 = vmatmul.mubr.msk.bf16.vlgmr.msra.gmra.mrb[88].mxu1 %vm1633_vm9, %v4503_v12  ;;  %vm9219_vm9 = vcmask 188576  }
 0xf4f   :  { %6740 = vmatpush3.bf16.msra.mxu0 %v6977_v7 }
 0xfe9   :  { %v6695_v4 = vpop.f32.mrb[76].mxu0 }
 0xfea   :  { %v6173_v29 = vpack.c.bf16 %v6695_v4, %v6695_v4  ;;  %v4688_v31 = vpop.f32.mrb[77].mxu0 }
 0xfeb   :  { %v6696_v34 = vpop.f32.mrb[78].mxu0  ;;  %v6171_v62 = vpack.c.bf16 %v4688_v31, %v4688_v31 }
 0xfec   :  { %5084 = vrot.lane.b32.xlu0 %v6173_v29, %s9207_s4  ;;  %v4691_v41 = vpop.f32.mrb[79].mxu0 }
 0xfed   :  { %v6172_v6 = vpack.c.bf16 %v4691_v41, %v4691_v41  ;;  %v6679_v25 = vpop.f32.mrb[72].mxu1 }
 0xfee   :  { %v6167_v22 = vpack.c.bf16 %v6679_v25, %v6679_v25  ;;  %v4556_v52 = vpop.f32.mrb[73].mxu1 }
 0xfef   :  { %v6165_v37 = vpack.c.bf16 %v4556_v52, %v4556_v52  ;;  %v6680_v39 = vpop.f32.mrb[74].mxu1  ;;  %5082 = vrot.lane.b32.xlu1 %v6172_v6, %s9207_s4 }
 0xff0   :  { %5047 = vst.msk [vmem:[#allocation6 + $0x8] sm:$0x1] %vm606_vm5, %v6167_v22  ;;  %v4559_v23 = vpop.f32.mrb[75].mxu1  ;;  %5080 = vrot.lane.b32.xlu0 %v6171_v62, %s9207_s4  ;;  %vm9215_vm5 = vmmov %vm9214_vm2  ;;  %s7315_s4 = smov [#allocation7]  }
 0xff1   :  { %5045 = vst.msk [vmem:[#allocation6] sm:$0xf] %vm603_vm6, %v6165_v37  ;;  %v6166_v27 = vpack.c.bf16 %v4559_v23, %v4559_v23 }
 0xff3   :  { %5046 = vst.msk [vmem:[#allocation6 + $0x4] sm:$0xf] %vm603_vm6, %v6166_v27  ;;  %vm9216_vm6 = vcmask 122976  }
 0xffe   :  { %v6711_v51 = vpop.f32.mrb[80].mxu0 }
 0xfff   :  { %v6687_v50 = vpop.f32.mrb[76].mxu1  ;;  %v6179_v10 = vpack.c.bf16 %v6711_v51, %v6711_v51  ;;  %v4820_v35 = vpop.f32.mrb[81].mxu0 }
0x1000   :  { %v6170_v63 = vpack.c.bf16 %v6687_v50, %v6687_v50  ;;  %v4622_v11 = vpop.f32.mrb[77].mxu1  ;;  %v6712_v36 = vpop.f32.mrb[82].mxu0  ;;  %v6177_v1 = vpack.c.bf16 %v4820_v35, %v4820_v35 }
0x1001   :  { %v6688_v59 = vpop.f32.mrb[78].mxu1  ;;  %5128 = vrot.lane.b32.xlu0 %v6179_v10, %s9208_s29  ;;  %v4823_v53 = vpop.f32.mrb[83].mxu0  ;;  %v6168_v45 = vpack.c.bf16 %v4622_v11, %v4622_v11  ;;  %v6079_v36 = vld [vmem:[%s9113_s8 + $0x1] ss:$0 sm:$0xff] }
0x1002   :  { %5062 = vrot.lane.b32.xlu1 %v6170_v63, %s9209_s30  ;;  %v4625_v48 = vpop.f32.mrb[79].mxu1  ;;  %v6178_v56 = vpack.c.bf16 %v4823_v53, %v4823_v53 }
0x1003   :  { %v6169_v21 = vpack.c.bf16 %v4625_v48, %v4625_v48 }
0x1005   :  { %5124 = vrot.lane.b32.xlu0 %v6177_v1, %s9208_s29 }
0x1006   :  { %5058 = vrot.lane.b32.xlu1 %v6168_v45, %s9209_s30 }
0x1009   :  { %5060 = vrot.lane.b32.xlu0 %v6169_v21, %s9209_s30 }
0x100a   :  { %5126 = vrot.lane.b32.xlu1 %v6178_v56, %s9208_s29 }
0x1011   :  { %v6703_v9 = vpop.f32.mrb[80].mxu1 }
0x1012   :  { %v6176_v32 = vpack.c.bf16 %v6703_v9, %v6703_v9  ;;  %v4754_v17 = vpop.f32.mrb[81].mxu1 }
0x1013   :  { %v6704_v47 = vpop.f32.mrb[82].mxu1  ;;  %v6174_v24 = vpack.c.bf16 %v4754_v17, %v4754_v17 }
0x1014   :  { %5106 = vrot.lane.b32.xlu1 %v6176_v32, %s9210_s6  ;;  %v4757_v26 = vpop.f32.mrb[83].mxu1 }
0x1015   :  { %v6175_v40 = vpack.c.bf16 %v4757_v26, %v4757_v26 }
0x1018   :  { %5102 = vrot.lane.b32.xlu1 %v6174_v24, %s9210_s6 }
0x1019   :  { %v6719_v13 = vpop.f32.mrb[84].mxu1 }
0x101a   :  { %v4886_v14 = vpop.f32.mrb[85].mxu1  ;;  %v6182_v18 = vpack.c.bf16 %v6719_v13, %v6719_v13 }
0x101b   :  { %v6720_v58 = vpop.f32.mrb[86].mxu1  ;;  %v6180_v44 = vpack.c.bf16 %v4886_v14, %v4886_v14 }
0x101c   :  { %v4889_v28 = vpop.f32.mrb[87].mxu1 }
0x101d   :  { %v6727_v43 = vpop.f32.mrb[84].mxu0  ;;  %v6181_v54 = vpack.c.bf16 %v4889_v28, %v4889_v28 }
0x101e   :  { %v6185_v19 = vpack.c.bf16 %v6727_v43, %v6727_v43  ;;  %v4952_v20 = vpop.f32.mrb[85].mxu0 }
0x101f   :  { %v6728_v55 = vpop.f32.mrb[86].mxu0  ;;  %v6183_v46 = vpack.c.bf16 %v4952_v20, %v4952_v20 }
0x1020   :  { %5172 = vrot.lane.b32.xlu0 %v6185_v19, %s9211_s20  ;;  %v4955_v33 = vpop.f32.mrb[87].mxu0 }
0x1021   :  { %v6735_v42 = vpop.f32.mrb[88].mxu1  ;;  %v6184_v8 = vpack.c.bf16 %v4955_v33, %v4955_v33 }
0x1022   :  { %v5018_v2 = vpop.f32.mrb[89].mxu1  ;;  %v6188_v15 = vpack.c.bf16 %v6735_v42, %v6735_v42 }
0x1023   :  { %v6736_v49 = vpop.f32.mrb[90].mxu1  ;;  %5170 = vrot.lane.b32.xlu1 %v6184_v8, %s9211_s20  ;;  %v6186_v5 = vpack.c.bf16 %v5018_v2, %v5018_v2 }
0x1024   :  { %v5021_v61 = vpop.f32.mrb[91].mxu1  ;;  %5168 = vrot.lane.b32.xlu0 %v6183_v46, %s9211_s20  ;;  %v6980_v46 = vld [vmem:[%s9116_s11 + $0x10] sm:$0xff]   ;;  %v6981_v49 = vld [vmem:[%s9116_s11 + $0x18] sm:$0xff]  }
0x1025   :  { %v6187_v38 = vpack.c.bf16 %v5021_v61, %v5021_v61  ;;  %6745 = vmatprep.subr.bf16.mxu1 %v6980_v46 }
0x1026   :  { %6746 = vmatpush3.bf16.msra.mxu1 %v6980_v46 }
0x1027   :  { %5150 = vrot.lane.b32.xlu1 %v6182_v18, %s9212_s25  ;;  %6747 = vmatprep.subr.bf16.mxu1 %v6981_v49 }
0x1028   :  { %5104 = vrot.lane.b32.xlu0 %v6175_v40, %s9210_s6 }
0x102a   :  { %6748 = vmatpush3.bf16.msra.mxu1 %v6981_v49 }
0x102b   :  { %5146 = vrot.lane.b32.xlu1 %v6180_v44, %s9212_s25 }
0x102c   :  { %5148 = vrot.lane.b32.xlu0 %v6181_v54, %s9212_s25 }
0x102f   :  { %5190 = vrot.lane.b32.xlu1 %v6186_v5, %s9213_s26 }
0x1030   :  { %5192 = vrot.lane.b32.xlu0 %v6187_v38, %s9213_s26 }
0x1033   :  { %5194 = vrot.lane.b32.xlu1 %v6188_v15, %s9213_s26 }
0x105e   :  { %v5085_v57 = vpop.permute.xlu0 %5084 }
0x1061   :  { %v5083_v12 = vpop.permute.xlu1 %5082 }
0x1062   :  { %v5081_v0 = vpop.permute.xlu0 %5080 }
0x1073   :  { %v5129_v4 = vpop.permute.xlu0 %5128 }
0x1074   :  { %v5063_v29 = vpop.permute.xlu1 %5062 }
0x1075   :  { %5069 = vst.msk [vmem:[#allocation6 + $0x8] sm:$0x1] %vm2482_vm10, %v5063_v29  ;;  %vm9220_vm10 = vmmov %vm9218_vm8 }
0x1076   :  { %5091 = vst.msk [vmem:[#allocation6 + $0x8] sm:$0x1] %vm2506_vm12, %v5085_v57  ;;  %vm9222_vm12 = vcmask 224448   ;;  %v6088_v57 = vld [vmem:[%s9114_s9 + $0x1] ss:$0 sm:$0xff] }
0x1077   :  { %v5125_v31 = vpop.permute.xlu0 %5124  ;;  %vm9224_vm14 = vmmov %vm9222_vm12 }
0x1078   :  { %v5059_v34 = vpop.permute.xlu1 %5058 }
0x1079   :  { %5067 = vst.msk [vmem:[#allocation6] sm:$0xf] %vm2479_vm11, %v5059_v34  ;;  %v6089_v34 = vld [vmem:[%s9115_s10 + $0x1] ss:$0 sm:$0xff] }
0x107a   :  { %5089 = vst.msk [vmem:[#allocation6] sm:$0xf] %vm9214_vm2, %v5081_v0  ;;  %vm9226_vm2 = vmmov %vm9225_vm0 }
0x107b   :  { %v5061_v41 = vpop.permute.xlu0 %5060 }
0x107c   :  { %5068 = vst.msk [vmem:[#allocation6 + $0x4] sm:$0xf] %vm2479_vm11, %v5061_v41  ;;  %v5127_v6 = vpop.permute.xlu1 %5126  ;;  %vm9221_vm11 = vcmask 191648  }
0x107d   :  { %5090 = vst.msk [vmem:[#allocation6 + $0x4] sm:$0xf] %vm9215_vm5, %v5083_v12  ;;  %vm9223_vm13 = vmmov %vm9221_vm11 }
0x1086   :  { %v5107_v25 = vpop.permute.xlu1 %5106 }
0x1087   :  { %5113 = vst.msk [vmem:[#allocation6 + $0x8] sm:$0x1] %vm9216_vm6, %v5107_v25 }
0x1088   :  { %5135 = vst.msk [vmem:[#allocation6 + $0x8] sm:$0x1] %vm9217_vm7, %v5129_v4 }
0x108a   :  { %v5103_v62 = vpop.permute.xlu1 %5102 }
0x108b   :  { %5111 = vst.msk [vmem:[#allocation6] sm:$0xf] %vm9218_vm8, %v5103_v62 }
0x108c   :  { %5133 = vst.msk [vmem:[#allocation6] sm:$0xf] %vm2551_vm1, %v5125_v31 }
0x1092   :  { %v5173_v22 = vpop.permute.xlu0 %5172 }
0x1095   :  { %v5171_v52 = vpop.permute.xlu1 %5170 }
0x1096   :  { %v5169_v37 = vpop.permute.xlu0 %5168 }
0x1099   :  { %v5151_v39 = vpop.permute.xlu1 %5150 }
0x109a   :  { %5157 = vst.msk [vmem:[#allocation6 + $0x8] sm:$0x1] %vm9219_vm9, %v5151_v39  ;;  %v5105_v23 = vpop.permute.xlu0 %5104 }
0x109b   :  { %5179 = vst.msk [vmem:[#allocation6 + $0x8] sm:$0x1] %vm2602_vm15, %v5173_v22  ;;  %vm9227_vm15 = vcmask 254176  }
0x109c   :  { %5112 = vst.msk [vmem:[#allocation6 + $0x4] sm:$0xf] %vm9220_vm10, %v5105_v23  ;;  %v6982_v23 = vld [vmem:[%s9118_s13 + $0x40] sm:$0xff]  }
0x109d   :  { %5134 = vst.msk [vmem:[#allocation6 + $0x4] sm:$0xf] %vm2551_vm1, %v5127_v6  ;;  %v5147_v27 = vpop.permute.xlu1 %5146  ;;  %6753 = vmatprep.subr.bf16.mxu0 %v6982_v23 }
0x109e   :  { %5155 = vst.msk [vmem:[#allocation6] sm:$0xf] %vm9221_vm11, %v5147_v27  ;;  %v5149_v51 = vpop.permute.xlu0 %5148  ;;  %v6983_v27 = vld [vmem:[%s9118_s13 + $0x48] sm:$0xff]  }
0x109f   :  { %5177 = vst.msk [vmem:[#allocation6] sm:$0xf] %vm9222_vm12, %v5169_v37 }
0x10a0   :  { %5156 = vst.msk [vmem:[#allocation6 + $0x4] sm:$0xf] %vm9223_vm13, %v5149_v51  ;;  %v6984_v51 = vld [vmem:[%s9118_s13 + $0x50] sm:$0xff]  }
0x10a1   :  { %5178 = vst.msk [vmem:[#allocation6 + $0x4] sm:$0xf] %vm9224_vm14, %v5171_v52  ;;  %v5191_v50 = vpop.permute.xlu1 %5190 }
0x10a2   :  { %5199 = vst.msk [vmem:[#allocation6] sm:$0xf] %vm9225_vm0, %v5191_v50  ;;  %v5193_v10 = vpop.permute.xlu0 %5192  ;;  %v6985_v50 = vld [vmem:[%s9118_s13 + $0x58] sm:$0xff]  }
0x10a3   :  { %5200 = vst.msk [vmem:[#allocation6 + $0x4] sm:$0xf] %vm9226_vm2, %v5193_v10  ;;  %v6986_v10 = vld [vmem:[%s9118_s13 + $0x60] sm:$0xff]  }
0x10a5   :  { %v5195_v35 = vpop.permute.xlu1 %5194 }
0x10a6   :  { %5201 = vst.msk [vmem:[#allocation6 + $0x8] sm:$0x1] %vm9227_vm15, %v5195_v35  ;;  %v6987_v35 = vld [vmem:[%s9118_s13 + $0x68] sm:$0xff]  }
0x10aa   :  { %v6978_v63 = vld [vmem:[#allocation6] sm:$0xff]  }
0x10ab   :  { %6741 = vmatprep.mubr.msk.bf16.mxu0 %vm275_vm4, %v6978_v63  ;;  %v6988_v63 = vld [vmem:[%s9118_s13 + $0x70] sm:$0xff]  }
0x10ad   :  { %v6979_v11 = vld [vmem:[#allocation6 + $0x8] ss:$0 sps:$4 sm:$0x11]  }
0x10ae   :  { %6742 = vmatmul.mubr.msk.bf16.vlgmr.msra.gmra.mrb[88].mxu0 %vm275_vm4, %v6979_v11  ;;  %v6989_v11 = vld [vmem:[%s9118_s13 + $0x78] sm:$0xff]  }
0x10af   :  { %6754 = vmatpush3.bf16.msra.mxu0 %v6982_v23 }
0x10b0   :  { %6755 = vmatprep.subr.bf16.mxu0 %v6983_v27 }
0x10b3   :  { %6756 = vmatpush3.bf16.msra.mxu0 %v6983_v27 }
0x10b4   :  { %6757 = vmatprep.subr.bf16.mxu0 %v6984_v51 }
0x10b7   :  { %6758 = vmatpush3.bf16.msra.mxu0 %v6984_v51 }
0x10b8   :  { %6759 = vmatprep.subr.bf16.mxu0 %v6985_v50 }
0x10bb   :  { %6760 = vmatpush3.bf16.msra.mxu0 %v6985_v50 }
0x10bc   :  { %6761 = vmatprep.subr.bf16.mxu0 %v6986_v10 }
0x10bf   :  { %6762 = vmatpush3.bf16.msra.mxu0 %v6986_v10 }
0x10c0   :  { %6763 = vmatprep.subr.bf16.mxu0 %v6987_v35 }
0x10c3   :  { %6764 = vmatpush3.bf16.msra.mxu0 %v6987_v35 }
0x10c4   :  { %6765 = vmatprep.subr.bf16.mxu0 %v6988_v63 }
0x10c7   :  { %6766 = vmatpush3.bf16.msra.mxu0 %v6988_v63 }
0x10c8   :  { %6767 = vmatprep.subr.bf16.mxu0 %v6989_v11 }
0x10cb   :  { %6768 = vmatpush3.bf16.msra.mxu0 %v6989_v11 }
0x1181   :  { %v6743_v59 = vpop.f32.mrb[88].mxu0 }
0x1182   :  { %v5278_v53 = vpop.f32.mrb[89].mxu0  ;;  %v5287_v48 = vadd.f32 %v6743_v59, %v6079_v36 }
0x1183   :  { %v5279_v1 = vadd.f32 %v6079_v36, %v5278_v53  ;;  %v6744_v45 = vpop.f32.mrb[90].mxu0 }
0x1184   :  { %v5281_v21 = vpop.f32.mrb[91].mxu0  ;;  %v5294_v32 = vadd.f32 %v5287_v48, %v8296_v60 }
0x1185   :  { %v5292_v56 = vadd.f32 %v5279_v1, %v8290_v16  ;;  %v5282_v9 = vadd.f32 %v6079_v36, %v5281_v21  ;;  %v6095_v36 = vld [vmem:[%s9117_s12 + $0x1] ss:$0 sm:$0xff] }
0x1186   :  { %v5305_v24 = vsel %vm2727_vm3, %v5294_v32, 0.0 }
0x1187   :  { %v5293_v17 = vadd.f32 %v5282_v9, %v8292_v30  ;;  %v5299_v47 = vsel %vm275_vm4, %v5292_v56, 0.0 }
0x1188   :  { %5300 = vadd.xlane.f32.xlu0 %v5299_v47 }
0x1189   :  { %v5302_v26 = vsel %vm275_vm4, %v5293_v17, 0.0 }
0x118a   :  { %5303 = vadd.xlane.f32.xlu1 %v5302_v26 }
0x118c   :  { %5306 = vadd.xlane.f32.xlu0 %v5305_v24 }
0x1215   :  { %v5301_v13 = vpop.xlane.xlu0 %5300 }
0x1216   :  { %v5308_v14 = vmul.f32 0.03125, %v5301_v13 }
0x1217   :  { %v5304_v58 = vpop.xlane.xlu1 %5303 }
0x1218   :  { %v5311_v28 = vsub.f32 %v5292_v56, %v5308_v14  ;;  %v5309_v43 = vmul.f32 0.03125, %v5304_v58 }
0x1219   :  { %v5307_v16 = vpop.xlane.xlu0 %5306 }
0x121a   :  { %v5312_v19 = vsub.f32 %v5293_v17, %v5309_v43  ;;  %v5310_v20 = vmul.f32 0.03125, %v5307_v16  ;;  %v5314_v60 = vmul.f32 %v5311_v28, %v5311_v28 }
0x121c   :  { %v5313_v55 = vsub.f32 %v5294_v32, %v5310_v20  ;;  %v5317_v30 = vsel %vm275_vm4, %v5314_v60, 0.0  ;;  %v5315_v42 = vmul.f32 %v5312_v19, %v5312_v19 }
0x121d   :  { %5318 = vadd.xlane.f32.xlu0 %v5317_v30 }
0x121e   :  { %v5320_v33 = vsel %vm275_vm4, %v5315_v42, 0.0  ;;  %v5316_v8 = vmul.f32 %v5313_v55, %v5313_v55 }
0x121f   :  { %5321 = vadd.xlane.f32.xlu1 %v5320_v33 }
0x1220   :  { %v5323_v2 = vsel %vm2727_vm3, %v5316_v8, 0.0 }
0x1221   :  { %5324 = vadd.xlane.f32.xlu0 %v5323_v2 }
0x12aa   :  { %v5319_v61 = vpop.xlane.xlu0 %5318 }
0x12ab   :  { %v5326_v18 = vmul.f32 0.03125, %v5319_v61 }
0x12ac   :  { %v5322_v40 = vpop.xlane.xlu1 %5321 }
0x12ad   :  { %v5329_v3 = vadd.f32 1e-05, %v5326_v18  ;;  %v5327_v7 = vmul.f32 0.03125, %v5322_v40 }
0x12ae   :  { %v5325_v44 = vpop.xlane.xlu0 %5324 }
0x12af   :  { %7208 = vrsqrt.f32 %v5329_v3  ;;  %v5330_v54 = vadd.f32 1e-05, %v5327_v7  ;;  %v5328_v5 = vmul.f32 0.03125, %v5325_v44 }
0x12b1   :  { %7210 = vrsqrt.f32 %v5330_v54  ;;  %v5331_v38 = vadd.f32 1e-05, %v5328_v5 }
0x12b3   :  { %7212 = vrsqrt.f32 %v5331_v38 }
0x12b9   :  { %v7209_v15 = vpop.eup %7208 }
0x12ba   :  { %v5335_v0 = vmul.f32 %v7209_v15, %v5311_v28 }
0x12bb   :  { %v7211_v12 = vpop.eup %7210 }
0x12bc   :  { %v5336_v4 = vmul.f32 %v7211_v12, %v5312_v19  ;;  %v5344_v29 = vmul.f32 %v6088_v57, %v5335_v0 }
0x12bd   :  { %v7213_v31 = vpop.eup %7212 }
0x12be   :  { %v5337_v41 = vmul.f32 %v7213_v31, %v5313_v55  ;;  %v5345_v6 = vmul.f32 %v6088_v57, %v5336_v4  ;;  %v9001_v25 = vadd.f32 %v6089_v34, %v5344_v29 }
0x12c0   :  { %v9003_v62 = vadd.f32 %v6089_v34, %v5345_v6  ;;  %v5346_v22 = vmul.f32 %v6088_v57, %v5337_v41 }
0x12c2   :  { %v5356_v52 = vpack.c.bf16 %v9003_v62, %v9001_v25  ;;  %v9007_v37 = vadd.f32 %v6089_v34, %v5346_v22 }
0x12c4   :  { %6749 = vmatprep.mubr.msk.bf16.mxu1 %vm275_vm4, %v5356_v52  ;;  %v5357_v39 = vpack.c.bf16 %v9007_v37, %v9007_v37 }
0x12c6   :  { %6750 = vmatmul.mubr.msk.bf16.vlgmr.msra.gmra.mrb[92].mxu1 %vm275_vm4, %v5357_v39 }
0x1399   :  { %v6751_v59 = vpop.f32.mrb[92].mxu1 }
0x139a   :  { %v9040_v53 = vadd.f32 %v6751_v59, %v6095_v36  ;;  %v5423_v48 = vpop.f32.mrb[93].mxu1 }
0x139b   :  { %v9042_v1 = vadd.f32 %v6095_v36, %v5423_v48  ;;  %v6752_v45 = vpop.f32.mrb[94].mxu1 }
0x139c   :  { %v9045_v21 = vmul.f32 0.70710677, %v9040_v53  ;;  %v5426_v56 = vpop.f32.mrb[95].mxu1 }
0x139d   :  { %v9048_v9 = vmul.f32 0.70710677, %v9042_v1  ;;  %v9050_v32 = vadd.f32 %v6095_v36, %v5426_v56 }
0x139e   :  { %v5445_v17 = vand.u32 2147483647, %v9045_v21  ;;  %vm5505_vm1 = vcmp.ge.f32.partialorder %v9045_v21, 0.0 }
0x139f   :  { %v5443_v47 = vand.u32 2147483647, %v9048_v9  ;;  %v9055_v26 = vmul.f32 0.70710677, %v9050_v32  ;;  %vm5503_vm5 = vcmp.ge.f32.partialorder %v9048_v9, 0.0 }
0x13a0   :  { %v5448_v24 = vmul.f32 0.3275911, %v5445_v17  ;;  %v5487_v19 = vsub.f32 0.0, %v5445_v17 }
0x13a1   :  { %v5446_v13 = vmul.f32 0.3275911, %v5443_v47  ;;  %v5444_v14 = vand.u32 2147483647, %v9055_v26  ;;  %v5485_v20 = vsub.f32 0.0, %v5443_v47  ;;  %vm5504_vm6 = vcmp.ge.f32.partialorder %v9055_v26, 0.0 }
0x13a2   :  { %v5451_v58 = vadd.f32 1.0, %v5448_v24  ;;  %v5490_v55 = vmul.f32 %v5487_v19, %v5445_v17  ;;  %v5439_v19 = vmul.f32 0.5, %v9040_v53 }
0x13a3   :  { %v5449_v28 = vadd.f32 1.0, %v5446_v13  ;;  %v5447_v43 = vmul.f32 0.3275911, %v5444_v14  ;;  %v5486_v30 = vsub.f32 0.0, %v5444_v14  ;;  %v5488_v8 = vmul.f32 %v5485_v20, %v5443_v47 }
0x13a4   :  { %7214 = vrcp.f32 %v5451_v58  ;;  %v5495_v61 = vmul.f32 1.442695, %v5490_v55  ;;  %v5438_v55 = vmul.f32 0.5, %v9050_v32 }
0x13a5   :  { %7216 = vrcp.f32 %v5449_v28  ;;  %v5450_v16 = vadd.f32 1.0, %v5447_v43  ;;  %v5489_v40 = vmul.f32 %v5486_v30, %v5444_v14  ;;  %v5491_v7 = vmul.f32 1.442695, %v5488_v8 }
0x13a7   :  { %7218 = vrcp.f32 %v5450_v16  ;;  %v5493_v57 = vmul.f32 1.442695, %v5489_v40 }
0x13a8   :  { %7220 = vpow2.f32 %v5495_v61 }
0x13a9   :  { %7222 = vpow2.f32 %v5491_v7 }
0x13aa   :  { %7224 = vpow2.f32 %v5493_v57 }
0x13ae   :  { %v7215_v60 = vpop.eup %7214 }
0x13af   :  { %v7217_v42 = vpop.eup %7216  ;;  %v5460_v33 = vmul.f32 1.0614054, %v7215_v60 }
0x13b0   :  { %v5458_v2 = vmul.f32 1.0614054, %v7217_v42 }
0x13b1   :  { %v5463_v46 = vadd.f32 -1.4531521, %v5460_v33  ;;  %v7219_v49 = vpop.eup %7218 }
0x13b2   :  { %v5461_v18 = vadd.f32 -1.4531521, %v5458_v2  ;;  %v5459_v44 = vmul.f32 1.0614054, %v7219_v49  ;;  %v7221_v50 = vpop.eup %7220  ;;  %v6117_v2 = vld [vmem:[%s9119_s14 + $0x1] ss:$0 sm:$0xff] }
0x13b3   :  { %v5466_v3 = vmul.f32 %v7215_v60, %v5463_v46  ;;  %v7223_v35 = vpop.eup %7222 }
0x13b4   :  { %v5464_v54 = vmul.f32 %v7217_v42, %v5461_v18  ;;  %v5462_v38 = vadd.f32 -1.4531521, %v5459_v44  ;;  %v7225_v45 = vpop.eup %7224 }
0x13b5   :  { %v5469_v5 = vadd.f32 1.4214138, %v5466_v3 }
0x13b6   :  { %v5467_v15 = vadd.f32 1.4214138, %v5464_v54  ;;  %v5465_v12 = vmul.f32 %v7219_v49, %v5462_v38 }
0x13b7   :  { %v5472_v0 = vmul.f32 %v7215_v60, %v5469_v5 }
0x13b8   :  { %v5470_v4 = vmul.f32 %v7217_v42, %v5467_v15  ;;  %v5468_v31 = vadd.f32 1.4214138, %v5465_v12 }
0x13b9   :  { %v5475_v29 = vadd.f32 -0.28449672, %v5472_v0 }
0x13ba   :  { %v5473_v34 = vadd.f32 -0.28449672, %v5470_v4  ;;  %v5471_v6 = vmul.f32 %v7219_v49, %v5468_v31 }
0x13bb   :  { %v5478_v41 = vmul.f32 %v7215_v60, %v5475_v29 }
0x13bc   :  { %v5476_v22 = vmul.f32 %v7217_v42, %v5473_v34  ;;  %v5474_v39 = vadd.f32 -0.28449672, %v5471_v6 }
0x13bd   :  { %v5481_v52 = vadd.f32 0.2548296, %v5478_v41 }
0x13be   :  { %v5479_v23 = vadd.f32 0.2548296, %v5476_v22  ;;  %v5477_v51 = vmul.f32 %v7219_v49, %v5474_v39  ;;  %v6990_v22 = vld [vmem:[%s9122_s17] sm:$0xff]  }
0x13bf   :  { %v5484_v27 = vmul.f32 %v7215_v60, %v5481_v52  ;;  %v5437_v60 = vmul.f32 0.5, %v9042_v1  ;;  %6773 = vmatprep.subr.bf16.mxu1 %v6990_v22  ;;  %v6991_v52 = vld [vmem:[%s9122_s17 + $0x8] sm:$0xff]  }
0x13c0   :  { %v5482_v10 = vmul.f32 %v7217_v42, %v5479_v23  ;;  %v5480_v11 = vadd.f32 0.2548296, %v5477_v51  ;;  %6774 = vmatpush3.bf16.msra.mxu1 %v6990_v22 }
0x13c1   :  { %v5499_v63 = vmul.f32 %v7221_v50, %v5484_v27  ;;  %6775 = vmatprep.subr.bf16.mxu1 %v6991_v52 }
0x13c2   :  { %v5497_v36 = vmul.f32 %v7223_v35, %v5482_v10  ;;  %v5483_v48 = vmul.f32 %v7219_v49, %v5480_v11 }
0x13c3   :  { %v5502_v59 = vsub.f32 1.0, %v5499_v63 }
0x13c4   :  { %v5500_v56 = vsub.f32 1.0, %v5497_v36  ;;  %v5498_v47 = vmul.f32 %v7225_v45, %v5483_v48  ;;  %6776 = vmatpush3.bf16.msra.mxu1 %v6991_v52 }
0x13c5   :  { %v5508_v17 = vsub.f32 0.0, %v5502_v59 }
0x13c6   :  { %v5506_v24 = vsub.f32 0.0, %v5500_v56  ;;  %v5501_v14 = vsub.f32 1.0, %v5498_v47 }
0x13c7   :  { %v5511_v13 = vsel %vm5505_vm1, %v5502_v59, %v5508_v17  ;;  %v6128_v59 = vld [vmem:[%s9120_s15 + $0x1] ss:$0 sm:$0xff] }
0x13c8   :  { %v5509_v58 = vsel %vm5503_vm5, %v5500_v56, %v5506_v24  ;;  %v5514_v28 = vadd.f32 1.0, %v5511_v13  ;;  %v5507_v43 = vsub.f32 0.0, %v5501_v14  ;;  %v6129_v24 = vld [vmem:[%s9121_s16 + $0x1] ss:$0 sm:$0xff]  ;;  %s5791_s16 = sshll.u32 %s7315_s4, 4  ;;  %s5792_s16 = int_to_ptr.vmem [resolvable:$true] %s5791_s16 }
0x13c9   :  { %v5512_v16 = vadd.f32 1.0, %v5509_v58  ;;  %s7259_s29 = scalar_lea.vmem %s5792_s16, 32  ;;  %p7264_p1 = scmp.lt.s32.totalorder %s5792_s16, %s5792_s16 }
0x13ca   :  { %v5510_v20 = vsel %vm5504_vm6, %v5501_v14, %v5507_v43  ;;  %v5517_v21 = vmul.f32 %v5514_v28, %v5439_v19  ;;  %p7260_p0 = scmp.ne.s32.totalorder %s5792_s16, %s7259_s29  ;;  %p7265_p2 = scmp.lt.s32.totalorder %s7259_s29, %s7259_s29 }
0x13cb   :  { %v5513_v30 = vadd.f32 1.0, %v5510_v20  ;;  %v5515_v42 = vmul.f32 %v5512_v16, %v5437_v60  ;;  %v6130_v60 = vld [vmem:[%s9123_s18] ss:$0 sm:$0xff] }
0x13cc   :  { %v5519_v9 = vpack.c.bf16 %v5517_v21, %v5517_v21  ;;  %p7266_p3 = por %p7265_p2, %p7264_p1 }
0x13cd   :  { %v5516_v33 = vmul.f32 %v5513_v30, %v5438_v55 }
0x13ce   :  { %p7267_p4 = pnand %p7266_p3, %p7260_p0 }
0x13cf   :  { %v5518_v8 = vpack.c.bf16 %v5516_v33, %v5515_v42 }
0x13d1   :  { %6769 = vmatprep.mubr.bf16.mxu0 %v5518_v8 }
0x13d2   :  { %6770 = vmatmul.mubr.bf16.vlgmr.msra.gmra.mrb[92].mxu0 %v5519_v9 }
0x14a5   :  { %v6771_v26 = vpop.f32.mrb[92].mxu0 }
0x14a6   :  { %v5627_v46 = vpop.f32.mrb[93].mxu0  ;;  %v5636_v53 = vadd.f32 %v6771_v26, %v6117_v2 }
0x14a7   :  { %v5628_v49 = vadd.f32 %v6117_v2, %v5627_v46  ;;  %v6772_v61 = vpop.f32.mrb[94].mxu0 }
0x14a8   :  { %v5630_v1 = vpop.f32.mrb[95].mxu0  ;;  %v5643_v40 = vadd.f32 %v5636_v53, %v9007_v37 }
0x14a9   :  { %v5641_v32 = vadd.f32 %v5628_v49, %v9001_v25  ;;  %v5631_v18 = vadd.f32 %v6117_v2, %v5630_v1 }
0x14aa   :  { %v5654_v54 = vsel %vm2727_vm3, %v5643_v40, 0.0 }
0x14ab   :  { %v5642_v3 = vadd.f32 %v5631_v18, %v9003_v62  ;;  %v5648_v7 = vsel %vm275_vm4, %v5641_v32, 0.0 }
0x14ac   :  { %5649 = vadd.xlane.f32.xlu1 %v5648_v7 }
0x14ad   :  { %v5651_v44 = vsel %vm275_vm4, %v5642_v3, 0.0 }
0x14ae   :  { %5652 = vadd.xlane.f32.xlu0 %v5651_v44 }
0x14b0   :  { %5655 = vadd.xlane.f32.xlu1 %v5654_v54 }
0x1539   :  { %v5650_v5 = vpop.xlane.xlu1 %5649 }
0x153a   :  { %v5657_v38 = vmul.f32 0.03125, %v5650_v5 }
0x153b   :  { %v5653_v15 = vpop.xlane.xlu0 %5652 }
0x153c   :  { %v5660_v57 = vsub.f32 %v5641_v32, %v5657_v38  ;;  %v5658_v0 = vmul.f32 0.03125, %v5653_v15 }
0x153d   :  { %v5656_v25 = vpop.xlane.xlu1 %5655 }
0x153e   :  { %v5661_v12 = vsub.f32 %v5642_v3, %v5658_v0  ;;  %v5659_v4 = vmul.f32 0.03125, %v5656_v25  ;;  %v5663_v37 = vmul.f32 %v5660_v57, %v5660_v57 }
0x1540   :  { %v5662_v29 = vsub.f32 %v5643_v40, %v5659_v4  ;;  %v5666_v62 = vsel %vm275_vm4, %v5663_v37, 0.0  ;;  %v5664_v31 = vmul.f32 %v5661_v12, %v5661_v12 }
0x1541   :  { %5667 = vadd.xlane.f32.xlu0 %v5666_v62 }
0x1542   :  { %v5669_v34 = vsel %vm275_vm4, %v5664_v31, 0.0  ;;  %v5665_v41 = vmul.f32 %v5662_v29, %v5662_v29 }
0x1543   :  { %5670 = vadd.xlane.f32.xlu1 %v5669_v34 }
0x1544   :  { %v5672_v6 = vsel %vm2727_vm3, %v5665_v41, 0.0 }
0x1545   :  { %5673 = vadd.xlane.f32.xlu0 %v5672_v6 }
0x15ce   :  { %v5668_v39 = vpop.xlane.xlu0 %5667 }
0x15cf   :  { %v5675_v23 = vmul.f32 0.03125, %v5668_v39 }
0x15d0   :  { %v5671_v27 = vpop.xlane.xlu1 %5670 }
0x15d1   :  { %v5678_v51 = vadd.f32 1e-05, %v5675_v23  ;;  %v5676_v50 = vmul.f32 0.03125, %v5671_v27 }
0x15d2   :  { %v5674_v10 = vpop.xlane.xlu0 %5673 }
0x15d3   :  { %7226 = vrsqrt.f32 %v5678_v51  ;;  %v5679_v35 = vadd.f32 1e-05, %v5676_v50  ;;  %v5677_v63 = vmul.f32 0.03125, %v5674_v10 }
0x15d5   :  { %7228 = vrsqrt.f32 %v5679_v35  ;;  %v5680_v11 = vadd.f32 1e-05, %v5677_v63 }
0x15d7   :  { %7230 = vrsqrt.f32 %v5680_v11 }
0x15dd   :  { %v7227_v36 = vpop.eup %7226 }
0x15de   :  { %v5684_v48 = vmul.f32 %v7227_v36, %v5660_v57 }
0x15df   :  { %v7229_v45 = vpop.eup %7228 }
0x15e0   :  { %v5685_v56 = vmul.f32 %v7229_v45, %v5661_v12  ;;  %v5693_v17 = vmul.f32 %v6128_v59, %v5684_v48 }
0x15e1   :  { %v7231_v47 = vpop.eup %7230 }
0x15e2   :  { %v5686_v13 = vmul.f32 %v7231_v47, %v5662_v29  ;;  %v5694_v14 = vmul.f32 %v6128_v59, %v5685_v56  ;;  %v5702_v28 = vadd.f32 %v6129_v24, %v5693_v17 }
0x15e4   :  { %v5695_v58 = vmul.f32 %v6128_v59, %v5686_v13  ;;  %v5703_v43 = vadd.f32 %v6129_v24, %v5694_v14 }
0x15e6   :  { %v5705_v16 = vpack.c.bf16 %v5703_v43, %v5702_v28  ;;  %v5704_v19 = vadd.f32 %v6129_v24, %v5695_v58 }
0x15e8   :  { %6777 = vmatprep.mubr.msk.bf16.mxu1 %vm275_vm4, %v5705_v16  ;;  %v5706_v20 = vpack.c.bf16 %v5704_v19, %v5704_v19 }
0x15ea   :  { %6778 = vmatmul.mubr.msk.bf16.vlgmr.msra.gmra.mrb[96].mxu1 %vm275_vm4, %v5706_v20 }
0x16bd   :  { %v6779_v55 = vpop.f32.mrb[96].mxu1 }
0x16be   :  { %v5770_v30 = vpop.f32.mrb[97].mxu1 }
0x16bf   :  { %v5771_v21 = vadd.f32 %v6130_v60, %v5770_v30  ;;  %v6780_v42 = vpop.f32.mrb[98].mxu1 }
0x16c0   :  { %v5773_v33 = vpop.f32.mrb[99].mxu1 }
0x16c1   :  { %5783 = vst [vmem:[#allocation7] sm:$0x1] %v5771_v21  ;;  %v5774_v8 = vadd.f32 %v6130_v60, %v5773_v33 }
0x16c3   :  { %5784 = vst [vmem:[#allocation7] sm:$0x2] %v5774_v8 }
0x16c4   :  { %7270 = shalt.err (!%p7267_p4)
}
0x16c5   :  { %s7271_s6 = scalar_lea.hbm %s9124_s19, 32 }
0x16c6   :  { %p7272_p5 = scmp.ne.s32.totalorder %s9124_s19, %s7271_s6  ;;  %p7275_p6 = scmp.lt.u32.totalorder %s7271_s6, %s9124_s19 }
0x16c8   :  { %p7277_p7 = pnand %p7275_p6, %p7272_p5 }
0x16ca   :  { %7280 = shalt.err (!%p7277_p7)
}
0x16cb   :  { %5794 = dma.vmem_to_hbm [thread:$0]  %s5792_s16, 32, %s9124_s19, [#allocation8]  }
0x16cc   :  { %7281 = dma.done.wait [#allocation8], 32  }
0x16cd   :  { %7282 = vsyncadd [#allocation8], 4294967264 }
0x16ce   :  { %5798 = vsyncpa [#allocation8], 1 }

</bundles_post_ra>
